<compile_context>
chip_gen: v7x
topology: tpu7x:2x2x1
jax: 0.10.0
libtpu: 0.0.40
codegen_flags: <defaults>
</compile_context>

<pallas_src>
import math

import jax
import jax.numpy as jnp
from jax import lax
from jax.experimental import pallas as pl
from jax.experimental.pallas import tpu as pltpu

HIDDEN = 8 * 29          # 232   LSTM hidden size per direction
FEAT = 16 * 29           # 464   flattened input / bidirectional output size
NUM_LAYERS = 6
LRELU_SLOPE = 0.2

HP = 256                 # HIDDEN padded to a lane multiple of 128
DIN_P = 2 * HP           # 512   padded layer-input width (also >= FEAT)
GP = 4 * HP              # 1024  padded fused-gate width: [i | f | g | o]


# ----------------------------------------------------------------------------
# Pallas kernel: full 6-layer bidirectional LSTM stack, batch = 1.
# grid = (NUM_LAYERS,); weights streamed per layer via BlockSpec index_map.
# ----------------------------------------------------------------------------
def _lstm_stack_kernel(x_ref,      # (T, DIN_P)        f32  padded input seq
                       wih_ref,    # (1, 2, DIN_P, GP) bf16 input->gates
                       whh_ref,    # (1, 2, HP,    GP) bf16 hidden->gates
                       b_ref,      # (1, 2, 1,     GP) f32  combined bias
                       out_ref,    # (T, 2*HP)         f32  [fwd|pad|bwd|pad]
                       seq_scr,    # (T, 2*HP) f32  current layer input
                       nxt_scr,    # (T, 2*HP) f32  current layer output
                       xp_scr):    # (T, GP)   f32  hoisted input projection
    layer = pl.program_id(0)
    T = x_ref.shape[0]

    # Layer input: flattened audio features for layer 0, otherwise the
    # previous layer's output (persistent VMEM scratch, no HBM round trip).
    @pl.when(layer == 0)
    def _():
        seq_scr[...] = x_ref[...]

    @pl.when(layer > 0)
    def _():
        seq_scr[...] = nxt_scr[...]

    seq_bf16 = seq_scr[...].astype(jnp.bfloat16)

    for d in range(2):               # 0 = forward, 1 = backward (static unroll)
        # Hoisted input projection + bias for the whole sequence:
        # one (T, DIN_P) @ (DIN_P, 4*HP) MXU matmul per direction.
        xp_scr[...] = (
            jnp.dot(seq_bf16, wih_ref[0, d],
                    preferred_element_type=jnp.float32)
            + b_ref[0, d])

        def step(t, carry, d=d):
            h, c = carry
            tt = t if d == 0 else T - 1 - t          # reversed walk for bwd
            # Fused gate preactivation: single (1, HP) @ (HP, 4*HP) matmul.
            pre = xp_scr[pl.ds(tt, 1), :] + jnp.dot(
                h.astype(jnp.bfloat16), whh_ref[0, d],
                preferred_element_type=jnp.float32)
            # PyTorch LSTM gate order: i, f, g, o.
            i = jax.nn.sigmoid(pre[:, 0 * HP:1 * HP])
            f = jax.nn.sigmoid(pre[:, 1 * HP:2 * HP])
            g = jnp.tanh(pre[:, 2 * HP:3 * HP])
            o = jax.nn.sigmoid(pre[:, 3 * HP:4 * HP])
            c = f * c + i * g
            h = o * jnp.tanh(c)
            # Padded lanes stay exactly 0 (zero-padded W/b => pre = 0 =>
            # g = 0 => c stays 0 => h = 0).
            nxt_scr[pl.ds(tt, 1), d * HP:(d + 1) * HP] = h
            return (h, c)

        lax.fori_loop(0, T, step,
                      (jnp.zeros((1, HP), jnp.float32),
                       jnp.zeros((1, HP), jnp.float32)))

    @pl.when(layer == pl.num_programs(0) - 1)
    def _():
        out_ref[...] = nxt_scr[...]


def lstm_stack(x_pad, wih_all, whh_all, b_all):
    """x_pad: (T, DIN_P) f32.  Weights stacked over (layer, direction)."""
    T = x_pad.shape[0]
    return pl.pallas_call(
        _lstm_stack_kernel,
        out_shape=jax.ShapeDtypeStruct((T, 2 * HP), jnp.float32),
        grid_spec=pltpu.PrefetchScalarGridSpec(
            num_scalar_prefetch=0,
            grid=(NUM_LAYERS,),
            in_specs=[
                pl.BlockSpec((T, 2 * HP), lambda l: (0, 0)),            # resident
                pl.BlockSpec((1, 2, DIN_P, GP), lambda l: (l, 0, 0, 0)),  # stream
                pl.BlockSpec((1, 2, HP, GP), lambda l: (l, 0, 0, 0)),     # stream
                pl.BlockSpec((1, 2, 1, GP), lambda l: (l, 0, 0, 0)),      # stream
            ],
            out_specs=pl.BlockSpec((T, 2 * HP), lambda l: (0, 0)),      # resident
            scratch_shapes=[
                pltpu.VMEM((T, 2 * HP), jnp.float32),   # seq_scr
                pltpu.VMEM((T, 2 * HP), jnp.float32),   # nxt_scr
                pltpu.VMEM((T, GP), jnp.float32),       # xp_scr
            ],
        ),
        compiler_params=pltpu.CompilerParams(
            dimension_semantics=("arbitrary",)),        # layers are sequential
    )(x_pad, wih_all, whh_all, b_all)


# ----------------------------------------------------------------------------
# Pallas kernel: fused linear1 -> linear2 -> linear3, each + LeakyReLU(0.2).
# (Dropout is identity in eval mode.)
# ----------------------------------------------------------------------------
def _mlp_kernel(x_ref, w1_ref, b1_ref, w2_ref, b2_ref, w3_ref, b3_ref, out_ref):
    def lin_lrelu(h, w_ref, b_ref):
        y = jnp.dot(h, w_ref[...], preferred_element_type=jnp.float32) + b_ref[...]
        return jnp.where(y > 0, y, LRELU_SLOPE * y)

    h = lin_lrelu(x_ref[...], w1_ref, b1_ref)
    h = lin_lrelu(h, w2_ref, b2_ref)
    out_ref[...] = lin_lrelu(h, w3_ref, b3_ref)


def mlp_head(x, w1, b1, w2, b2, w3, b3):
    T = x.shape[0]
    vmem = pl.BlockSpec(memory_space=pltpu.MemorySpace.VMEM)
    return pl.pallas_call(
        _mlp_kernel,
        out_shape=jax.ShapeDtypeStruct((T, 128), jnp.float32),
        in_specs=[vmem] * 7,
        out_specs=vmem,
    )(x, w1, b1, w2, b2, w3, b3)


# ----------------------------------------------------------------------------
# Deterministic parameter init (PyTorch-style uniform bounds; synthetic).
# ----------------------------------------------------------------------------
def init_params(key):
    keys = iter(jax.random.split(key, 64))

    def u(shape, bound):
        return jax.random.uniform(next(keys), shape, jnp.float32, -bound, bound)

    lstm_bound = 1.0 / math.sqrt(HIDDEN)
    lstm = []
    for layer in range(NUM_LAYERS):
        d_in = FEAT if layer == 0 else 2 * HIDDEN     # both 464 here
        layer_p = {}
        for d in ("fwd", "bwd"):
            layer_p[d] = {
                "w_ih": u((4 * HIDDEN, d_in), lstm_bound),
                "w_hh": u((4 * HIDDEN, HIDDEN), lstm_bound),
                # combined bias_ih + bias_hh (PyTorch adds them)
                "b": u((4 * HIDDEN,), lstm_bound) + u((4 * HIDDEN,), lstm_bound),
            }
        lstm.append(layer_p)

    params = {"lstm": lstm}
    for name, (d_out, d_in) in (("lin1", (8 * 29, 16 * 29)),
                                ("lin2", (4 * 29, 8 * 29)),
                                ("lin3", (79, 4 * 29))):
        b = 1.0 / math.sqrt(d_in)
        params[name] = {"w": u((d_out, d_in), b), "b": u((d_out,), b)}
    return params


# ----------------------------------------------------------------------------
# One-time weight preprocessing: transpose, fuse gates, zero-pad to lane
# multiples, stack over (layer, direction), cast LSTM matmul weights to bf16.
# ----------------------------------------------------------------------------
def _pad_gate_cols(m):
    """(rows, 4*HIDDEN) -> (rows, 4*HP): zero-pad each i/f/g/o block to HP."""
    parts = [jnp.pad(m[:, k * HIDDEN:(k + 1) * HIDDEN],
                     ((0, 0), (0, HP - HIDDEN))) for k in range(4)]
    return jnp.concatenate(parts, axis=1)


def _pad_bidir_rows(m):
    """(2*HIDDEN, cols) -> (2*HP, cols): pad fwd/bwd halves separately, matching
    the padded [fwd | pad | bwd | pad] activation layout."""
    fwd = jnp.pad(m[:HIDDEN], ((0, HP - HIDDEN), (0, 0)))
    bwd = jnp.pad(m[HIDDEN:], ((0, HP - HIDDEN), (0, 0)))
    return jnp.concatenate([fwd, bwd], axis=0)


def preprocess_params(params):
    wih_l, whh_l, b_l = [], [], []
    for layer_idx, layer in enumerate(params["lstm"]):
        wih_d, whh_d, b_d = [], [], []
        for d in ("fwd", "bwd"):
            p = layer[d]
            wt = _pad_gate_cols(p["w_ih"].T)                    # (Din, 4*HP)
            if layer_idx == 0:
                wt = jnp.pad(wt, ((0, DIN_P - FEAT), (0, 0)))   # tail-pad input
            else:
                wt = _pad_bidir_rows(wt)                        # [fwd|pad|bwd|pad]
            ut = jnp.pad(_pad_gate_cols(p["w_hh"].T),
                         ((0, HP - HIDDEN), (0, 0)))            # (HP, 4*HP)
            bt = _pad_gate_cols(p["b"].reshape(1, -1))          # (1, 4*HP)
            wih_d.append(wt.astype(jnp.bfloat16))
            whh_d.append(ut.astype(jnp.bfloat16))
            b_d.append(bt)
        wih_l.append(jnp.stack(wih_d))
        whh_l.append(jnp.stack(whh_d))
        b_l.append(jnp.stack(b_d))

    prep = {
        "wih": jnp.stack(wih_l),                  # (L, 2, 512, 1024) bf16
        "whh": jnp.stack(whh_l),                  # (L, 2, 256, 1024) bf16
        "b": jnp.stack(b_l),                      # (L, 2, 1, 1024)   f32
    }

    w1, b1 = params["lin1"]["w"], params["lin1"]["b"]
    w2, b2 = params["lin2"]["w"], params["lin2"]["b"]
    w3, b3 = params["lin3"]["w"], params["lin3"]["b"]
    prep["w1"] = jnp.pad(_pad_bidir_rows(w1.T), ((0, 0), (0, HP - HIDDEN)))  # (512,256)
    prep["b1"] = jnp.pad(b1.reshape(1, -1), ((0, 0), (0, HP - HIDDEN)))      # (1,256)
    prep["w2"] = jnp.pad(w2.T, ((0, HP - HIDDEN), (0, 128 - 4 * 29)))        # (256,128)
    prep["b2"] = jnp.pad(b2.reshape(1, -1), ((0, 0), (0, 128 - 4 * 29)))     # (1,128)
    prep["w3"] = jnp.pad(w3.T, ((0, 128 - 4 * 29), (0, 128 - 79)))           # (128,128)
    prep["b3"] = jnp.pad(b3.reshape(1, -1), ((0, 0), (0, 128 - 79)))         # (1,128)
    return prep


# ----------------------------------------------------------------------------
# Audio2Exp.forward
# ----------------------------------------------------------------------------
def audio2exp_forward(prep, audio_inputs):
    N = audio_inputs.shape[0]
    x = audio_inputs.reshape(N, -1)                       # Flatten -> (N, 464)
    x = jnp.pad(x, ((0, 0), (0, DIN_P - FEAT)))           # lane-pad -> (N, 512)

    # self.rnn(inputs.unsqueeze(0)) -> 6-layer bidirectional LSTM, batch=1, seq=N.
    seq = lstm_stack(x, prep["wih"], prep["whh"], prep["b"])   # (N, 512) padded

    # NOTE: RNNModel.fc1 exists in __init__ but is unused in forward -> omitted.
    # TODO(synk): nn.Dropout(p=0.5) is identity here (eval semantics); train-mode
    # RNG masking is not implemented in-kernel.
    out = mlp_head(seq, prep["w1"], prep["b1"], prep["w2"], prep["b2"],
                   prep["w3"], prep["b3"])                 # (N, 128) padded
    return None, out[:, :79]


if __name__ == "__main__":
    key = jax.random.PRNGKey(0)
    pkey, xkey = jax.random.split(key)
    params = init_params(pkey)
    prep = preprocess_params(params)       # one-time transpose/fuse/pad/bf16

    # Small but shape-consistent input: 8 frames of (16, 29) audio features.
    audio_inputs = jax.random.normal(xkey, (8, 16, 29), dtype=jnp.float32)

    fwd = jax.jit(audio2exp_forward)
    _, out = fwd(prep, audio_inputs)
    out = jax.block_until_ready(out)
    assert out.shape == (8, 79), out.shape
    assert bool(jnp.all(jnp.isfinite(out)))
    print("KERNEL_OK")
</pallas_src>

<mosaic_0001>
module attributes {stable_mosaic.version = 11 : i64} {
  func.func @_mlp_kernel(%arg0: memref<8x512xf32, #tpu.memory_space<vmem>>, %arg1: memref<512x256xf32, #tpu.memory_space<vmem>>, %arg2: memref<1x256xf32, #tpu.memory_space<vmem>>, %arg3: memref<256x128xf32, #tpu.memory_space<vmem>>, %arg4: memref<1x128xf32, #tpu.memory_space<vmem>>, %arg5: memref<128x128xf32, #tpu.memory_space<vmem>>, %arg6: memref<1x128xf32, #tpu.memory_space<vmem>>, %arg7: memref<8x128xf32, #tpu.memory_space<vmem>>) attributes {dimension_semantics = [], scalar_prefetch = 0 : i64, scratch_operands = 0 : i64, tpu.core_type = #tpu.core_type<tc>} {
    %c0 = arith.constant 0 : index
    %c0_0 = arith.constant 0 : index
    %0 = vector.load %arg0[%c0, %c0_0] : memref<8x512xf32, #tpu.memory_space<vmem>>, vector<8x512xf32>
    %c0_1 = arith.constant 0 : index
    %c0_2 = arith.constant 0 : index
    %1 = vector.load %arg1[%c0_1, %c0_2] : memref<512x256xf32, #tpu.memory_space<vmem>>, vector<512x256xf32>
    %cst = arith.constant dense<0.000000e+00> : vector<8x256xf32>
    %2 = tpu.matmul %0, %1, %cst {dimension_numbers = #tpu.dot_dimension_numbers<[1], [0], [0], [1], [0, 0, 1, 1], [], []>} : vector<8x512xf32>, vector<512x256xf32>, vector<8x256xf32> -> vector<8x256xf32>
    %c0_3 = arith.constant 0 : index
    %c0_4 = arith.constant 0 : index
    %3 = vector.load %arg2[%c0_3, %c0_4] : memref<1x256xf32, #tpu.memory_space<vmem>>, vector<1x256xf32>
    %4 = vector.broadcast %3 : vector<1x256xf32> to vector<8x256xf32>
    %5 = arith.addf %2, %4 : vector<8x256xf32>
    %cst_5 = arith.constant 0.000000e+00 : f32
    %6 = vector.broadcast %cst_5 : f32 to vector<8x256xf32>
    %7 = arith.cmpf ogt, %5, %6 : vector<8x256xf32>
    %cst_6 = arith.constant 2.000000e-01 : f32
    %8 = vector.broadcast %cst_6 : f32 to vector<8x256xf32>
    %9 = arith.mulf %8, %5 : vector<8x256xf32>
    %10 = arith.select %7, %5, %9 : vector<8x256xi1>, vector<8x256xf32>
    %c0_7 = arith.constant 0 : index
    %c0_8 = arith.constant 0 : index
    %11 = vector.load %arg3[%c0_7, %c0_8] : memref<256x128xf32, #tpu.memory_space<vmem>>, vector<256x128xf32>
    %cst_9 = arith.constant dense<0.000000e+00> : vector<8x128xf32>
    %12 = tpu.matmul %10, %11, %cst_9 {dimension_numbers = #tpu.dot_dimension_numbers<[1], [0], [0], [1], [0, 0, 1, 1], [], []>} : vector<8x256xf32>, vector<256x128xf32>, vector<8x128xf32> -> vector<8x128xf32>
    %c0_10 = arith.constant 0 : index
    %c0_11 = arith.constant 0 : index
    %13 = vector.load %arg4[%c0_10, %c0_11] : memref<1x128xf32, #tpu.memory_space<vmem>>, vector<1x128xf32>
    %14 = vector.broadcast %13 : vector<1x128xf32> to vector<8x128xf32>
    %15 = arith.addf %12, %14 : vector<8x128xf32>
    %cst_12 = arith.constant 0.000000e+00 : f32
    %16 = vector.broadcast %cst_12 : f32 to vector<8x128xf32>
    %17 = arith.cmpf ogt, %15, %16 : vector<8x128xf32>
    %cst_13 = arith.constant 2.000000e-01 : f32
    %18 = vector.broadcast %cst_13 : f32 to vector<8x128xf32>
    %19 = arith.mulf %18, %15 : vector<8x128xf32>
    %20 = arith.select %17, %15, %19 : vector<8x128xi1>, vector<8x128xf32>
    %c0_14 = arith.constant 0 : index
    %c0_15 = arith.constant 0 : index
    %21 = vector.load %arg5[%c0_14, %c0_15] : memref<128x128xf32, #tpu.memory_space<vmem>>, vector<128x128xf32>
    %cst_16 = arith.constant dense<0.000000e+00> : vector<8x128xf32>
    %22 = tpu.matmul %20, %21, %cst_16 {dimension_numbers = #tpu.dot_dimension_numbers<[1], [0], [0], [1], [0, 0, 1, 1], [], []>} : vector<8x128xf32>, vector<128x128xf32>, vector<8x128xf32> -> vector<8x128xf32>
    %c0_17 = arith.constant 0 : index
    %c0_18 = arith.constant 0 : index
    %23 = vector.load %arg6[%c0_17, %c0_18] : memref<1x128xf32, #tpu.memory_space<vmem>>, vector<1x128xf32>
    %24 = vector.broadcast %23 : vector<1x128xf32> to vector<8x128xf32>
    %25 = arith.addf %22, %24 : vector<8x128xf32>
    %cst_19 = arith.constant 0.000000e+00 : f32
    %26 = vector.broadcast %cst_19 : f32 to vector<8x128xf32>
    %27 = arith.cmpf ogt, %25, %26 : vector<8x128xf32>
    %cst_20 = arith.constant 2.000000e-01 : f32
    %28 = vector.broadcast %cst_20 : f32 to vector<8x128xf32>
    %29 = arith.mulf %28, %25 : vector<8x128xf32>
    %30 = arith.select %27, %25, %29 : vector<8x128xi1>, vector<8x128xf32>
    %c0_21 = arith.constant 0 : index
    %c0_22 = arith.constant 0 : index
    %31 = vector.load %arg7[%c0_21, %c0_22] : memref<8x128xf32, #tpu.memory_space<vmem>>, vector<8x128xf32>
    tpu.vector_store %arg7[%c0_21, %c0_22], %30 {strides = array<i32>} : memref<8x128xf32, #tpu.memory_space<vmem>>, vector<8x128xf32>,
    return
  }
}

module attributes {stable_mosaic.version = 11 : i64} {
  func.func @_lstm_stack_kernel(%arg0: i32, %arg1: memref<8x512xf32, #tpu.memory_space<vmem>>, %arg2: memref<1x2x512x1024xbf16, #tpu.memory_space<vmem>>, %arg3: memref<1x2x256x1024xbf16, #tpu.memory_space<vmem>>, %arg4: memref<1x2x1x1024xf32, #tpu.memory_space<vmem>>, %arg5: memref<8x512xf32, #tpu.memory_space<vmem>>, %arg6: memref<8x512xf32, #tpu.memory_space<vmem>>, %arg7: memref<8x512xf32, #tpu.memory_space<vmem>>, %arg8: memref<8x1024xf32, #tpu.memory_space<vmem>>) attributes {dimension_semantics = [#tpu.dimension_semantics<arbitrary>], iteration_bounds = array<i64: 6>, scalar_prefetch = 0 : i64, scratch_operands = 3 : i64, tpu.core_type = #tpu.core_type<tc>, window_params = [{pipeline_mode = #tpu.pipeline_mode<synchronous>, transform_indices = @transform_0, window_bounds = array<i64: 8, 512>}, {transform_indices = @transform_1, window_bounds = array<i64: 1, 2, 512, 1024>}, {transform_indices = @transform_2, window_bounds = array<i64: 1, 2, 256, 1024>}, {transform_indices = @transform_3, window_bounds = array<i64: 1, 2, 1, 1024>}, {pipeline_mode = #tpu.pipeline_mode<synchronous>, transform_indices = @transform_4, window_bounds = array<i64: 8, 512>}]} {
    %c0_i32 = arith.constant 0 : i32
    %0 = arith.cmpi eq, %arg0, %c0_i32 : i32
    %1 = arith.extui %0 : i1 to i32
    %c0_i32_0 = arith.constant 0 : i32
    %2 = arith.cmpi ne, %1, %c0_i32_0 : i32
    scf.if %2 {
      %c0_35 = arith.constant 0 : index
      %c0_36 = arith.constant 0 : index
      %35 = vector.load %arg1[%c0_35, %c0_36] : memref<8x512xf32, #tpu.memory_space<vmem>>, vector<8x512xf32>
      %c0_37 = arith.constant 0 : index
      %c0_38 = arith.constant 0 : index
      %36 = vector.load %arg6[%c0_37, %c0_38] : memref<8x512xf32, #tpu.memory_space<vmem>>, vector<8x512xf32>
      tpu.vector_store %arg6[%c0_37, %c0_38], %35 {strides = array<i32>} : memref<8x512xf32, #tpu.memory_space<vmem>>, vector<8x512xf32>,
    } else {
    }
    %c0_i32_1 = arith.constant 0 : i32
    %3 = arith.cmpi sgt, %arg0, %c0_i32_1 : i32
    %4 = arith.extui %3 : i1 to i32
    %c0_i32_2 = arith.constant 0 : i32
    %5 = arith.cmpi ne, %4, %c0_i32_2 : i32
    scf.if %5 {
      %c0_35 = arith.constant 0 : index
      %c0_36 = arith.constant 0 : index
      %35 = vector.load %arg7[%c0_35, %c0_36] : memref<8x512xf32, #tpu.memory_space<vmem>>, vector<8x512xf32>
      %c0_37 = arith.constant 0 : index
      %c0_38 = arith.constant 0 : index
      %36 = vector.load %arg6[%c0_37, %c0_38] : memref<8x512xf32, #tpu.memory_space<vmem>>, vector<8x512xf32>
      tpu.vector_store %arg6[%c0_37, %c0_38], %35 {strides = array<i32>} : memref<8x512xf32, #tpu.memory_space<vmem>>, vector<8x512xf32>,
    } else {
    }
    %c0 = arith.constant 0 : index
    %c0_3 = arith.constant 0 : index
    %6 = vector.load %arg6[%c0, %c0_3] : memref<8x512xf32, #tpu.memory_space<vmem>>, vector<8x512xf32>
    %7 = arith.truncf %6 : vector<8x512xf32> to vector<8x512xbf16>
    %c0_4 = arith.constant 0 : index
    %c0_5 = arith.constant 0 : index
    %c0_6 = arith.constant 0 : index
    %c0_7 = arith.constant 0 : index
    %8 = vector.load %arg2[%c0_4, %c0_5, %c0_6, %c0_7] : memref<1x2x512x1024xbf16, #tpu.memory_space<vmem>>, vector<1x1x512x1024xbf16>
    %9 = vector.shape_cast %8 : vector<1x1x512x1024xbf16> to vector<512x1024xbf16>
    %cst = arith.constant dense<0.000000e+00> : vector<8x1024xf32>
    %10 = tpu.matmul %7, %9, %cst {dimension_numbers = #tpu.dot_dimension_numbers<[1], [0], [0], [1], [0, 0, 1, 1], [], []>} : vector<8x512xbf16>, vector<512x1024xbf16>, vector<8x1024xf32> -> vector<8x1024xf32>
    %c0_8 = arith.constant 0 : index
    %c0_9 = arith.constant 0 : index
    %c0_10 = arith.constant 0 : index
    %c0_11 = arith.constant 0 : index
    %11 = vector.load %arg4[%c0_8, %c0_9, %c0_10, %c0_11] : memref<1x2x1x1024xf32, #tpu.memory_space<vmem>>, vector<1x1x1x1024xf32>
    %12 = vector.shape_cast %11 : vector<1x1x1x1024xf32> to vector<1x1024xf32>
    %13 = vector.broadcast %12 : vector<1x1024xf32> to vector<8x1024xf32>
    %14 = arith.addf %10, %13 : vector<8x1024xf32>
    %c0_12 = arith.constant 0 : index
    %c0_13 = arith.constant 0 : index
    %15 = vector.load %arg8[%c0_12, %c0_13] : memref<8x1024xf32, #tpu.memory_space<vmem>>, vector<8x1024xf32>
    tpu.vector_store %arg8[%c0_12, %c0_13], %14 {strides = array<i32>} : memref<8x1024xf32, #tpu.memory_space<vmem>>, vector<8x1024xf32>,
    %cst_14 = arith.constant 0.000000e+00 : f32
    %16 = vector.broadcast %cst_14 : f32 to vector<1x256xf32>
    %cst_15 = arith.constant 0.000000e+00 : f32
    %17 = vector.broadcast %cst_15 : f32 to vector<1x256xf32>
    %c0_i32_16 = arith.constant 0 : i32
    %c8_i32 = arith.constant 8 : i32
    %18 = arith.addi %c0_i32_16, %c8_i32 : i32
    %c1_i32 = arith.constant 1 : i32
    %19:2 = scf.for %arg9 = %c0_i32_16 to %18 step %c1_i32 iter_args(%arg10 = %16, %arg11 = %17) -> (vector<1x256xf32>, vector<1x256xf32>)  : i32 {
      %35 = arith.index_cast %arg9 : i32 to index
      %c0_35 = arith.constant 0 : index
      %36 = vector.load %arg8[%35, %c0_35] : memref<8x1024xf32, #tpu.memory_space<vmem>>, vector<1x1024xf32>
      %37 = arith.truncf %arg10 : vector<1x256xf32> to vector<1x256xbf16>
      %c0_36 = arith.constant 0 : index
      %c0_37 = arith.constant 0 : index
      %c0_38 = arith.constant 0 : index
      %c0_39 = arith.constant 0 : index
      %38 = vector.load %arg3[%c0_36, %c0_37, %c0_38, %c0_39] : memref<1x2x256x1024xbf16, #tpu.memory_space<vmem>>, vector<1x1x256x1024xbf16>
      %39 = vector.shape_cast %38 : vector<1x1x256x1024xbf16> to vector<256x1024xbf16>
      %cst_40 = arith.constant dense<0.000000e+00> : vector<1x1024xf32>
      %40 = tpu.matmul %37, %39, %cst_40 {dimension_numbers = #tpu.dot_dimension_numbers<[1], [0], [0], [1], [0, 0, 1, 1], [], []>} : vector<1x256xbf16>, vector<256x1024xbf16>, vector<1x1024xf32> -> vector<1x1024xf32>
      %41 = arith.addf %36, %40 : vector<1x1024xf32>
      %42 = vector.extract_strided_slice %41 {offsets = [0, 0], sizes = [1, 256], strides = [1, 1]} : vector<1x1024xf32> to vector<1x256xf32>
      %43 = arith.negf %42 : vector<1x256xf32>
      %44 = math.exp %43 : vector<1x256xf32>
      %cst_41 = arith.constant 1.000000e+00 : f32
      %45 = vector.broadcast %cst_41 : f32 to vector<1x256xf32>
      %46 = arith.addf %45, %44 : vector<1x256xf32>
      %47 = arith.divf %45, %46 : vector<1x256xf32>
      %48 = vector.extract_strided_slice %41 {offsets = [0, 256], sizes = [1, 256], strides = [1, 1]} : vector<1x1024xf32> to vector<1x256xf32>
      %49 = arith.negf %48 : vector<1x256xf32>
      %50 = math.exp %49 : vector<1x256xf32>
      %cst_42 = arith.constant 1.000000e+00 : f32
      %51 = vector.broadcast %cst_42 : f32 to vector<1x256xf32>
      %52 = arith.addf %51, %50 : vector<1x256xf32>
      %53 = arith.divf %51, %52 : vector<1x256xf32>
      %54 = vector.extract_strided_slice %41 {offsets = [0, 512], sizes = [1, 256], strides = [1, 1]} : vector<1x1024xf32> to vector<1x256xf32>
      %55 = math.tanh %54 : vector<1x256xf32>
      %56 = vector.extract_strided_slice %41 {offsets = [0, 768], sizes = [1, 256], strides = [1, 1]} : vector<1x1024xf32> to vector<1x256xf32>
      %57 = arith.negf %56 : vector<1x256xf32>
      %58 = math.exp %57 : vector<1x256xf32>
      %cst_43 = arith.constant 1.000000e+00 : f32
      %59 = vector.broadcast %cst_43 : f32 to vector<1x256xf32>
      %60 = arith.addf %59, %58 : vector<1x256xf32>
      %61 = arith.divf %59, %60 : vector<1x256xf32>
      %62 = arith.mulf %53, %arg11 : vector<1x256xf32>
      %63 = arith.mulf %47, %55 : vector<1x256xf32>
      %64 = arith.addf %62, %63 : vector<1x256xf32>
      %65 = math.tanh %64 : vector<1x256xf32>
      %66 = arith.mulf %61, %65 : vector<1x256xf32>
      %67 = arith.index_cast %arg9 : i32 to index
      %c0_44 = arith.constant 0 : index
      %68 = vector.load %arg7[%67, %c0_44] : memref<8x512xf32, #tpu.memory_space<vmem>>, vector<1x256xf32>
      tpu.vector_store %arg7[%67, %c0_44], %66 {strides = array<i32>} : memref<8x512xf32, #tpu.memory_space<vmem>>, vector<1x256xf32>,
      scf.yield %66, %64 : vector<1x256xf32>, vector<1x256xf32>
    }
    %c8_i32_17 = arith.constant 8 : i32
    %c0_18 = arith.constant 0 : index
    %c1 = arith.constant 1 : index
    %c0_19 = arith.constant 0 : index
    %c0_20 = arith.constant 0 : index
    %20 = vector.load %arg2[%c0_18, %c1, %c0_19, %c0_20] : memref<1x2x512x1024xbf16, #tpu.memory_space<vmem>>, vector<1x1x512x1024xbf16>
    %21 = vector.shape_cast %20 : vector<1x1x512x1024xbf16> to vector<512x1024xbf16>
    %cst_21 = arith.constant dense<0.000000e+00> : vector<8x1024xf32>
    %22 = tpu.matmul %7, %21, %cst_21 {dimension_numbers = #tpu.dot_dimension_numbers<[1], [0], [0], [1], [0, 0, 1, 1], [], []>} : vector<8x512xbf16>, vector<512x1024xbf16>, vector<8x1024xf32> -> vector<8x1024xf32>
    %c0_22 = arith.constant 0 : index
    %c1_23 = arith.constant 1 : index
    %c0_24 = arith.constant 0 : index
    %c0_25 = arith.constant 0 : index
    %23 = vector.load %arg4[%c0_22, %c1_23, %c0_24, %c0_25] : memref<1x2x1x1024xf32, #tpu.memory_space<vmem>>, vector<1x1x1x1024xf32>
    %24 = vector.shape_cast %23 : vector<1x1x1x1024xf32> to vector<1x1024xf32>
    %25 = vector.broadcast %24 : vector<1x1024xf32> to vector<8x1024xf32>
    %26 = arith.addf %22, %25 : vector<8x1024xf32>
    %c0_26 = arith.constant 0 : index
    %c0_27 = arith.constant 0 : index
    %27 = vector.load %arg8[%c0_26, %c0_27] : memref<8x1024xf32, #tpu.memory_space<vmem>>, vector<8x1024xf32>
    tpu.vector_store %arg8[%c0_26, %c0_27], %26 {strides = array<i32>} : memref<8x1024xf32, #tpu.memory_space<vmem>>, vector<8x1024xf32>,
    %cst_28 = arith.constant 0.000000e+00 : f32
    %28 = vector.broadcast %cst_28 : f32 to vector<1x256xf32>
    %cst_29 = arith.constant 0.000000e+00 : f32
    %29 = vector.broadcast %cst_29 : f32 to vector<1x256xf32>
    %c0_i32_30 = arith.constant 0 : i32
    %c8_i32_31 = arith.constant 8 : i32
    %30 = arith.addi %c0_i32_30, %c8_i32_31 : i32
    %c1_i32_32 = arith.constant 1 : i32
    %31:2 = scf.for %arg9 = %c0_i32_30 to %30 step %c1_i32_32 iter_args(%arg10 = %28, %arg11 = %29) -> (vector<1x256xf32>, vector<1x256xf32>)  : i32 {
      %c7_i32 = arith.constant 7 : i32
      %35 = arith.subi %c7_i32, %arg9 : i32
      %36 = arith.index_cast %35 : i32 to index
      %c0_35 = arith.constant 0 : index
      %37 = vector.load %arg8[%36, %c0_35] : memref<8x1024xf32, #tpu.memory_space<vmem>>, vector<1x1024xf32>
      %38 = arith.truncf %arg10 : vector<1x256xf32> to vector<1x256xbf16>
      %c0_36 = arith.constant 0 : index
      %c1_37 = arith.constant 1 : index
      %c0_38 = arith.constant 0 : index
      %c0_39 = arith.constant 0 : index
      %39 = vector.load %arg3[%c0_36, %c1_37, %c0_38, %c0_39] : memref<1x2x256x1024xbf16, #tpu.memory_space<vmem>>, vector<1x1x256x1024xbf16>
      %40 = vector.shape_cast %39 : vector<1x1x256x1024xbf16> to vector<256x1024xbf16>
      %cst_40 = arith.constant dense<0.000000e+00> : vector<1x1024xf32>
      %41 = tpu.matmul %38, %40, %cst_40 {dimension_numbers = #tpu.dot_dimension_numbers<[1], [0], [0], [1], [0, 0, 1, 1], [], []>} : vector<1x256xbf16>, vector<256x1024xbf16>, vector<1x1024xf32> -> vector<1x1024xf32>
      %42 = arith.addf %37, %41 : vector<1x1024xf32>
      %43 = vector.extract_strided_slice %42 {offsets = [0, 0], sizes = [1, 256], strides = [1, 1]} : vector<1x1024xf32> to vector<1x256xf32>
      %44 = arith.negf %43 : vector<1x256xf32>
      %45 = math.exp %44 : vector<1x256xf32>
      %cst_41 = arith.constant 1.000000e+00 : f32
      %46 = vector.broadcast %cst_41 : f32 to vector<1x256xf32>
      %47 = arith.addf %46, %45 : vector<1x256xf32>
      %48 = arith.divf %46, %47 : vector<1x256xf32>
      %49 = vector.extract_strided_slice %42 {offsets = [0, 256], sizes = [1, 256], strides = [1, 1]} : vector<1x1024xf32> to vector<1x256xf32>
      %50 = arith.negf %49 : vector<1x256xf32>
      %51 = math.exp %50 : vector<1x256xf32>
      %cst_42 = arith.constant 1.000000e+00 : f32
      %52 = vector.broadcast %cst_42 : f32 to vector<1x256xf32>
      %53 = arith.addf %52, %51 : vector<1x256xf32>
      %54 = arith.divf %52, %53 : vector<1x256xf32>
      %55 = vector.extract_strided_slice %42 {offsets = [0, 512], sizes = [1, 256], strides = [1, 1]} : vector<1x1024xf32> to vector<1x256xf32>
      %56 = math.tanh %55 : vector<1x256xf32>
      %57 = vector.extract_strided_slice %42 {offsets = [0, 768], sizes = [1, 256], strides = [1, 1]} : vector<1x1024xf32> to vector<1x256xf32>
      %58 = arith.negf %57 : vector<1x256xf32>
      %59 = math.exp %58 : vector<1x256xf32>
      %cst_43 = arith.constant 1.000000e+00 : f32
      %60 = vector.broadcast %cst_43 : f32 to vector<1x256xf32>
      %61 = arith.addf %60, %59 : vector<1x256xf32>
      %62 = arith.divf %60, %61 : vector<1x256xf32>
      %63 = arith.mulf %54, %arg11 : vector<1x256xf32>
      %64 = arith.mulf %48, %56 : vector<1x256xf32>
      %65 = arith.addf %63, %64 : vector<1x256xf32>
      %66 = math.tanh %65 : vector<1x256xf32>
      %67 = arith.mulf %62, %66 : vector<1x256xf32>
      %68 = arith.index_cast %35 : i32 to index
      %c256 = arith.constant 256 : index
      %69 = vector.load %arg7[%68, %c256] : memref<8x512xf32, #tpu.memory_space<vmem>>, vector<1x256xf32>
      tpu.vector_store %arg7[%68, %c256], %67 {strides = array<i32>} : memref<8x512xf32, #tpu.memory_space<vmem>>, vector<1x256xf32>,
      scf.yield %67, %65 : vector<1x256xf32>, vector<1x256xf32>
    }
    %c8_i32_33 = arith.constant 8 : i32
    %c5_i32 = arith.constant 5 : i32
    %32 = arith.cmpi eq, %arg0, %c5_i32 : i32
    %33 = arith.extui %32 : i1 to i32
    %c0_i32_34 = arith.constant 0 : i32
    %34 = arith.cmpi ne, %33, %c0_i32_34 : i32
    scf.if %34 {
      %c0_35 = arith.constant 0 : index
      %c0_36 = arith.constant 0 : index
      %35 = vector.load %arg7[%c0_35, %c0_36] : memref<8x512xf32, #tpu.memory_space<vmem>>, vector<8x512xf32>
      %c0_37 = arith.constant 0 : index
      %c0_38 = arith.constant 0 : index
      %36 = vector.load %arg5[%c0_37, %c0_38] : memref<8x512xf32, #tpu.memory_space<vmem>>, vector<8x512xf32>
      tpu.vector_store %arg5[%c0_37, %c0_38], %35 {strides = array<i32>} : memref<8x512xf32, #tpu.memory_space<vmem>>, vector<8x512xf32>,
    } else {
    }
    return
  }
  func.func @transform_0(%arg0: i32) -> (i32, i32) {
    %c0_i32 = arith.constant 0 : i32
    %c0_i32_0 = arith.constant 0 : i32
    %c0_i32_1 = arith.constant 0 : i32
    return %c0_i32, %c0_i32_0 : i32, i32
  }
  func.func @transform_1(%arg0: i32) -> (i32, i32, i32, i32) {
    %c0_i32 = arith.constant 0 : i32
    %c0_i32_0 = arith.constant 0 : i32
    %c0_i32_1 = arith.constant 0 : i32
    %c0_i32_2 = arith.constant 0 : i32
    return %arg0, %c0_i32, %c0_i32_0, %c0_i32_1 : i32, i32, i32, i32
  }
  func.func @transform_2(%arg0: i32) -> (i32, i32, i32, i32) {
    %c0_i32 = arith.constant 0 : i32
    %c0_i32_0 = arith.constant 0 : i32
    %c0_i32_1 = arith.constant 0 : i32
    %c0_i32_2 = arith.constant 0 : i32
    return %arg0, %c0_i32, %c0_i32_0, %c0_i32_1 : i32, i32, i32, i32
  }
  func.func @transform_3(%arg0: i32) -> (i32, i32, i32, i32) {
    %c0_i32 = arith.constant 0 : i32
    %c0_i32_0 = arith.constant 0 : i32
    %c0_i32_1 = arith.constant 0 : i32
    %c0_i32_2 = arith.constant 0 : i32
    return %arg0, %c0_i32, %c0_i32_0, %c0_i32_1 : i32, i32, i32, i32
  }
  func.func @transform_4(%arg0: i32) -> (i32, i32) {
    %c0_i32 = arith.constant 0 : i32
    %c0_i32_0 = arith.constant 0 : i32
    %c0_i32_1 = arith.constant 0 : i32
    return %c0_i32, %c0_i32_0 : i32, i32
  }
}

</mosaic_0001>

<bundles_post_ra>
// kernel: audio2exp_forward.3
= control target key start
LH: loop header
LB: loop body
LE: loop exit
PB: predicated region body
PF: predicated region fallthrough
CT: control target
= control target key end

     0   :  { %s1452_s0 = inlined_call_operand.vmem [shape: f32[8,512], index: 0, kind: input, shape index: {}]   ;;  %s1453_s1 = inlined_call_operand.vmem [shape: f32[512,256], index: 1, kind: input, shape index: {}]   ;;  %s1454_s2 = inlined_call_operand.vmem [shape: f32[1,256], index: 2, kind: input, shape index: {}]   ;;  %s1455_s3 = inlined_call_operand.vmem [shape: f32[256,128], index: 3, kind: input, shape index: {}]   ;;  %s1456_s4 = inlined_call_operand.vmem [shape: f32[1,128], index: 4, kind: input, shape index: {}]   ;;  %s1457_s5 = inlined_call_operand.vmem [shape: f32[128,128], index: 5, kind: input, shape index: {}]   ;;  %s1458_s6 = inlined_call_operand.vmem [shape: f32[1,128], index: 6, kind: input, shape index: {}]   ;;  %s1459_s7 = inlined_call_operand.hbm [shape: f32[8,128], index: 7, kind: output, shape index: {}]  }
   0x1   :  { %v32_v0 = vld [vmem:[%s1453_s1 + $0x8] sm:$0xff]  ;;  %v34_v1 = vld [vmem:[%s1453_s1 + $0x18] sm:$0xff]  ;;  %v31_v2 = vld [vmem:[%s1453_s1] sm:$0xff] }
   0x2   :  { %v631_v3 = vpack.c.bf16 %v34_v1, %v32_v0  ;;  %v33_v4 = vld [vmem:[%s1453_s1 + $0x10] sm:$0xff]  ;;  %v36_v5 = vld [vmem:[%s1453_s1 + $0x28] sm:$0xff]  ;;  %v38_v6 = vld [vmem:[%s1453_s1 + $0x38] sm:$0xff] }
   0x3   :  { %v633_v7 = vpack.c.bf16 %v33_v4, %v31_v2  ;;  %v635_v8 = vpack.c.bf16 %v38_v6, %v36_v5  ;;  %v35_v9 = vld [vmem:[%s1453_s1 + $0x20] sm:$0xff]  ;;  %v37_v10 = vld [vmem:[%s1453_s1 + $0x30] sm:$0xff]  ;;  %v40_v11 = vld [vmem:[%s1453_s1 + $0x48] sm:$0xff] }
   0x4   :  { %632 = vmatprep.subr.bf16.mxu0 %v631_v3  ;;  %v42_v12 = vld [vmem:[%s1453_s1 + $0x58] sm:$0xff]  ;;  %v637_v13 = vpack.c.bf16 %v37_v10, %v35_v9  ;;  %v39_v15 = vld [vmem:[%s1453_s1 + $0x40] sm:$0xff]  ;;  %v41_v16 = vld [vmem:[%s1453_s1 + $0x50] sm:$0xff] }
   0x5   :  { %634 = vmatpush1.bf16.msra.mxu0 %v633_v7  ;;  %v639_v14 = vpack.c.bf16 %v42_v12, %v40_v11  ;;  %v44_v17 = vld [vmem:[%s1453_s1 + $0x68] sm:$0xff]  ;;  %v46_v18 = vld [vmem:[%s1453_s1 + $0x78] sm:$0xff]  ;;  %v641_v19 = vpack.c.bf16 %v41_v16, %v39_v15  ;;  %v43_v21 = vld [vmem:[%s1453_s1 + $0x60] sm:$0xff] }
   0x6   :  { %636 = vmatprep.subr.bf16.mxu0 %v635_v8  ;;  %v643_v20 = vpack.c.bf16 %v46_v18, %v44_v17  ;;  %v45_v22 = vld [vmem:[%s1453_s1 + $0x70] sm:$0xff]  ;;  %v48_v23 = vld [vmem:[%s1453_s1 + $0x88] sm:$0xff]  ;;  %v50_v24 = vld [vmem:[%s1453_s1 + $0x98] sm:$0xff] }
   0x7   :  { %v645_v25 = vpack.c.bf16 %v45_v22, %v43_v21  ;;  %v647_v26 = vpack.c.bf16 %v50_v24, %v48_v23  ;;  %v47_v27 = vld [vmem:[%s1453_s1 + $0x80] sm:$0xff]  ;;  %v49_v28 = vld [vmem:[%s1453_s1 + $0x90] sm:$0xff]  ;;  %v52_v29 = vld [vmem:[%s1453_s1 + $0xa8] sm:$0xff] }
   0x8   :  { %v54_v30 = vld [vmem:[%s1453_s1 + $0xb8] sm:$0xff]  ;;  %v649_v31 = vpack.c.bf16 %v49_v28, %v47_v27  ;;  %v51_v33 = vld [vmem:[%s1453_s1 + $0xa0] sm:$0xff]  ;;  %v53_v34 = vld [vmem:[%s1453_s1 + $0xb0] sm:$0xff] }
   0x9   :  { %638 = vmatpush1.bf16.msra.mxu0 %v637_v13  ;;  %v651_v32 = vpack.c.bf16 %v54_v30, %v52_v29  ;;  %v56_v35 = vld [vmem:[%s1453_s1 + $0xc8] sm:$0xff]  ;;  %v58_v36 = vld [vmem:[%s1453_s1 + $0xd8] sm:$0xff]  ;;  %v653_v37 = vpack.c.bf16 %v53_v34, %v51_v33  ;;  %v55_v39 = vld [vmem:[%s1453_s1 + $0xc0] sm:$0xff] }
   0xa   :  { %640 = vmatprep.subr.bf16.mxu0 %v639_v14  ;;  %v655_v38 = vpack.c.bf16 %v58_v36, %v56_v35  ;;  %v57_v40 = vld [vmem:[%s1453_s1 + $0xd0] sm:$0xff]  ;;  %v28_v41 = vld [vmem:[%s1452_s0 + $0x8] sm:$0xff]  ;;  %v62_v43 = vld [vmem:[%s1453_s1 + $0xf8] sm:$0xff] }
   0xb   :  { %v60_v42 = vld [vmem:[%s1453_s1 + $0xe8] sm:$0xff]  ;;  %235 = vmatprep.mubr.f32.mxu0 %v28_v41  ;;  %v657_v44 = vpack.c.bf16 %v57_v40, %v55_v39  ;;  %v59_v46 = vld [vmem:[%s1453_s1 + $0xe0] sm:$0xff]  ;;  %v61_v47 = vld [vmem:[%s1453_s1 + $0xf0] sm:$0xff] }
   0xc   :  { %v659_v45 = vpack.c.bf16 %v62_v43, %v60_v42  ;;  %v64_v48 = vld [vmem:[%s1453_s1 + $0x108] sm:$0xff]  ;;  %v66_v49 = vld [vmem:[%s1453_s1 + $0x118] sm:$0xff]  ;;  %v661_v50 = vpack.c.bf16 %v61_v47, %v59_v46  ;;  %v63_v52 = vld [vmem:[%s1453_s1 + $0x100] sm:$0xff] }
   0xd   :  { %642 = vmatpush1.bf16.msra.mxu0 %v641_v19  ;;  %v663_v51 = vpack.c.bf16 %v66_v49, %v64_v48  ;;  %v65_v53 = vld [vmem:[%s1453_s1 + $0x110] sm:$0xff]  ;;  %v68_v54 = vld [vmem:[%s1453_s1 + $0x128] sm:$0xff]  ;;  %v70_v55 = vld [vmem:[%s1453_s1 + $0x138] sm:$0xff] }
   0xe   :  { %644 = vmatprep.subr.bf16.mxu0 %v643_v20  ;;  %v665_v56 = vpack.c.bf16 %v65_v53, %v63_v52  ;;  %v667_v57 = vpack.c.bf16 %v70_v55, %v68_v54  ;;  %v67_v58 = vld [vmem:[%s1453_s1 + $0x120] sm:$0xff]  ;;  %v69_v59 = vld [vmem:[%s1453_s1 + $0x130] sm:$0xff]  ;;  %v72_v60 = vld [vmem:[%s1453_s1 + $0x148] sm:$0xff] }
   0xf   :  { %v74_v61 = vld [vmem:[%s1453_s1 + $0x158] sm:$0xff]  ;;  %v669_v62 = vpack.c.bf16 %v69_v59, %v67_v58  ;;  %v71_v0 = vld [vmem:[%s1453_s1 + $0x140] sm:$0xff]  ;;  %v73_v1 = vld [vmem:[%s1453_s1 + $0x150] sm:$0xff] }
  0x10   :  { %v671_v63 = vpack.c.bf16 %v74_v61, %v72_v60  ;;  %v76_v2 = vld [vmem:[%s1453_s1 + $0x168] sm:$0xff]  ;;  %v78_v3 = vld [vmem:[%s1453_s1 + $0x178] sm:$0xff]  ;;  %v673_v4 = vpack.c.bf16 %v73_v1, %v71_v0  ;;  %v75_v6 = vld [vmem:[%s1453_s1 + $0x160] sm:$0xff] }
  0x11   :  { %646 = vmatpush1.bf16.msra.mxu0 %v645_v25  ;;  %v675_v5 = vpack.c.bf16 %v78_v3, %v76_v2  ;;  %v77_v7 = vld [vmem:[%s1453_s1 + $0x170] sm:$0xff]  ;;  %v80_v8 = vld [vmem:[%s1453_s1 + $0x188] sm:$0xff]  ;;  %v82_v9 = vld [vmem:[%s1453_s1 + $0x198] sm:$0xff] }
  0x12   :  { %648 = vmatprep.subr.bf16.mxu0 %v647_v26  ;;  %v79_v10 = vld [vmem:[%s1453_s1 + $0x180] sm:$0xff]  ;;  %v81_v11 = vld [vmem:[%s1453_s1 + $0x190] sm:$0xff]  ;;  %v677_v12 = vpack.c.bf16 %v77_v7, %v75_v6  ;;  %v84_v13 = vld [vmem:[%s1453_s1 + $0x1a8] sm:$0xff]  ;;  %v679_v18 = vpack.c.bf16 %v82_v9, %v80_v8 }
  0x13   :  { %v86_v14 = vld [vmem:[%s1453_s1 + $0x1b8] sm:$0xff]  ;;  %v335_v15 = vld [vmem:[%s1455_s3 + $0x80] sm:$0xff]  ;;  %v336_v16 = vld [vmem:[%s1455_s3 + $0x88] sm:$0xff]  ;;  %v681_v29 = vpack.c.bf16 %v81_v11, %v79_v10 }
  0x14   :  { %v319_v17 = vld [vmem:[%s1455_s3] sm:$0xff]  ;;  %v759_v19 = vpack.c.bf16 %v336_v16, %v335_v15  ;;  %v320_v20 = vld [vmem:[%s1455_s3 + $0x8] sm:$0xff]  ;;  %v337_v21 = vld [vmem:[%s1455_s3 + $0x90] sm:$0xff]  ;;  %v683_v33 = vpack.c.bf16 %v86_v14, %v84_v13 }
  0x15   :  { %650 = vmatpush1.bf16.msra.mxu0 %v649_v31  ;;  %v338_v22 = vld [vmem:[%s1455_s3 + $0x98] sm:$0xff]  ;;  %v761_v23 = vpack.c.bf16 %v320_v20, %v319_v17  ;;  %v321_v25 = vld [vmem:[%s1455_s3 + $0x10] sm:$0xff]  ;;  %v339_v27 = vld [vmem:[%s1455_s3 + $0xa0] sm:$0xff] }
  0x16   :  { %652 = vmatprep.subr.bf16.mxu0 %v651_v32  ;;  %v763_v24 = vpack.c.bf16 %v338_v22, %v337_v21  ;;  %v322_v26 = vld [vmem:[%s1455_s3 + $0x18] sm:$0xff]  ;;  %760 = vmatprep.subr.bf16.mxu1 %v759_v19  ;;  %v340_v28 = vld [vmem:[%s1455_s3 + $0xa8] sm:$0xff]  ;;  %v83_v30 = vld [vmem:[%s1453_s1 + $0x1a0] sm:$0xff] }
  0x17   :  { %v85_v31 = vld [vmem:[%s1453_s1 + $0x1b0] sm:$0xff]  ;;  %762 = vmatpush3.bf16.msra.mxu1 %v761_v23  ;;  %v765_v32 = vpack.c.bf16 %v322_v26, %v321_v25  ;;  %v88_v34 = vld [vmem:[%s1453_s1 + $0x1c8] sm:$0xff]  ;;  %v767_v35 = vpack.c.bf16 %v340_v28, %v339_v27  ;;  %v323_v36 = vld [vmem:[%s1455_s3 + $0x20] sm:$0xff] }
  0x18   :  { %764 = vmatprep.subr.bf16.mxu1 %v763_v24  ;;  %v341_v39 = vld [vmem:[%s1455_s3 + $0xb0] sm:$0xff]  ;;  %v342_v40 = vld [vmem:[%s1455_s3 + $0xb8] sm:$0xff]  ;;  %v685_v41 = vpack.c.bf16 %v85_v31, %v83_v30  ;;  %v87_v42 = vld [vmem:[%s1453_s1 + $0x1c0] sm:$0xff] }
  0x19   :  { %654 = vmatpush1.bf16.msra.mxu0 %v653_v37  ;;  %v324_v37 = vld [vmem:[%s1455_s3 + $0x28] sm:$0xff]  ;;  %v89_v43 = vld [vmem:[%s1453_s1 + $0x1d0] sm:$0xff] }
  0x1a   :  { %656 = vmatprep.subr.bf16.mxu0 %v655_v38  ;;  %v90_v38 = vld [vmem:[%s1453_s1 + $0x1d8] sm:$0xff] }
  0x1b   :  { %766 = vmatpush3.bf16.msra.mxu1 %v765_v32 }
  0x1d   :  { %658 = vmatpush1.bf16.msra.mxu0 %v657_v44  ;;  %v769_v44 = vpack.c.bf16 %v324_v37, %v323_v36 }
  0x1e   :  { %660 = vmatprep.subr.bf16.mxu0 %v659_v45 }
  0x21   :  { %662 = vmatpush1.bf16.msra.mxu0 %v661_v50 }
  0x22   :  { %664 = vmatprep.subr.bf16.mxu0 %v663_v51 }
  0x25   :  { %666 = vmatpush1.bf16.msra.mxu0 %v665_v56 }
  0x26   :  { %668 = vmatprep.subr.bf16.mxu0 %v667_v57 }
  0x29   :  { %670 = vmatpush1.bf16.msra.mxu0 %v669_v62 }
  0x2a   :  { %672 = vmatprep.subr.bf16.mxu0 %v671_v63 }
  0x2d   :  { %674 = vmatpush1.bf16.msra.mxu0 %v673_v4 }
  0x2e   :  { %676 = vmatprep.subr.bf16.mxu0 %v675_v5 }
  0x31   :  { %678 = vmatpush1.bf16.msra.mxu0 %v677_v12 }
  0x32   :  { %680 = vmatprep.subr.bf16.mxu0 %v679_v18 }
  0x35   :  { %682 = vmatpush1.bf16.msra.mxu0 %v681_v29 }
  0x36   :  { %12 = vsyncpa [#allocation3], 0  ;;  %684 = vmatprep.subr.bf16.mxu0 %v683_v33  ;;  %v687_v45 = vpack.c.bf16 %v90_v38, %v88_v34  ;;  %v92_v46 = vld [vmem:[%s1453_s1 + $0x1e8] sm:$0xff]  ;;  %768 = vmatprep.subr.bf16.mxu1 %v767_v35  ;;  %v771_v47 = vpack.c.bf16 %v342_v40, %v341_v39  ;;  %v325_v48 = vld [vmem:[%s1455_s3 + $0x30] sm:$0xff]  ;;  %v689_v53 = vpack.c.bf16 %v89_v43, %v87_v42  ;;  %vm848_vm2 = vmmov 0  }
  0x37   :  { %v326_v49 = vld [vmem:[%s1455_s3 + $0x38] sm:$0xff]  ;;  %v343_v51 = vld [vmem:[%s1455_s3 + $0xc0] sm:$0xff]  ;;  %v344_v52 = vld [vmem:[%s1455_s3 + $0xc8] sm:$0xff]  ;;  %770 = vmatpush3.bf16.msra.mxu1 %v769_v44 }
  0x38   :  { %v94_v50 = vld [vmem:[%s1453_s1 + $0x1f8] sm:$0xff]  ;;  %v91_v54 = vld [vmem:[%s1453_s1 + $0x1e0] sm:$0xff]  ;;  %v93_v55 = vld [vmem:[%s1453_s1 + $0x1f0] sm:$0xff]  ;;  %v773_v56 = vpack.c.bf16 %v326_v49, %v325_v48  ;;  %772 = vmatprep.subr.bf16.mxu1 %v771_v47  ;;  %v775_v59 = vpack.c.bf16 %v344_v52, %v343_v51 }
  0x39   :  { %686 = vmatpush1.bf16.msra.mxu0 %v685_v41  ;;  %v691_v57 = vpack.c.bf16 %v94_v50, %v92_v46  ;;  %v96_v58 = vld [vmem:[%s1453_s1 + $0x208] sm:$0xff]  ;;  %v327_v60 = vld [vmem:[%s1455_s3 + $0x40] sm:$0xff]  ;;  %v98_v62 = vld [vmem:[%s1453_s1 + $0x218] sm:$0xff]  ;;  %v693_v1 = vpack.c.bf16 %v93_v55, %v91_v54 }
  0x3a   :  { %688 = vmatprep.subr.bf16.mxu0 %v687_v45  ;;  %v328_v61 = vld [vmem:[%s1455_s3 + $0x48] sm:$0xff]  ;;  %v345_v63 = vld [vmem:[%s1455_s3 + $0xd0] sm:$0xff]  ;;  %v346_v0 = vld [vmem:[%s1455_s3 + $0xd8] sm:$0xff]  ;;  %v695_v3 = vpack.c.bf16 %v98_v62, %v96_v58 }
  0x3b   :  { %774 = vmatpush3.bf16.msra.mxu1 %v773_v56  ;;  %v777_v2 = vpack.c.bf16 %v328_v61, %v327_v60  ;;  %v95_v4 = vld [vmem:[%s1453_s1 + $0x200] sm:$0xff]  ;;  %v97_v5 = vld [vmem:[%s1453_s1 + $0x210] sm:$0xff]  ;;  %v100_v6 = vld [vmem:[%s1453_s1 + $0x228] sm:$0xff]  ;;  %v779_v7 = vpack.c.bf16 %v346_v0, %v345_v63 }
  0x3c   :  { %776 = vmatprep.subr.bf16.mxu1 %v775_v59  ;;  %v102_v8 = vld [vmem:[%s1453_s1 + $0x238] sm:$0xff]  ;;  %v329_v9 = vld [vmem:[%s1455_s3 + $0x50] sm:$0xff]  ;;  %v27_v11 = vld [vmem:[%s1452_s0] sm:$0xff]  ;;  %v697_v12 = vpack.c.bf16 %v97_v5, %v95_v4 }
  0x3d   :  { %690 = vmatpush1.bf16.msra.mxu0 %v689_v53  ;;  %v330_v10 = vld [vmem:[%s1455_s3 + $0x58] sm:$0xff]  ;;  %v699_v13 = vpack.c.bf16 %v102_v8, %v100_v6  ;;  %v99_v14 = vld [vmem:[%s1453_s1 + $0x220] sm:$0xff]  ;;  %v101_v15 = vld [vmem:[%s1453_s1 + $0x230] sm:$0xff] }
  0x3e   :  { %692 = vmatprep.subr.bf16.mxu0 %v691_v57  ;;  %v30_v16 = vld [vmem:[%s1452_s0 + $0x18] sm:$0xff]  ;;  %v781_v17 = vpack.c.bf16 %v330_v10, %v329_v9  ;;  %v104_v18 = vld [vmem:[%s1453_s1 + $0x248] sm:$0xff]  ;;  %v701_v20 = vpack.c.bf16 %v101_v15, %v99_v14  ;;  %v103_v22 = vld [vmem:[%s1453_s1 + $0x240] sm:$0xff] }
  0x3f   :  { %778 = vmatpush3.bf16.msra.mxu1 %v777_v2  ;;  %v106_v19 = vld [vmem:[%s1453_s1 + $0x258] sm:$0xff]  ;;  %v105_v23 = vld [vmem:[%s1453_s1 + $0x250] sm:$0xff]  ;;  %v108_v24 = vld [vmem:[%s1453_s1 + $0x268] sm:$0xff] }
  0x40   :  { %780 = vmatprep.subr.bf16.mxu1 %v779_v7  ;;  %v703_v21 = vpack.c.bf16 %v106_v19, %v104_v18  ;;  %v110_v25 = vld [vmem:[%s1453_s1 + $0x278] sm:$0xff]  ;;  %v705_v26 = vpack.c.bf16 %v105_v23, %v103_v22  ;;  %v107_v28 = vld [vmem:[%s1453_s1 + $0x260] sm:$0xff]  ;;  %v109_v29 = vld [vmem:[%s1453_s1 + $0x270] sm:$0xff] }
  0x41   :  { %694 = vmatpush1.bf16.msra.mxu0 %v693_v1  ;;  %v707_v27 = vpack.c.bf16 %v110_v25, %v108_v24  ;;  %v112_v30 = vld [vmem:[%s1453_s1 + $0x288] sm:$0xff]  ;;  %v114_v31 = vld [vmem:[%s1453_s1 + $0x298] sm:$0xff]  ;;  %v709_v32 = vpack.c.bf16 %v109_v29, %v107_v28  ;;  %v111_v34 = vld [vmem:[%s1453_s1 + $0x280] sm:$0xff] }
  0x42   :  { %696 = vmatprep.subr.bf16.mxu0 %v695_v3  ;;  %v711_v33 = vpack.c.bf16 %v114_v31, %v112_v30  ;;  %v113_v35 = vld [vmem:[%s1453_s1 + $0x290] sm:$0xff]  ;;  %v116_v36 = vld [vmem:[%s1453_s1 + $0x2a8] sm:$0xff]  ;;  %v118_v37 = vld [vmem:[%s1453_s1 + $0x2b8] sm:$0xff] }
  0x43   :  { %782 = vmatpush3.bf16.msra.mxu1 %v781_v17  ;;  %v713_v38 = vpack.c.bf16 %v113_v35, %v111_v34  ;;  %v715_v39 = vpack.c.bf16 %v118_v37, %v116_v36  ;;  %v115_v40 = vld [vmem:[%s1453_s1 + $0x2a0] sm:$0xff]  ;;  %v117_v41 = vld [vmem:[%s1453_s1 + $0x2b0] sm:$0xff]  ;;  %v120_v42 = vld [vmem:[%s1453_s1 + $0x2c8] sm:$0xff] }
  0x44   :  { %236 = vmatmul.mubr.f32.vlgmr.msra.gmra.mrb[0].mxu0 %v27_v11  ;;  %v122_v43 = vld [vmem:[%s1453_s1 + $0x2d8] sm:$0xff]  ;;  %v717_v44 = vpack.c.bf16 %v117_v41, %v115_v40  ;;  %v119_v46 = vld [vmem:[%s1453_s1 + $0x2c0] sm:$0xff]  ;;  %v121_v47 = vld [vmem:[%s1453_s1 + $0x2d0] sm:$0xff] }
  0x45   :  { %698 = vmatpush1.bf16.msra.mxu0 %v697_v12  ;;  %306 = vmatprep.mubr.f32.mxu0 %v30_v16  ;;  %v719_v45 = vpack.c.bf16 %v122_v43, %v120_v42  ;;  %v124_v48 = vld [vmem:[%s1453_s1 + $0x2e8] sm:$0xff]  ;;  %v126_v49 = vld [vmem:[%s1453_s1 + $0x2f8] sm:$0xff]  ;;  %v721_v50 = vpack.c.bf16 %v121_v47, %v119_v46  ;;  %v123_v52 = vld [vmem:[%s1453_s1 + $0x2e0] sm:$0xff] }
  0x46   :  { %700 = vmatprep.subr.bf16.mxu0 %v699_v13  ;;  %v723_v51 = vpack.c.bf16 %v126_v49, %v124_v48  ;;  %v125_v53 = vld [vmem:[%s1453_s1 + $0x2f0] sm:$0xff]  ;;  %v128_v54 = vld [vmem:[%s1453_s1 + $0x308] sm:$0xff]  ;;  %v130_v55 = vld [vmem:[%s1453_s1 + $0x318] sm:$0xff] }
  0x47   :  { %v725_v56 = vpack.c.bf16 %v125_v53, %v123_v52  ;;  %v727_v57 = vpack.c.bf16 %v130_v55, %v128_v54  ;;  %v127_v58 = vld [vmem:[%s1453_s1 + $0x300] sm:$0xff]  ;;  %v129_v59 = vld [vmem:[%s1453_s1 + $0x310] sm:$0xff]  ;;  %v132_v60 = vld [vmem:[%s1453_s1 + $0x328] sm:$0xff]  ;;  %v847_v52 = vmov 0.0|0.0   ;;  %v161_v53 = vlaneseq }
  0x48   :  { %v134_v61 = vld [vmem:[%s1453_s1 + $0x338] sm:$0xff]  ;;  %v729_v62 = vpack.c.bf16 %v129_v59, %v127_v58  ;;  %v131_v0 = vld [vmem:[%s1453_s1 + $0x320] sm:$0xff]  ;;  %v133_v1 = vld [vmem:[%s1453_s1 + $0x330] sm:$0xff] }
  0x49   :  { %702 = vmatpush1.bf16.msra.mxu0 %v701_v20  ;;  %v731_v63 = vpack.c.bf16 %v134_v61, %v132_v60  ;;  %v136_v2 = vld [vmem:[%s1453_s1 + $0x348] sm:$0xff]  ;;  %v138_v3 = vld [vmem:[%s1453_s1 + $0x358] sm:$0xff]  ;;  %v733_v4 = vpack.c.bf16 %v133_v1, %v131_v0  ;;  %v135_v6 = vld [vmem:[%s1453_s1 + $0x340] sm:$0xff]  ;;  %v162_v54 = vshrl.u32 %v161_v53, 7 }
  0x4a   :  { %704 = vmatprep.subr.bf16.mxu0 %v703_v21  ;;  %v735_v5 = vpack.c.bf16 %v138_v3, %v136_v2  ;;  %v137_v7 = vld [vmem:[%s1453_s1 + $0x350] sm:$0xff]  ;;  %v140_v8 = vld [vmem:[%s1453_s1 + $0x368] sm:$0xff]  ;;  %v142_v9 = vld [vmem:[%s1453_s1 + $0x378] sm:$0xff] }
  0x4b   :  { %v737_v10 = vpack.c.bf16 %v137_v7, %v135_v6  ;;  %v739_v11 = vpack.c.bf16 %v142_v9, %v140_v8  ;;  %v139_v12 = vld [vmem:[%s1453_s1 + $0x360] sm:$0xff]  ;;  %v141_v13 = vld [vmem:[%s1453_s1 + $0x370] sm:$0xff]  ;;  %v144_v14 = vld [vmem:[%s1453_s1 + $0x388] sm:$0xff]  ;;  %v163_v55 = vsub.s32 0, %v162_v54 }
  0x4c   :  { %v146_v15 = vld [vmem:[%s1453_s1 + $0x398] sm:$0xff]  ;;  %v741_v16 = vpack.c.bf16 %v141_v13, %v139_v12  ;;  %v143_v18 = vld [vmem:[%s1453_s1 + $0x380] sm:$0xff]  ;;  %v145_v19 = vld [vmem:[%s1453_s1 + $0x390] sm:$0xff] }
  0x4d   :  { %706 = vmatpush1.bf16.msra.mxu0 %v705_v26  ;;  %v743_v17 = vpack.c.bf16 %v146_v15, %v144_v14  ;;  %v148_v20 = vld [vmem:[%s1453_s1 + $0x3a8] sm:$0xff]  ;;  %v150_v21 = vld [vmem:[%s1453_s1 + $0x3b8] sm:$0xff]  ;;  %v745_v22 = vpack.c.bf16 %v145_v19, %v143_v18  ;;  %v147_v24 = vld [vmem:[%s1453_s1 + $0x3a0] sm:$0xff] }
  0x4e   :  { %708 = vmatprep.subr.bf16.mxu0 %v707_v27  ;;  %v747_v23 = vpack.c.bf16 %v150_v21, %v148_v20  ;;  %v149_v25 = vld [vmem:[%s1453_s1 + $0x3b0] sm:$0xff]  ;;  %v152_v26 = vld [vmem:[%s1453_s1 + $0x3c8] sm:$0xff]  ;;  %v154_v27 = vld [vmem:[%s1453_s1 + $0x3d8] sm:$0xff] }
  0x4f   :  { %v749_v28 = vpack.c.bf16 %v149_v25, %v147_v24  ;;  %v751_v29 = vpack.c.bf16 %v154_v27, %v152_v26  ;;  %v151_v30 = vld [vmem:[%s1453_s1 + $0x3c0] sm:$0xff]  ;;  %v153_v31 = vld [vmem:[%s1453_s1 + $0x3d0] sm:$0xff]  ;;  %v348_v41 = vld [vmem:[%s1455_s3 + $0xe8] sm:$0xff] }
  0x50   :  { %v753_v34 = vpack.c.bf16 %v153_v31, %v151_v30  ;;  %v155_v36 = vld [vmem:[%s1453_s1 + $0x3e0] sm:$0xff]  ;;  %v157_v37 = vld [vmem:[%s1453_s1 + $0x3f0] sm:$0xff]  ;;  %v350_v47 = vld [vmem:[%s1455_s3 + $0xf8] sm:$0xff] }
  0x51   :  { %710 = vmatpush1.bf16.msra.mxu0 %v709_v32  ;;  %v156_v32 = vld [vmem:[%s1453_s1 + $0x3e8] sm:$0xff]  ;;  %v347_v40 = vld [vmem:[%s1455_s3 + $0xe0] sm:$0xff]  ;;  %v349_v46 = vld [vmem:[%s1455_s3 + $0xf0] sm:$0xff] }
  0x52   :  { %712 = vmatprep.subr.bf16.mxu0 %v711_v33  ;;  %v158_v33 = vld [vmem:[%s1453_s1 + $0x3f8] sm:$0xff]  ;;  %v783_v42 = vpack.c.bf16 %v348_v41, %v347_v40  ;;  %v331_v43 = vld [vmem:[%s1455_s3 + $0x60] sm:$0xff]  ;;  %v787_v48 = vpack.c.bf16 %v350_v47, %v349_v46  ;;  %v333_v49 = vld [vmem:[%s1455_s3 + $0x70] sm:$0xff] }
  0x53   :  { %v755_v35 = vpack.c.bf16 %v158_v33, %v156_v32  ;;  %v431_v0 = vld [vmem:[%s1457_s5] sm:$0xff]  ;;  %v432_v1 = vld [vmem:[%s1457_s5 + $0x8] sm:$0xff]  ;;  %v433_v6 = vld [vmem:[%s1457_s5 + $0x10] sm:$0xff] }
  0x54   :  { %784 = vmatprep.subr.bf16.mxu1 %v783_v42  ;;  %v434_v7 = vld [vmem:[%s1457_s5 + $0x18] sm:$0xff]  ;;  %v437_v13 = vld [vmem:[%s1457_s5 + $0x30] sm:$0xff]  ;;  %v542_v30 = vld [vmem:[%s1456_s4] ss:$0 sm:$0xff] }
  0x55   :  { %714 = vmatpush1.bf16.msra.mxu0 %v713_v38  ;;  %v757_v38 = vpack.c.bf16 %v157_v37, %v155_v36  ;;  %v795_v9 = vpack.c.bf16 %v434_v7, %v433_v6  ;;  %v438_v14 = vld [vmem:[%s1457_s5 + $0x38] sm:$0xff]  ;;  %v441_v19 = vld [vmem:[%s1457_s5 + $0x50] sm:$0xff]  ;;  %v543_v36 = vld [vmem:[%s1458_s6] ss:$0 sm:$0xff] }
  0x56   :  { %716 = vmatprep.subr.bf16.mxu0 %v715_v39  ;;  %v29_v39 = vld [vmem:[%s1452_s0 + $0x10] sm:$0xff]  ;;  %v801_v15 = vpack.c.bf16 %v438_v14, %v437_v13  ;;  %v442_v20 = vld [vmem:[%s1457_s5 + $0x58] sm:$0xff] }
  0x57   :  { %v807_v21 = vpack.c.bf16 %v442_v20, %v441_v19  ;;  %v445_v25 = vld [vmem:[%s1457_s5 + $0x70] sm:$0xff]  ;;  %v446_v26 = vld [vmem:[%s1457_s5 + $0x78] sm:$0xff] }
  0x58   :  { %v813_v27 = vpack.c.bf16 %v446_v26, %v445_v25 }
  0x59   :  { %718 = vmatpush1.bf16.msra.mxu0 %v717_v44  ;;  %v332_v44 = vld [vmem:[%s1455_s3 + $0x68] sm:$0xff] }
  0x5a   :  { %720 = vmatprep.subr.bf16.mxu0 %v719_v45  ;;  %v785_v45 = vpack.c.bf16 %v332_v44, %v331_v43 }
  0x5c   :  { %786 = vmatpush3.bf16.msra.mxu1 %v785_v45 }
  0x5d   :  { %722 = vmatpush1.bf16.msra.mxu0 %v721_v50  ;;  %v334_v50 = vld [vmem:[%s1455_s3 + $0x78] sm:$0xff]  ;;  %788 = vmatprep.subr.bf16.mxu1 %v787_v48 }
  0x5e   :  { %724 = vmatprep.subr.bf16.mxu0 %v723_v51  ;;  %v789_v51 = vpack.c.bf16 %v334_v50, %v333_v49 }
  0x60   :  { %790 = vmatpush3.bf16.msra.mxu1 %v789_v51 }
  0x61   :  { %726 = vmatpush1.bf16.msra.mxu0 %v725_v56  ;;  %791 = vmatprep.subr.bf16.mxu1 %v847_v52  ;;  %v159_v56 = vld [vmem:[%s1454_s2] sm:$0x3] }
  0x62   :  { %728 = vmatprep.subr.bf16.mxu0 %v727_v57  ;;  %v167_v57 = vsub.s32 1, %v162_v54  ;;  %v164_v58 = vrot.slane %v159_v56, %v163_v55 }
  0x64   :  { %v168_v59 = vrot.slane %v159_v56, %v167_v57 }
  0x65   :  { %730 = vmatpush1.bf16.msra.mxu0 %v729_v62 }
  0x66   :  { %732 = vmatprep.subr.bf16.mxu0 %v731_v63 }
  0x69   :  { %734 = vmatpush1.bf16.msra.mxu0 %v733_v4  ;;  %v792_v4 = vpack.c.bf16 %v432_v1, %v431_v0 }
  0x6a   :  { %736 = vmatprep.subr.bf16.mxu0 %v735_v5 }
  0x6d   :  { %738 = vmatpush1.bf16.msra.mxu0 %v737_v10  ;;  %v435_v10 = vld [vmem:[%s1457_s5 + $0x20] sm:$0xff] }
  0x6e   :  { %740 = vmatprep.subr.bf16.mxu0 %v739_v11  ;;  %v436_v11 = vld [vmem:[%s1457_s5 + $0x28] sm:$0xff] }
  0x6f   :  { %v798_v12 = vpack.c.bf16 %v436_v11, %v435_v10 }
  0x71   :  { %742 = vmatpush1.bf16.msra.mxu0 %v741_v16  ;;  %v439_v16 = vld [vmem:[%s1457_s5 + $0x40] sm:$0xff] }
  0x72   :  { %744 = vmatprep.subr.bf16.mxu0 %v743_v17  ;;  %v440_v17 = vld [vmem:[%s1457_s5 + $0x48] sm:$0xff] }
  0x73   :  { %v804_v18 = vpack.c.bf16 %v440_v17, %v439_v16 }
  0x75   :  { %746 = vmatpush1.bf16.msra.mxu0 %v745_v22  ;;  %v443_v22 = vld [vmem:[%s1457_s5 + $0x60] sm:$0xff] }
  0x76   :  { %748 = vmatprep.subr.bf16.mxu0 %v747_v23  ;;  %v444_v23 = vld [vmem:[%s1457_s5 + $0x68] sm:$0xff]  ;;  %s850_s5 = smov [#allocation2]  }
  0x77   :  { %v810_v24 = vpack.c.bf16 %v444_v23, %v443_v22  ;;  %s534_s14 = sshll.u32 %s850_s5, 4  ;;  %s535_s14 = int_to_ptr.vmem [resolvable:$true] %s534_s14 }
  0x78   :  { %s823_s4 = scalar_lea.vmem %s535_s14, 128  ;;  %p828_p1 = scmp.lt.s32.totalorder %s535_s14, %s535_s14 }
  0x79   :  { %750 = vmatpush1.bf16.msra.mxu0 %v749_v28  ;;  %v849_v28 = vmov 0.0   ;;  %p824_p0 = scmp.ne.s32.totalorder %s535_s14, %s823_s4  ;;  %p829_p2 = scmp.lt.s32.totalorder %s823_s4, %s823_s4 }
  0x7a   :  { %752 = vmatprep.subr.bf16.mxu0 %v751_v29 }
  0x7b   :  { %p830_p3 = por %p829_p2, %p828_p1 }
  0x7d   :  { %754 = vmatpush1.bf16.msra.mxu0 %v753_v34  ;;  %p831_p4 = pnand %p830_p3, %p824_p0 }
  0x7e   :  { %756 = vmatprep.subr.bf16.mxu0 %v755_v35 }
  0x81   :  { %758 = vmatpush1.bf16.msra.mxu0 %v757_v38 }
  0x84   :  { %307 = vmatmul.mubr.f32.vlgmr.msra.gmra.mrb[0].mxu0 %v29_v39 }
 0x157   :  { %v308_v60 = vpop.f32.mrb[0].mxu0 }
 0x158   :  { %v815_v61 = vadd.f32 %v308_v60, %v164_v58  ;;  %v310_v62 = vpop.f32.mrb[1].mxu0 }
 0x159   :  { %v816_v63 = vadd.f32 %v310_v62, %v168_v59 }
 0x15a   :  { %v315_v2 = vmul.f32 0.2, %v815_v61  ;;  %vm313_vm1 = vcmp.gt.f32.partialorder %v815_v61, 0.0 }
 0x15b   :  { %vm314_vm0 = vcmp.gt.f32.partialorder %v816_v63, 0.0  ;;  %v316_v3 = vmul.f32 0.2, %v816_v63 }
 0x15c   :  { %v317_v8 = vsel %vm313_vm1, %v815_v61, %v315_v2 }
 0x15d   :  { %v318_v5 = vsel %vm314_vm0, %v816_v63, %v316_v3 }
 0x15e   :  { %422 = vmatprep.mubr.f32.mxu1 %v318_v5 }
 0x15f   :  { %423 = vmatmul.mubr.f32.vlgmr.msra.gmra.mrb[0].mxu1 %v317_v8 }
 0x160   :  { %793 = vmatpush3.bf16.msra.mxu1 %v792_v4  ;;  %628 = vmatprep.mubr.msk.f32.mxu1 %vm848_vm2, %v849_v28 }
 0x161   :  { %794 = vmatprep.subr.bf16.mxu1 %v847_v52 }
 0x164   :  { %796 = vmatpush3.bf16.msra.mxu1 %v795_v9 }
 0x165   :  { %797 = vmatprep.subr.bf16.mxu1 %v847_v52 }
 0x168   :  { %799 = vmatpush3.bf16.msra.mxu1 %v798_v12 }
 0x169   :  { %800 = vmatprep.subr.bf16.mxu1 %v847_v52 }
 0x16c   :  { %802 = vmatpush3.bf16.msra.mxu1 %v801_v15 }
 0x16d   :  { %803 = vmatprep.subr.bf16.mxu1 %v847_v52 }
 0x170   :  { %805 = vmatpush3.bf16.msra.mxu1 %v804_v18 }
 0x171   :  { %806 = vmatprep.subr.bf16.mxu1 %v847_v52 }
 0x174   :  { %808 = vmatpush3.bf16.msra.mxu1 %v807_v21 }
 0x175   :  { %809 = vmatprep.subr.bf16.mxu1 %v847_v52 }
 0x178   :  { %811 = vmatpush3.bf16.msra.mxu1 %v810_v24 }
 0x179   :  { %812 = vmatprep.subr.bf16.mxu1 %v847_v52 }
 0x17c   :  { %814 = vmatpush3.bf16.msra.mxu1 %v813_v27 }
 0x232   :  { %v576_v29 = vpop.f32.mrb[0].mxu1 }
 0x233   :  { %v577_v31 = vpop.f32.mrb[1].mxu1 }
 0x234   :  { %v578_v32 = vadd.f32 %v577_v31, %v576_v29 }
 0x236   :  { %v425_v33 = vadd.f32 %v578_v32, %v542_v30 }
 0x238   :  { %v429_v34 = vmul.f32 0.2, %v425_v33  ;;  %vm428_vm3 = vcmp.gt.f32.partialorder %v425_v33, 0.0 }
 0x23a   :  { %v430_v35 = vsel %vm428_vm3, %v425_v33, %v429_v34 }
 0x23b   :  { %629 = vmatmul.mubr.f32.vlgmr.msra.gmra.mrb[2].mxu1 %v430_v35 }
 0x30e   :  { %v520_v37 = vpop.f32.mrb[2].mxu1 }
 0x30f   :  { %v521_v38 = vadd.f32 %v543_v36, %v520_v37  ;;  %v630_v39 = vpop.f32.mrb[3].mxu1 }
 0x311   :  { %v525_v40 = vmul.f32 0.2, %v521_v38  ;;  %vm524_vm4 = vcmp.gt.f32.partialorder %v521_v38, 0.0 }
 0x313   :  { %v526_v41 = vsel %vm524_vm4, %v521_v38, %v525_v40 }
 0x314   :  { %527 = vst [vmem:[#allocation2] sm:$0xff] %v526_v41 }
 0x315   :  { %834 = shalt.err (!%p831_p4)
}
 0x316   :  { %s835_s6 = scalar_lea.hbm %s1459_s7, 128 }
 0x317   :  { %p836_p5 = scmp.ne.s32.totalorder %s1459_s7, %s835_s6  ;;  %p839_p6 = scmp.lt.u32.totalorder %s835_s6, %s1459_s7 }
 0x319   :  { %p841_p7 = pnand %p839_p6, %p836_p5 }
 0x31b   :  { %844 = shalt.err (!%p841_p7)
}
 0x31c   :  { %537 = dma.vmem_to_hbm [thread:$0]  %s535_s14, 128, %s1459_s7, [#allocation3]  }
 0x31d   :  { %845 = dma.done.wait [#allocation3], 128  }
 0x31e   :  { %846 = vsyncadd [#allocation3], 4294967168 }
 0x31f   :  { %541 = vsyncpa [#allocation3], 1 }

// kernel: audio2exp_forward.2
= control target key start
LH: loop header
LB: loop body
LE: loop exit
PB: predicated region body
PF: predicated region fallthrough
CT: control target
= control target key end

     0   :  { %9 = vsyncpa [#allocation6], 0  ;;  %s9193_s0 = inlined_call_operand.vmem [shape: f32[8,512], index: 0, kind: input, shape index: {}]   ;;  %s9194_s1 = inlined_call_operand.hbm [shape: bf16[6,2,512,1024], index: 1, kind: input, shape index: {}]   ;;  %s9195_s2 = inlined_call_operand.hbm [shape: bf16[6,2,256,1024], index: 2, kind: input, shape index: {}]   ;;  %s9196_s3 = inlined_call_operand.hbm [shape: f32[6,2,1,1024], index: 3, kind: input, shape index: {}]   ;;  %s9197_s4 = inlined_call_operand.vmem [shape: f32[8,512], index: 4, kind: output, shape index: {}]  }
   0x1   :  { %11 = vsyncpa [#allocation6 + $0x1], 0 }
   0x2   :  { %12 = vsyncpa [#allocation8], 0 }
   0x3   :  { %14 = vsyncpa [#allocation8 + $0x1], 0  ;;  %s7992_s15 = smov 0   ;;  %s7994_s16 = smov 0  }
   0x4   :  { %s7996_s17 = smov 0   ;;  %s7998_s18 = smov 0  }
   0x5 LB: > { %s8011_s19 = sadd.s32 4294967295, %s7933_s18   ;;  %s8014_s20 = sadd.s32 1, %s7933_s18   ;;  %s7933_s18 = sphi %s7998_s18, %s9212_s18   ;;  %s7929_s17 = sphi %s7996_s17, %s9211_s17   ;;  %s7925_s16 = sphi %s7994_s16, %s9210_s16   ;;  %s7921_s15 = sphi %s7992_s15, %s9209_s15  }
   0x6   : > { %s45_s21 = ssub.s32 %s7933_s18, %s8014_s20  ;;  %s48_s22 = sadd.s32 1, %s7929_s17 }
   0x7   : > { %p46_p0 = scmp.eq.s32.totalorder %s45_s21, 0  ;;  %p55_p1 = scmp.ne.s32.totalorder %s7929_s17, %s7925_s16 }
   0x8   : > { %p56_p2 = scmp.eq.s32.totalorder %s7933_s18, 0  ;;  %p61_p3 = scmp.ne.s32.totalorder %s7925_s16, %s7921_s15 }
   0x9   : > { %s8024_s23 = scalar_select %p46_p0, %s7929_s17, %s48_s22  }
   0xa   : > { %p57_p4 = por %p56_p2, %p55_p1  ;;  %p62_p5 = scmp.eq.s32.totalorder %s8011_s19, 0 }
   0xb   : > { %p7663_p6 = scmp.lt.s32.totalorder %s7933_s18, 6  ;;  %s8033_s25 = sand.u32 1, %s7929_s17  }
   0xc   : > { %p8028_p7 = por %p62_p5, %p61_p3  ;;  %s182_s27 = sand.u32 1, %s7933_s18  }
   0xd   : > { %p8035_p8 = pnand %p7663_p6, %p57_p4  ;;  %s6409_s28 = sshll.u32 %s8033_s25, 11 }
   0xe   : > { %s9199_s24 = scalar_select %p8028_p7, 1, 0 }
   0xf   : > { %s7593_s29 = sshll.u32 %s7933_s18, 15  ;;  %s186_s7 = scalar_lea.vmem [#allocation7], %s6409_s28 }
  0x10   : > { %s8045_s6 = scalar_lea.hbm %s9195_s2, %s7593_s29  ;;  %s193_s8 = sshll.u32 %s186_s7, 4  ;;  %s8048_s8 = int_to_ptr.vmem [resolvable:$true] %s193_s8 }
  0x11   : > { %s8051_s9 = scalar_lea.sflag [#allocation8], %s182_s27  ;;  %s7781_s10 = scalar_lea.hbm %s8045_s6, 32768 }
  0x12   : > { %p7782_p11 = scmp.ne.s32.totalorder %s8045_s6, %s7781_s10  ;;  %p8057_p12 = pneg %p8035_p8 }
  0x13   : > { %s7786_s14 = scalar_lea.hbm %s9195_s2, 196608  ;;  %p7787_p1 = scmp.lt.u32.totalorder %s8045_s6, %s9195_s2 }
  0x14   : > { %p7784_p13 = pnand %p8057_p12, %p7782_p11  ;;  %p7788_p2 = scmp.lt.u32.totalorder %s7786_s14, %s7781_s10 }
  0x15   : > { %p7790_p4 = scmp.lt.u32.totalorder %s7781_s10, %s8045_s6 }
  0x16   : > { %p7785_p0 = pneg %p7784_p13  ;;  %p7789_p3 = por %p7788_p2, %p7787_p1 }
  0x18   : > { %p7791_p5 = por %p7790_p4, %p7789_p3 }
  0x1a   : > { %p7792_p6 = pnand %p7791_p5, %p7785_p0 }
  0x1c   : > { %7795 = shalt.err (!%p7792_p6)
}
  0x1d   : > { %s7796_s22 = scalar_lea.vmem %s8048_s8, 32768  ;;  %s7959_s27 = smov [#allocation7]  }
  0x1e   : > { %p7797_p11 = scmp.ne.s32.totalorder %s8048_s8, %s7796_s22  ;;  %s7801_s28 = sshll.u32 %s7959_s27, 4  ;;  %s7802_s28 = int_to_ptr.vmem [resolvable:$false] %s7801_s28 }
  0x1f   : > { %s7803_s29 = scalar_lea.vmem %s7802_s28, 65536  ;;  %p7804_p10 = scmp.lt.s32.totalorder %s8048_s8, %s7802_s28 }
  0x20   : > { %p7799_p13 = pnand %p7797_p11, %p8057_p12  ;;  %p7805_p7 = scmp.lt.s32.totalorder %s7803_s29, %s7796_s22 }
  0x22   : > { %p7800_p9 = pneg %p7799_p13  ;;  %p7806_p1 = por %p7805_p7, %p7804_p10 }
  0x24   : > { %p7807_p2 = pnand %p7806_p1, %p7800_p9 }
  0x26   : > { %7810 = shalt.err (!%p7807_p2)
}
  0x27   : > { %s7960_s30 = smov 512   ;;  %s7961_s5 = smov 32  }
  0x28   : > { %7659 = dma.hbm_to_vmem [thread:$0]  (!%p8035_p8), %s8045_s6, 32768, %s8048_s8, %s8051_s9, %s7960_s30, %s7960_s30, %s7961_s5  }
  0x29   : > { %p9202_p7 = scmp.lt.s32.totalorder %s7933_s18, 7  ;;  %p9203_p9 = scmp.ge.s32.totalorder %s7933_s18, 1 }
  0x2a   : > { %s6406_s10 = sshll.u32 %s8033_s25, 12  ;;  %s7592_s12 = sshll.u32 %s7933_s18, 16 }
  0x2b   : > { %p8088_p10 = pnand %p9203_p9, %p9202_p7  ;;  %s8097_s15 = scalar_lea.hbm %s9194_s1, %s7592_s12 }
  0x2c   : > { %s165_s21 = scalar_lea.vmem [#allocation5], %s6406_s10  ;;  %s6412_s6 = sshll.u32 %s8033_s25, 4 }
  0x2d   : > { %s9204_s7 = scalar_select %p8088_p10, 1, 0 }
  0x2e   : > { %s172_s22 = sshll.u32 %s165_s21, 4  ;;  %s162_s8 = scalar_lea.sflag [#allocation6], %s8033_s25  ;;  %s8100_s22 = int_to_ptr.vmem [resolvable:$true] %s172_s22 }
  0x2f   : > { %s7811_s27 = scalar_lea.hbm %s8097_s15, 65536  ;;  %s7816_s12 = scalar_lea.hbm %s9194_s1, 393216 }
  0x30   : > { %p7812_p0 = scmp.ne.s32.totalorder %s8097_s15, %s7811_s27  ;;  %p7817_p5 = scmp.lt.u32.totalorder %s8097_s15, %s9194_s1 }
  0x31   : > { %p7818_p6 = scmp.lt.u32.totalorder %s7816_s12, %s7811_s27  ;;  %p7820_p13 = scmp.lt.u32.totalorder %s7811_s27, %s8097_s15 }
  0x32   : > { %p7814_p3 = pnand %p7812_p0, %p8057_p12 }
  0x33   : > { %p7819_p11 = por %p7818_p6, %p7817_p5 }
  0x34   : > { %p7815_p4 = pneg %p7814_p3 }
  0x35   : > { %p7821_p1 = por %p7820_p13, %p7819_p11 }
  0x37   : > { %p7822_p2 = pnand %p7821_p1, %p7815_p4 }
  0x39   : > { %7825 = shalt.err (!%p7822_p2)
}
  0x3a   : > { %s7826_s10 = scalar_lea.vmem %s8100_s22, 65536  ;;  %s7962_s21 = smov [#allocation5]  }
  0x3b   : > { %p7827_p7 = scmp.ne.s32.totalorder %s8100_s22, %s7826_s10  ;;  %s7831_s28 = sshll.u32 %s7962_s21, 4  ;;  %s7832_s28 = int_to_ptr.vmem [resolvable:$false] %s7831_s28 }
  0x3c   : > { %s7833_s29 = scalar_lea.vmem %s7832_s28, 131072  ;;  %p7834_p3 = scmp.lt.s32.totalorder %s8100_s22, %s7832_s28 }
  0x3d   : > { %p7829_p9 = pnand %p7827_p7, %p8057_p12  ;;  %p7835_p10 = scmp.lt.s32.totalorder %s7833_s29, %s7826_s10 }
  0x3f   : > { %p7830_p0 = pneg %p7829_p9  ;;  %p7836_p5 = por %p7835_p10, %p7834_p3 }
  0x41   : > { %p7837_p6 = pnand %p7836_p5, %p7830_p0 }
  0x43   : > { %7840 = shalt.err (!%p7837_p6)
}
  0x44   : > { %7656 = dma.hbm_to_vmem [thread:$0]  (!%p8035_p8), %s8097_s15, 65536, %s8100_s22, %s162_s8, %s7960_s30, %s7960_s30, %s7961_s5  }
  0x45   : > { %s7594_s27 = sshll.u32 %s7933_s18, 8  ;;  %s207_s12 = scalar_lea.vmem [#allocation9], %s6412_s6 }
  0x46   : > { %s214_s13 = sshll.u32 %s207_s12, 4  ;;  %s8135_s21 = scalar_lea.hbm %s9196_s3, %s7594_s27  ;;  %s8137_s13 = int_to_ptr.vmem [resolvable:$true] %s214_s13 }
  0x47   : > { %s7841_s28 = scalar_lea.hbm %s8135_s21, 256  ;;  %s7846_s30 = scalar_lea.hbm %s9196_s3, 1536 }
  0x48   : > { %p7842_p10 = scmp.ne.s32.totalorder %s8135_s21, %s7841_s28  ;;  %p7847_p13 = scmp.lt.u32.totalorder %s8135_s21, %s9196_s3 }
  0x49   : > { %p7848_p1 = scmp.lt.u32.totalorder %s7846_s30, %s7841_s28  ;;  %p7850_p7 = scmp.lt.u32.totalorder %s7841_s28, %s8135_s21 }
  0x4a   : > { %p7844_p4 = pnand %p7842_p10, %p8057_p12 }
  0x4b   : > { %p7849_p2 = por %p7848_p1, %p7847_p13 }
  0x4c   : > { %p7845_p11 = pneg %p7844_p4 }
  0x4d   : > { %p7851_p9 = por %p7850_p7, %p7849_p2 }
  0x4f   : > { %p7852_p0 = pnand %p7851_p9, %p7845_p11 }
  0x51   : > { %7855 = shalt.err (!%p7852_p0)
}
  0x52   : > { %s7856_s22 = scalar_lea.vmem %s8137_s13, 256  ;;  %s7963_s6 = smov [#allocation9]  }
  0x53   : > { %p7857_p3 = scmp.ne.s32.totalorder %s8137_s13, %s7856_s22  ;;  %s7861_s8 = sshll.u32 %s7963_s6, 4  ;;  %s7862_s8 = int_to_ptr.vmem [resolvable:$false] %s7861_s8 }
  0x54   : > { %s7863_s29 = scalar_lea.vmem %s7862_s8, 512  ;;  %p7864_p10 = scmp.lt.s32.totalorder %s8137_s13, %s7862_s8 }
  0x55   : > { %p7859_p5 = pnand %p7857_p3, %p8057_p12  ;;  %p7865_p4 = scmp.lt.s32.totalorder %s7863_s29, %s7856_s22 }
  0x57   : > { %p7860_p6 = pneg %p7859_p5  ;;  %p7866_p13 = por %p7865_p4, %p7864_p10 }
  0x59   : > { %p7867_p1 = pnand %p7866_p13, %p7860_p6 }
  0x5b   : > { %7870 = shalt.err (!%p7867_p1)
}
  0x5c   : > { %s7964_s27 = smov 128   ;;  %s7965_s12 = smov 8  }
  0x5d   : > { %7662 = dma.hbm_to_vmem [thread:$0]  (!%p8035_p8), %s8135_s21, 256, %s8137_s13, %s8051_s9, %s7964_s27, %s7964_s27, %s7965_s12  }
  0x5e   : > { %p9205_p12 = scmp.ne.s32.totalorder %s9204_s7, 0 }
  0x5f   : > { %s228_s11 = sand.u32 (!%p9205_p12), 1, %s7925_s16   ;;  %p9206_p11 = scmp.ne.s32.totalorder (!%p9205_p12), %s9199_s24, 0 }
  0x60   : > { %226 = sbr.rel (%p9205_p12) target bundleno = 1884 (0x75c), region = 36  ;;  %s6416_s14 = sshll.u32 (!%p9205_p12), %s228_s11, 12 }
  0x61   : > { %s229_s10 = scalar_lea.sflag (!%p9205_p12), [#allocation6], %s228_s11  ;;  %s8164_s28 = scalar_lea.vmem (!%p9205_p12), [#allocation5], %s6416_s14 }
  0x67   : > { %7912 = dma.done.wait (%p9206_p11), %s229_s10, 65536  }
  0x68   : > { %7914 = vsyncadd (%p9206_p11), %s229_s10, 4294901760  ;;  %s237_s18 = sand.u32 1, %s8011_s19   ;;  %s6417_s26 = sshll.u32 %s228_s11, 11 }
  0x69   : > { %s238_s9 = scalar_lea.sflag [#allocation8], %s237_s18  ;;  %s8171_s13 = scalar_lea.vmem [#allocation7], %s6417_s26 }
  0x6a   : > { %7916 = dma.done.wait (%p9206_p11), %s238_s9, 33024  }
  0x6b   : > { %7918 = vsyncadd (%p9206_p11), %s238_s9, 4294934272  ;;  %s6418_s7 = sshll.u32 %s228_s11, 4  ;;  %p6419_p8 = scmp.ne.s32.totalorder %s8011_s19, 0 }
  0x6c   : > { %s8177_s21 = scalar_lea.vmem [#allocation9], %s6418_s7  ;;  %v284_v0 = vld [vmem:[%s9193_s0] sm:$0xff] (!%p6419_p8)  ;;  %v285_v1 = vld [vmem:[%s9193_s0 + $0x8] sm:$0xff] (!%p6419_p8)  ;;  %v286_v2 = vld [vmem:[%s9193_s0 + $0x10] sm:$0xff] (!%p6419_p8) }
  0x6d   : > { %283 = sbr.rel (%p6419_p8) target bundleno = 116 (0x74), region = 52  ;;  %288 = vst [vmem:[#allocation2] sm:$0xff] (!%p6419_p8), %v284_v0  ;;  %289 = vst [vmem:[#allocation2 + $0x8] sm:$0xff] (!%p6419_p8), %v285_v1  ;;  %v287_v3 = vld [vmem:[%s9193_s0 + $0x18] sm:$0xff] (!%p6419_p8) }
  0x6e   : > { %290 = vst [vmem:[#allocation2 + $0x10] sm:$0xff] (!%p6419_p8), %v286_v2  ;;  %291 = vst [vmem:[#allocation2 + $0x18] sm:$0xff] (!%p6419_p8), %v287_v3 }
  0x74 PF: > { %p6420_p2 = scmp.le.s32.totalorder %s8011_s19, 0 }
  0x75   : > { %v296_v4 = vld [vmem:[#allocation3] sm:$0xff] (!%p6420_p2)  ;;  %v297_v5 = vld [vmem:[#allocation3 + $0x8] sm:$0xff] (!%p6420_p2)  ;;  %v298_v6 = vld [vmem:[#allocation3 + $0x10] sm:$0xff] (!%p6420_p2) }
  0x76   : > { %295 = sbr.rel (%p6420_p2) target bundleno = 125 (0x7d), region = 56  ;;  %300 = vst [vmem:[#allocation2] sm:$0xff] (!%p6420_p2), %v296_v4  ;;  %301 = vst [vmem:[#allocation2 + $0x8] sm:$0xff] (!%p6420_p2), %v297_v5  ;;  %v299_v7 = vld [vmem:[#allocation3 + $0x18] sm:$0xff] (!%p6420_p2) }
  0x77   : > { %302 = vst [vmem:[#allocation2 + $0x10] sm:$0xff] (!%p6420_p2), %v298_v6  ;;  %303 = vst [vmem:[#allocation2 + $0x18] sm:$0xff] (!%p6420_p2), %v299_v7 }
  0x7d PF: > { %v312_v8 = vld [vmem:[%s8164_s28] sm:$0xff]  ;;  %v313_v10 = vld [vmem:[%s8164_s28 + $0x8] sm:$0xff]  ;;  %s8507_s29 = smov 0  }
  0x7e   : > { %v316_v9 = vld [vmem:[%s8164_s28 + $0x20] sm:$0xff]  ;;  %v317_v12 = vld [vmem:[%s8164_s28 + $0x28] sm:$0xff] }
  0x7f   : > { %v6422_v11 = vcombine.high %v312_v8, %v316_v9  ;;  %v6421_v13 = vcombine.low %v312_v8, %v316_v9  ;;  %v320_v14 = vld [vmem:[%s8164_s28 + $0x40] sm:$0xff]  ;;  %v6424_v16 = vcombine.high %v313_v10, %v317_v12  ;;  %v6423_v17 = vcombine.low %v313_v10, %v317_v12  ;;  %v321_v19 = vld [vmem:[%s8164_s28 + $0x48] sm:$0xff] }
  0x80   : > { %v324_v15 = vld [vmem:[%s8164_s28 + $0x60] sm:$0xff]  ;;  %v325_v20 = vld [vmem:[%s8164_s28 + $0x68] sm:$0xff] }
  0x81   : > { %v6430_v18 = vcombine.high %v320_v14, %v324_v15  ;;  %v328_v21 = vld [vmem:[%s8164_s28 + $0x80] sm:$0xff]  ;;  %1890 = vmatprep.subr.bf16.mxu0 %v6422_v11  ;;  %v6432_v22 = vcombine.high %v321_v19, %v325_v20  ;;  %v329_v24 = vld [vmem:[%s8164_s28 + $0x88] sm:$0xff]  ;;  %1972 = vmatprep.subr.bf16.mxu1 %v6424_v16  ;;  %v6429_v26 = vcombine.low %v320_v14, %v324_v15 }
  0x82   : > { %v332_v23 = vld [vmem:[%s8164_s28 + $0xa0] sm:$0xff]  ;;  %v333_v25 = vld [vmem:[%s8164_s28 + $0xa8] sm:$0xff]  ;;  %1891 = vmatpush1.bf16.msra.mxu0 %v6421_v13  ;;  %1973 = vmatpush1.bf16.msra.mxu1 %v6423_v17  ;;  %v6431_v27 = vcombine.low %v321_v19, %v325_v20 }
  0x83   : > { %1892 = vmatprep.subr.bf16.mxu0 %v6430_v18  ;;  %v6438_v28 = vcombine.high %v328_v21, %v332_v23  ;;  %1974 = vmatprep.subr.bf16.mxu1 %v6432_v22  ;;  %v6440_v29 = vcombine.high %v329_v24, %v333_v25  ;;  %v336_v30 = vld [vmem:[%s8164_s28 + $0xc0] sm:$0xff]  ;;  %v337_v32 = vld [vmem:[%s8164_s28 + $0xc8] sm:$0xff]  ;;  %v6437_v34 = vcombine.low %v328_v21, %v332_v23 }
  0x84   : > { %v340_v31 = vld [vmem:[%s8164_s28 + $0xe0] sm:$0xff]  ;;  %v341_v33 = vld [vmem:[%s8164_s28 + $0xe8] sm:$0xff]  ;;  %v6439_v35 = vcombine.low %v329_v24, %v333_v25 }
  0x85   : > { %v6446_v36 = vcombine.high %v336_v30, %v340_v31  ;;  %v6448_v37 = vcombine.high %v337_v32, %v341_v33  ;;  %v344_v38 = vld [vmem:[%s8164_s28 + $0x100] sm:$0xff]  ;;  %v345_v40 = vld [vmem:[%s8164_s28 + $0x108] sm:$0xff]  ;;  %v6445_v42 = vcombine.low %v336_v30, %v340_v31  ;;  %v6447_v43 = vcombine.low %v337_v32, %v341_v33 }
  0x86   : > { %1893 = vmatpush1.bf16.msra.mxu0 %v6429_v26  ;;  %1975 = vmatpush1.bf16.msra.mxu1 %v6431_v27  ;;  %v348_v39 = vld [vmem:[%s8164_s28 + $0x120] sm:$0xff]  ;;  %v349_v41 = vld [vmem:[%s8164_s28 + $0x128] sm:$0xff] }
  0x87   : > { %1894 = vmatprep.subr.bf16.mxu0 %v6438_v28  ;;  %1976 = vmatprep.subr.bf16.mxu1 %v6440_v29  ;;  %v6454_v44 = vcombine.high %v344_v38, %v348_v39  ;;  %v6456_v45 = vcombine.high %v345_v40, %v349_v41  ;;  %v352_v46 = vld [vmem:[%s8164_s28 + $0x140] sm:$0xff]  ;;  %v353_v48 = vld [vmem:[%s8164_s28 + $0x148] sm:$0xff]  ;;  %v6453_v50 = vcombine.low %v344_v38, %v348_v39 }
  0x88   : > { %v356_v47 = vld [vmem:[%s8164_s28 + $0x160] sm:$0xff]  ;;  %v357_v49 = vld [vmem:[%s8164_s28 + $0x168] sm:$0xff]  ;;  %v6455_v51 = vcombine.low %v345_v40, %v349_v41 }
  0x89   : > { %v6462_v52 = vcombine.high %v352_v46, %v356_v47  ;;  %v6464_v53 = vcombine.high %v353_v48, %v357_v49  ;;  %v360_v54 = vld [vmem:[%s8164_s28 + $0x180] sm:$0xff]  ;;  %v361_v56 = vld [vmem:[%s8164_s28 + $0x188] sm:$0xff]  ;;  %v6461_v58 = vcombine.low %v352_v46, %v356_v47  ;;  %v6463_v59 = vcombine.low %v353_v48, %v357_v49 }
  0x8a   : > { %1895 = vmatpush1.bf16.msra.mxu0 %v6437_v34  ;;  %1977 = vmatpush1.bf16.msra.mxu1 %v6439_v35  ;;  %v364_v55 = vld [vmem:[%s8164_s28 + $0x1a0] sm:$0xff]  ;;  %v365_v57 = vld [vmem:[%s8164_s28 + $0x1a8] sm:$0xff] }
  0x8b   : > { %1896 = vmatprep.subr.bf16.mxu0 %v6446_v36  ;;  %1978 = vmatprep.subr.bf16.mxu1 %v6448_v37  ;;  %v6470_v60 = vcombine.high %v360_v54, %v364_v55  ;;  %v305_v61 = vld [vmem:[#allocation2 + $0x8] sm:$0xff]  ;;  %v6472_v62 = vcombine.high %v361_v56, %v365_v57  ;;  %v368_v63 = vld [vmem:[%s8164_s28 + $0x1c0] sm:$0xff]  ;;  %v6469_v4 = vcombine.low %v360_v54, %v364_v55 }
  0x8c   : > { %v372_v0 = vld [vmem:[%s8164_s28 + $0x1e0] sm:$0xff]  ;;  %v8223_v1 = vpack.c.bf16 %v305_v61, %v305_v61  ;;  %v369_v2 = vld [vmem:[%s8164_s28 + $0x1c8] sm:$0xff]  ;;  %v6471_v5 = vcombine.low %v361_v56, %v365_v57 }
  0x8d   : > { %v373_v3 = vld [vmem:[%s8164_s28 + $0x1e8] sm:$0xff]  ;;  %v6478_v6 = vcombine.high %v368_v63, %v372_v0  ;;  %v376_v8 = vld [vmem:[%s8164_s28 + $0x200] sm:$0xff]  ;;  %v6477_v12 = vcombine.low %v368_v63, %v372_v0 }
  0x8e   : > { %1897 = vmatpush1.bf16.msra.mxu0 %v6445_v42  ;;  %1979 = vmatpush1.bf16.msra.mxu1 %v6447_v43  ;;  %v6480_v7 = vcombine.high %v369_v2, %v373_v3  ;;  %v380_v9 = vld [vmem:[%s8164_s28 + $0x220] sm:$0xff]  ;;  %v377_v10 = vld [vmem:[%s8164_s28 + $0x208] sm:$0xff]  ;;  %v6479_v13 = vcombine.low %v369_v2, %v373_v3 }
  0x8f   : > { %1898 = vmatprep.subr.bf16.mxu0 %v6454_v44  ;;  %1980 = vmatprep.subr.bf16.mxu1 %v6456_v45  ;;  %v381_v11 = vld [vmem:[%s8164_s28 + $0x228] sm:$0xff]  ;;  %v6486_v14 = vcombine.high %v376_v8, %v380_v9  ;;  %v384_v16 = vld [vmem:[%s8164_s28 + $0x240] sm:$0xff]  ;;  %v6485_v20 = vcombine.low %v376_v8, %v380_v9 }
  0x90   : > { %1922 = vmatprep.mubr.bf16.mxu0 %v8223_v1  ;;  %2004 = vmatprep.mubr.bf16.mxu1 %v8223_v1  ;;  %v6488_v15 = vcombine.high %v377_v10, %v381_v11  ;;  %v388_v17 = vld [vmem:[%s8164_s28 + $0x260] sm:$0xff]  ;;  %v385_v18 = vld [vmem:[%s8164_s28 + $0x248] sm:$0xff]  ;;  %v6487_v21 = vcombine.low %v377_v10, %v381_v11 }
  0x91   : > { %v389_v19 = vld [vmem:[%s8164_s28 + $0x268] sm:$0xff]  ;;  %v6494_v22 = vcombine.high %v384_v16, %v388_v17  ;;  %v392_v24 = vld [vmem:[%s8164_s28 + $0x280] sm:$0xff]  ;;  %v6493_v28 = vcombine.low %v384_v16, %v388_v17 }
  0x92   : > { %1899 = vmatpush1.bf16.msra.mxu0 %v6453_v50  ;;  %1981 = vmatpush1.bf16.msra.mxu1 %v6455_v51  ;;  %v6496_v23 = vcombine.high %v385_v18, %v389_v19  ;;  %v396_v25 = vld [vmem:[%s8164_s28 + $0x2a0] sm:$0xff]  ;;  %v393_v26 = vld [vmem:[%s8164_s28 + $0x288] sm:$0xff]  ;;  %v6495_v29 = vcombine.low %v385_v18, %v389_v19 }
  0x93   : > { %1900 = vmatprep.subr.bf16.mxu0 %v6462_v52  ;;  %1982 = vmatprep.subr.bf16.mxu1 %v6464_v53  ;;  %v397_v27 = vld [vmem:[%s8164_s28 + $0x2a8] sm:$0xff]  ;;  %v6502_v30 = vcombine.high %v392_v24, %v396_v25  ;;  %v400_v32 = vld [vmem:[%s8164_s28 + $0x2c0] sm:$0xff]  ;;  %v6501_v36 = vcombine.low %v392_v24, %v396_v25 }
  0x94   : > { %v6504_v31 = vcombine.high %v393_v26, %v397_v27  ;;  %v404_v33 = vld [vmem:[%s8164_s28 + $0x2e0] sm:$0xff]  ;;  %v401_v34 = vld [vmem:[%s8164_s28 + $0x2c8] sm:$0xff]  ;;  %v6503_v37 = vcombine.low %v393_v26, %v397_v27 }
  0x95   : > { %v405_v35 = vld [vmem:[%s8164_s28 + $0x2e8] sm:$0xff]  ;;  %v6510_v38 = vcombine.high %v400_v32, %v404_v33  ;;  %v408_v40 = vld [vmem:[%s8164_s28 + $0x300] sm:$0xff]  ;;  %v6509_v44 = vcombine.low %v400_v32, %v404_v33 }
  0x96   : > { %1901 = vmatpush1.bf16.msra.mxu0 %v6461_v58  ;;  %1983 = vmatpush1.bf16.msra.mxu1 %v6463_v59  ;;  %v6512_v39 = vcombine.high %v401_v34, %v405_v35  ;;  %v412_v41 = vld [vmem:[%s8164_s28 + $0x320] sm:$0xff]  ;;  %v409_v42 = vld [vmem:[%s8164_s28 + $0x308] sm:$0xff]  ;;  %v6511_v45 = vcombine.low %v401_v34, %v405_v35 }
  0x97   : > { %1902 = vmatprep.subr.bf16.mxu0 %v6470_v60  ;;  %1984 = vmatprep.subr.bf16.mxu1 %v6472_v62  ;;  %v413_v43 = vld [vmem:[%s8164_s28 + $0x328] sm:$0xff]  ;;  %v6518_v46 = vcombine.high %v408_v40, %v412_v41  ;;  %v416_v48 = vld [vmem:[%s8164_s28 + $0x340] sm:$0xff]  ;;  %v6517_v52 = vcombine.low %v408_v40, %v412_v41 }
  0x98   : > { %v6520_v47 = vcombine.high %v409_v42, %v413_v43  ;;  %v420_v49 = vld [vmem:[%s8164_s28 + $0x360] sm:$0xff]  ;;  %v417_v50 = vld [vmem:[%s8164_s28 + $0x348] sm:$0xff]  ;;  %v6519_v53 = vcombine.low %v409_v42, %v413_v43 }
  0x99   : > { %v421_v51 = vld [vmem:[%s8164_s28 + $0x368] sm:$0xff]  ;;  %v6526_v54 = vcombine.high %v416_v48, %v420_v49  ;;  %v424_v56 = vld [vmem:[%s8164_s28 + $0x380] sm:$0xff]  ;;  %v6525_v60 = vcombine.low %v416_v48, %v420_v49 }
  0x9a   : > { %1903 = vmatpush1.bf16.msra.mxu0 %v6469_v4  ;;  %1985 = vmatpush1.bf16.msra.mxu1 %v6471_v5  ;;  %v6528_v55 = vcombine.high %v417_v50, %v421_v51  ;;  %v428_v57 = vld [vmem:[%s8164_s28 + $0x3a0] sm:$0xff]  ;;  %v425_v58 = vld [vmem:[%s8164_s28 + $0x388] sm:$0xff]  ;;  %v6527_v61 = vcombine.low %v417_v50, %v421_v51 }
  0x9b   : > { %1904 = vmatprep.subr.bf16.mxu0 %v6478_v6  ;;  %1986 = vmatprep.subr.bf16.mxu1 %v6480_v7  ;;  %v429_v59 = vld [vmem:[%s8164_s28 + $0x3a8] sm:$0xff]  ;;  %v6534_v62 = vcombine.high %v424_v56, %v428_v57  ;;  %v432_v0 = vld [vmem:[%s8164_s28 + $0x3c0] sm:$0xff]  ;;  %v6533_v5 = vcombine.low %v424_v56, %v428_v57 }
  0x9c   : > { %v6536_v63 = vcombine.high %v425_v58, %v429_v59  ;;  %v436_v2 = vld [vmem:[%s8164_s28 + $0x3e0] sm:$0xff]  ;;  %v433_v3 = vld [vmem:[%s8164_s28 + $0x3c8] sm:$0xff]  ;;  %v6535_v6 = vcombine.low %v425_v58, %v429_v59 }
  0x9d   : > { %v437_v4 = vld [vmem:[%s8164_s28 + $0x3e8] sm:$0xff]  ;;  %v6542_v7 = vcombine.high %v432_v0, %v436_v2  ;;  %v440_v9 = vld [vmem:[%s8164_s28 + $0x400] sm:$0xff] }
  0x9e   : > { %1905 = vmatpush1.bf16.msra.mxu0 %v6477_v12  ;;  %1987 = vmatpush1.bf16.msra.mxu1 %v6479_v13  ;;  %v6544_v8 = vcombine.high %v433_v3, %v437_v4  ;;  %v444_v10 = vld [vmem:[%s8164_s28 + $0x420] sm:$0xff]  ;;  %v441_v11 = vld [vmem:[%s8164_s28 + $0x408] sm:$0xff]  ;;  %v6541_v13 = vcombine.low %v432_v0, %v436_v2 }
  0x9f   : > { %1906 = vmatprep.subr.bf16.mxu0 %v6486_v14  ;;  %1988 = vmatprep.subr.bf16.mxu1 %v6488_v15  ;;  %v445_v12 = vld [vmem:[%s8164_s28 + $0x428] sm:$0xff]  ;;  %v304_v14 = vld [vmem:[#allocation2] sm:$0xff]  ;;  %v6543_v15 = vcombine.low %v433_v3, %v437_v4  ;;  %v6550_v16 = vcombine.high %v440_v9, %v444_v10  ;;  %v6549_v24 = vcombine.low %v440_v9, %v444_v10 }
  0xa0   : > { %v6552_v17 = vcombine.high %v441_v11, %v445_v12  ;;  %v448_v18 = vld [vmem:[%s8164_s28 + $0x440] sm:$0xff]  ;;  %v6551_v25 = vcombine.low %v441_v11, %v445_v12  ;;  %v461_v32 = vld [vmem:[%s8164_s28 + $0x4a8] sm:$0xff] }
  0xa1   : > { %v452_v19 = vld [vmem:[%s8164_s28 + $0x460] sm:$0xff]  ;;  %v469_v40 = vld [vmem:[%s8164_s28 + $0x4e8] sm:$0xff] }
  0xa2   : > { %1907 = vmatpush1.bf16.msra.mxu0 %v6485_v20  ;;  %1989 = vmatpush1.bf16.msra.mxu1 %v6487_v21  ;;  %v8267_v20 = vpack.c.bf16 %v304_v14, %v304_v14  ;;  %v449_v21 = vld [vmem:[%s8164_s28 + $0x448] sm:$0xff]  ;;  %v6558_v26 = vcombine.high %v448_v18, %v452_v19  ;;  %v6557_v33 = vcombine.low %v448_v18, %v452_v19  ;;  %v504_v14 = vld [vmem:[%s8164_s28 + $0x600] sm:$0xff] }
  0xa3   : > { %1908 = vmatprep.subr.bf16.mxu0 %v6494_v22  ;;  %1990 = vmatprep.subr.bf16.mxu1 %v6496_v23  ;;  %v453_v22 = vld [vmem:[%s8164_s28 + $0x468] sm:$0xff]  ;;  %v307_v23 = vld [vmem:[#allocation2 + $0x18] sm:$0xff] }
  0xa4   : > { %v6560_v27 = vcombine.high %v449_v21, %v453_v22  ;;  %v6559_v34 = vcombine.low %v449_v21, %v453_v22  ;;  %v477_v48 = vld [vmem:[%s8164_s28 + $0x528] sm:$0xff] }
  0xa5   : > { %v485_v56 = vld [vmem:[%s8164_s28 + $0x568] sm:$0xff] }
  0xa6   : > { %1909 = vmatpush1.bf16.msra.mxu0 %v6493_v28  ;;  %1991 = vmatpush1.bf16.msra.mxu1 %v6495_v29  ;;  %v456_v28 = vld [vmem:[%s8164_s28 + $0x480] sm:$0xff]  ;;  %v493_v0 = vld [vmem:[%s8164_s28 + $0x5a8] sm:$0xff] }
  0xa7   : > { %1910 = vmatprep.subr.bf16.mxu0 %v6502_v30  ;;  %1992 = vmatprep.subr.bf16.mxu1 %v6504_v31  ;;  %v460_v29 = vld [vmem:[%s8164_s28 + $0x4a0] sm:$0xff]  ;;  %v8273_v30 = vpack.c.bf16 %v307_v23, %v307_v23  ;;  %v457_v31 = vld [vmem:[%s8164_s28 + $0x488] sm:$0xff] }
  0xa8   : > { %v6566_v35 = vcombine.high %v456_v28, %v460_v29  ;;  %v6565_v41 = vcombine.low %v456_v28, %v460_v29  ;;  %v6567_v42 = vcombine.low %v457_v31, %v461_v32  ;;  %v501_v9 = vld [vmem:[%s8164_s28 + $0x5e8] sm:$0xff]  ;;  %v512_v23 = vld [vmem:[%s8164_s28 + $0x640] sm:$0xff] }
  0xaa   : > { %1911 = vmatpush1.bf16.msra.mxu0 %v6501_v36  ;;  %1993 = vmatpush1.bf16.msra.mxu1 %v6503_v37  ;;  %v6568_v36 = vcombine.high %v457_v31, %v461_v32  ;;  %v464_v37 = vld [vmem:[%s8164_s28 + $0x4c0] sm:$0xff] }
  0xab   : > { %1912 = vmatprep.subr.bf16.mxu0 %v6510_v38  ;;  %1994 = vmatprep.subr.bf16.mxu1 %v6512_v39  ;;  %v468_v38 = vld [vmem:[%s8164_s28 + $0x4e0] sm:$0xff]  ;;  %v465_v39 = vld [vmem:[%s8164_s28 + $0x4c8] sm:$0xff] }
  0xac   : > { %v6574_v43 = vcombine.high %v464_v37, %v468_v38  ;;  %v6573_v49 = vcombine.low %v464_v37, %v468_v38  ;;  %v6575_v50 = vcombine.low %v465_v39, %v469_v40  ;;  %v520_v32 = vld [vmem:[%s8164_s28 + $0x680] sm:$0xff] }
  0xae   : > { %1913 = vmatpush1.bf16.msra.mxu0 %v6509_v44  ;;  %1995 = vmatpush1.bf16.msra.mxu1 %v6511_v45  ;;  %v6576_v44 = vcombine.high %v465_v39, %v469_v40  ;;  %v472_v45 = vld [vmem:[%s8164_s28 + $0x500] sm:$0xff] }
  0xaf   : > { %1914 = vmatprep.subr.bf16.mxu0 %v6518_v46  ;;  %1996 = vmatprep.subr.bf16.mxu1 %v6520_v47  ;;  %v476_v46 = vld [vmem:[%s8164_s28 + $0x520] sm:$0xff]  ;;  %v473_v47 = vld [vmem:[%s8164_s28 + $0x508] sm:$0xff] }
  0xb0   : > { %v6582_v51 = vcombine.high %v472_v45, %v476_v46  ;;  %v6581_v57 = vcombine.low %v472_v45, %v476_v46  ;;  %v6583_v58 = vcombine.low %v473_v47, %v477_v48  ;;  %v528_v40 = vld [vmem:[%s8164_s28 + $0x6c0] sm:$0xff] }
  0xb2   : > { %1915 = vmatpush1.bf16.msra.mxu0 %v6517_v52  ;;  %1997 = vmatpush1.bf16.msra.mxu1 %v6519_v53  ;;  %v6584_v52 = vcombine.high %v473_v47, %v477_v48  ;;  %v480_v53 = vld [vmem:[%s8164_s28 + $0x540] sm:$0xff] }
  0xb3   : > { %1916 = vmatprep.subr.bf16.mxu0 %v6526_v54  ;;  %1998 = vmatprep.subr.bf16.mxu1 %v6528_v55  ;;  %v484_v54 = vld [vmem:[%s8164_s28 + $0x560] sm:$0xff]  ;;  %v481_v55 = vld [vmem:[%s8164_s28 + $0x548] sm:$0xff] }
  0xb4   : > { %v6590_v59 = vcombine.high %v480_v53, %v484_v54  ;;  %v6589_v2 = vcombine.low %v480_v53, %v484_v54  ;;  %v6591_v3 = vcombine.low %v481_v55, %v485_v56  ;;  %v536_v48 = vld [vmem:[%s8164_s28 + $0x700] sm:$0xff] }
  0xb6   : > { %1917 = vmatpush1.bf16.msra.mxu0 %v6525_v60  ;;  %1999 = vmatpush1.bf16.msra.mxu1 %v6527_v61  ;;  %v6592_v60 = vcombine.high %v481_v55, %v485_v56  ;;  %v488_v61 = vld [vmem:[%s8164_s28 + $0x580] sm:$0xff] }
  0xb7   : > { %1918 = vmatprep.subr.bf16.mxu0 %v6534_v62  ;;  %2000 = vmatprep.subr.bf16.mxu1 %v6536_v63  ;;  %v492_v62 = vld [vmem:[%s8164_s28 + $0x5a0] sm:$0xff]  ;;  %v489_v63 = vld [vmem:[%s8164_s28 + $0x588] sm:$0xff] }
  0xb8   : > { %v6598_v4 = vcombine.high %v488_v61, %v492_v62  ;;  %v6597_v10 = vcombine.low %v488_v61, %v492_v62  ;;  %v6599_v11 = vcombine.low %v489_v63, %v493_v0  ;;  %v544_v56 = vld [vmem:[%s8164_s28 + $0x740] sm:$0xff] }
  0xba   : > { %1919 = vmatpush1.bf16.msra.mxu0 %v6533_v5  ;;  %2001 = vmatpush1.bf16.msra.mxu1 %v6535_v6  ;;  %v6600_v5 = vcombine.high %v489_v63, %v493_v0  ;;  %v496_v6 = vld [vmem:[%s8164_s28 + $0x5c0] sm:$0xff] }
  0xbb   : > { %1920 = vmatprep.subr.bf16.mxu0 %v6542_v7  ;;  %2002 = vmatprep.subr.bf16.mxu1 %v6544_v8  ;;  %v500_v7 = vld [vmem:[%s8164_s28 + $0x5e0] sm:$0xff]  ;;  %v497_v8 = vld [vmem:[%s8164_s28 + $0x5c8] sm:$0xff] }
  0xbc   : > { %v6606_v12 = vcombine.high %v496_v6, %v500_v7  ;;  %v6605_v18 = vcombine.low %v496_v6, %v500_v7  ;;  %v6607_v19 = vcombine.low %v497_v8, %v501_v9  ;;  %v552_v0 = vld [vmem:[%s8164_s28 + $0x780] sm:$0xff] }
  0xbe   : > { %1921 = vmatpush1.bf16.msra.mxu0 %v6541_v13  ;;  %2003 = vmatpush1.bf16.msra.mxu1 %v6543_v15  ;;  %v6608_v13 = vcombine.high %v497_v8, %v501_v9  ;;  %v508_v15 = vld [vmem:[%s8164_s28 + $0x620] sm:$0xff] }
  0xbf   : > { %1931 = vmatprep.subr.bf16.mxu0 %v6550_v16  ;;  %2013 = vmatprep.subr.bf16.mxu1 %v6552_v17  ;;  %v505_v16 = vld [vmem:[%s8164_s28 + $0x608] sm:$0xff]  ;;  %v6614_v21 = vcombine.high %v504_v14, %v508_v15  ;;  %v560_v9 = vld [vmem:[%s8164_s28 + $0x7c0] sm:$0xff] }
  0xc0   : > { %v509_v17 = vld [vmem:[%s8164_s28 + $0x628] sm:$0xff] }
  0xc1   : > { %1923 = vmatmul.mubr.bf16.vlgmr.msra.gmra.mrb[0].mxu0 %v8267_v20  ;;  %2005 = vmatmul.mubr.bf16.vlgmr.msra.gmra.mrb[0].mxu1 %v8267_v20  ;;  %v6616_v22 = vcombine.high %v505_v16, %v509_v17  ;;  %v6615_v28 = vcombine.low %v505_v16, %v509_v17  ;;  %v314_v17 = vld [vmem:[%s8164_s28 + $0x10] sm:$0xff] }
  0xc2   : > { %1932 = vmatpush1.bf16.msra.mxu0 %v6549_v24  ;;  %2014 = vmatpush1.bf16.msra.mxu1 %v6551_v25  ;;  %v516_v24 = vld [vmem:[%s8164_s28 + $0x660] sm:$0xff]  ;;  %v513_v25 = vld [vmem:[%s8164_s28 + $0x648] sm:$0xff] }
  0xc3   : > { %1933 = vmatprep.subr.bf16.mxu0 %v6558_v26  ;;  %2015 = vmatprep.subr.bf16.mxu1 %v6560_v27  ;;  %v517_v26 = vld [vmem:[%s8164_s28 + $0x668] sm:$0xff]  ;;  %v6613_v27 = vcombine.low %v504_v14, %v508_v15  ;;  %v6622_v29 = vcombine.high %v512_v23, %v516_v24 }
  0xc4   : > { %1963 = vmatprep.mubr.bf16.mxu0 %v8273_v30  ;;  %2045 = vmatprep.mubr.bf16.mxu1 %v8273_v30  ;;  %v6624_v31 = vcombine.high %v513_v25, %v517_v26  ;;  %v6623_v37 = vcombine.low %v513_v25, %v517_v26 }
  0xc6   : > { %1934 = vmatpush1.bf16.msra.mxu0 %v6557_v33  ;;  %2016 = vmatpush1.bf16.msra.mxu1 %v6559_v34  ;;  %v524_v33 = vld [vmem:[%s8164_s28 + $0x6a0] sm:$0xff]  ;;  %v521_v34 = vld [vmem:[%s8164_s28 + $0x688] sm:$0xff] }
  0xc7   : > { %1935 = vmatprep.subr.bf16.mxu0 %v6566_v35  ;;  %2017 = vmatprep.subr.bf16.mxu1 %v6568_v36  ;;  %v525_v35 = vld [vmem:[%s8164_s28 + $0x6a8] sm:$0xff]  ;;  %v6621_v36 = vcombine.low %v512_v23, %v516_v24  ;;  %v6630_v38 = vcombine.high %v520_v32, %v524_v33  ;;  %v306_v23 = vld [vmem:[#allocation2 + $0x10] sm:$0xff] }
  0xc8   : > { %v6632_v39 = vcombine.high %v521_v34, %v525_v35  ;;  %v6631_v45 = vcombine.low %v521_v34, %v525_v35 }
  0xca   : > { %1936 = vmatpush1.bf16.msra.mxu0 %v6565_v41  ;;  %2018 = vmatpush1.bf16.msra.mxu1 %v6567_v42  ;;  %v532_v41 = vld [vmem:[%s8164_s28 + $0x6e0] sm:$0xff]  ;;  %v529_v42 = vld [vmem:[%s8164_s28 + $0x6c8] sm:$0xff] }
  0xcb   : > { %1937 = vmatprep.subr.bf16.mxu0 %v6574_v43  ;;  %2019 = vmatprep.subr.bf16.mxu1 %v6576_v44  ;;  %v533_v43 = vld [vmem:[%s8164_s28 + $0x6e8] sm:$0xff]  ;;  %v6629_v44 = vcombine.low %v520_v32, %v524_v33  ;;  %v6638_v46 = vcombine.high %v528_v40, %v532_v41  ;;  %v327_v32 = vld [vmem:[%s8164_s28 + $0x78] sm:$0xff] }
  0xcc   : > { %v6640_v47 = vcombine.high %v529_v42, %v533_v43  ;;  %v6639_v53 = vcombine.low %v529_v42, %v533_v43 }
  0xce   : > { %1938 = vmatpush1.bf16.msra.mxu0 %v6573_v49  ;;  %2020 = vmatpush1.bf16.msra.mxu1 %v6575_v50  ;;  %v540_v49 = vld [vmem:[%s8164_s28 + $0x720] sm:$0xff]  ;;  %v537_v50 = vld [vmem:[%s8164_s28 + $0x708] sm:$0xff] }
  0xcf   : > { %1939 = vmatprep.subr.bf16.mxu0 %v6582_v51  ;;  %2021 = vmatprep.subr.bf16.mxu1 %v6584_v52  ;;  %v541_v51 = vld [vmem:[%s8164_s28 + $0x728] sm:$0xff]  ;;  %v6637_v52 = vcombine.low %v528_v40, %v532_v41  ;;  %v6646_v54 = vcombine.high %v536_v48, %v540_v49  ;;  %v335_v40 = vld [vmem:[%s8164_s28 + $0xb8] sm:$0xff] }
  0xd0   : > { %v6648_v55 = vcombine.high %v537_v50, %v541_v51  ;;  %v6647_v61 = vcombine.low %v537_v50, %v541_v51 }
  0xd2   : > { %1940 = vmatpush1.bf16.msra.mxu0 %v6581_v57  ;;  %2022 = vmatpush1.bf16.msra.mxu1 %v6583_v58  ;;  %v548_v57 = vld [vmem:[%s8164_s28 + $0x760] sm:$0xff]  ;;  %v545_v58 = vld [vmem:[%s8164_s28 + $0x748] sm:$0xff] }
  0xd3   : > { %1941 = vmatprep.subr.bf16.mxu0 %v6590_v59  ;;  %2023 = vmatprep.subr.bf16.mxu1 %v6592_v60  ;;  %v549_v59 = vld [vmem:[%s8164_s28 + $0x768] sm:$0xff]  ;;  %v6645_v60 = vcombine.low %v536_v48, %v540_v49  ;;  %v6654_v62 = vcombine.high %v544_v56, %v548_v57  ;;  %v343_v48 = vld [vmem:[%s8164_s28 + $0xf8] sm:$0xff] }
  0xd4   : > { %v6656_v63 = vcombine.high %v545_v58, %v549_v59  ;;  %v6655_v6 = vcombine.low %v545_v58, %v549_v59 }
  0xd6   : > { %1942 = vmatpush1.bf16.msra.mxu0 %v6589_v2  ;;  %2024 = vmatpush1.bf16.msra.mxu1 %v6591_v3  ;;  %v556_v2 = vld [vmem:[%s8164_s28 + $0x7a0] sm:$0xff]  ;;  %v553_v3 = vld [vmem:[%s8164_s28 + $0x788] sm:$0xff] }
  0xd7   : > { %1943 = vmatprep.subr.bf16.mxu0 %v6598_v4  ;;  %2025 = vmatprep.subr.bf16.mxu1 %v6600_v5  ;;  %v557_v4 = vld [vmem:[%s8164_s28 + $0x7a8] sm:$0xff]  ;;  %v6653_v5 = vcombine.low %v544_v56, %v548_v57  ;;  %v6662_v7 = vcombine.high %v552_v0, %v556_v2  ;;  %v351_v56 = vld [vmem:[%s8164_s28 + $0x138] sm:$0xff] }
  0xd8   : > { %v6664_v8 = vcombine.high %v553_v3, %v557_v4  ;;  %v6663_v14 = vcombine.low %v553_v3, %v557_v4 }
  0xda   : > { %1944 = vmatpush1.bf16.msra.mxu0 %v6597_v10  ;;  %2026 = vmatpush1.bf16.msra.mxu1 %v6599_v11  ;;  %v564_v10 = vld [vmem:[%s8164_s28 + $0x7e0] sm:$0xff]  ;;  %v561_v11 = vld [vmem:[%s8164_s28 + $0x7c8] sm:$0xff] }
  0xdb   : > { %1945 = vmatprep.subr.bf16.mxu0 %v6606_v12  ;;  %2027 = vmatprep.subr.bf16.mxu1 %v6608_v13  ;;  %v565_v12 = vld [vmem:[%s8164_s28 + $0x7e8] sm:$0xff]  ;;  %v6661_v13 = vcombine.low %v552_v0, %v556_v2  ;;  %v6670_v15 = vcombine.high %v560_v9, %v564_v10  ;;  %v359_v0 = vld [vmem:[%s8164_s28 + $0x178] sm:$0xff] }
  0xdc   : > { %v6672_v16 = vcombine.high %v561_v11, %v565_v12  ;;  %v6671_v24 = vcombine.low %v561_v11, %v565_v12 }
  0xde   : > { %1946 = vmatpush1.bf16.msra.mxu0 %v6605_v18  ;;  %2028 = vmatpush1.bf16.msra.mxu1 %v6607_v19  ;;  %v318_v18 = vld [vmem:[%s8164_s28 + $0x30] sm:$0xff]  ;;  %v315_v19 = vld [vmem:[%s8164_s28 + $0x18] sm:$0xff] }
  0xdf   : > { %1947 = vmatprep.subr.bf16.mxu0 %v6614_v21  ;;  %2029 = vmatprep.subr.bf16.mxu1 %v6616_v22  ;;  %v319_v21 = vld [vmem:[%s8164_s28 + $0x38] sm:$0xff]  ;;  %v6669_v22 = vcombine.low %v560_v9, %v564_v10  ;;  %v6426_v25 = vcombine.high %v314_v17, %v318_v18  ;;  %v6425_v33 = vcombine.low %v314_v17, %v318_v18 }
  0xe0   : > { %v6428_v26 = vcombine.high %v315_v19, %v319_v21  ;;  %v6427_v34 = vcombine.low %v315_v19, %v319_v21  ;;  %v367_v9 = vld [vmem:[%s8164_s28 + $0x1b8] sm:$0xff] }
  0xe1   : > { %v375_v17 = vld [vmem:[%s8164_s28 + $0x1f8] sm:$0xff] }
  0xe2   : > { %1948 = vmatpush1.bf16.msra.mxu0 %v6613_v27  ;;  %2030 = vmatpush1.bf16.msra.mxu1 %v6615_v28  ;;  %v322_v27 = vld [vmem:[%s8164_s28 + $0x50] sm:$0xff] }
  0xe3   : > { %1949 = vmatprep.subr.bf16.mxu0 %v6622_v29  ;;  %2031 = vmatprep.subr.bf16.mxu1 %v6624_v31  ;;  %v326_v28 = vld [vmem:[%s8164_s28 + $0x70] sm:$0xff]  ;;  %v8339_v29 = vpack.c.bf16 %v306_v23, %v306_v23  ;;  %v323_v31 = vld [vmem:[%s8164_s28 + $0x58] sm:$0xff] }
  0xe4   : > { %v6434_v35 = vcombine.high %v322_v27, %v326_v28  ;;  %v6433_v41 = vcombine.low %v322_v27, %v326_v28  ;;  %v6435_v42 = vcombine.low %v323_v31, %v327_v32  ;;  %v378_v23 = vld [vmem:[%s8164_s28 + $0x210] sm:$0xff] }
  0xe6   : > { %1950 = vmatpush1.bf16.msra.mxu0 %v6621_v36  ;;  %2032 = vmatpush1.bf16.msra.mxu1 %v6623_v37  ;;  %v6436_v36 = vcombine.high %v323_v31, %v327_v32  ;;  %v330_v37 = vld [vmem:[%s8164_s28 + $0x90] sm:$0xff] }
  0xe7   : > { %1951 = vmatprep.subr.bf16.mxu0 %v6630_v38  ;;  %2033 = vmatprep.subr.bf16.mxu1 %v6632_v39  ;;  %v334_v38 = vld [vmem:[%s8164_s28 + $0xb0] sm:$0xff]  ;;  %v331_v39 = vld [vmem:[%s8164_s28 + $0x98] sm:$0xff] }
  0xe8   : > { %v6442_v43 = vcombine.high %v330_v37, %v334_v38  ;;  %v6441_v49 = vcombine.low %v330_v37, %v334_v38  ;;  %v6443_v50 = vcombine.low %v331_v39, %v335_v40 }
  0xea   : > { %1952 = vmatpush1.bf16.msra.mxu0 %v6629_v44  ;;  %2034 = vmatpush1.bf16.msra.mxu1 %v6631_v45  ;;  %v6444_v44 = vcombine.high %v331_v39, %v335_v40  ;;  %v338_v45 = vld [vmem:[%s8164_s28 + $0xd0] sm:$0xff] }
  0xeb   : > { %1953 = vmatprep.subr.bf16.mxu0 %v6638_v46  ;;  %2035 = vmatprep.subr.bf16.mxu1 %v6640_v47  ;;  %v342_v46 = vld [vmem:[%s8164_s28 + $0xf0] sm:$0xff]  ;;  %v339_v47 = vld [vmem:[%s8164_s28 + $0xd8] sm:$0xff] }
  0xec   : > { %v6450_v51 = vcombine.high %v338_v45, %v342_v46  ;;  %v6449_v57 = vcombine.low %v338_v45, %v342_v46  ;;  %v6451_v58 = vcombine.low %v339_v47, %v343_v48 }
  0xee   : > { %1954 = vmatpush1.bf16.msra.mxu0 %v6637_v52  ;;  %2036 = vmatpush1.bf16.msra.mxu1 %v6639_v53  ;;  %v6452_v52 = vcombine.high %v339_v47, %v343_v48  ;;  %v346_v53 = vld [vmem:[%s8164_s28 + $0x110] sm:$0xff] }
  0xef   : > { %1955 = vmatprep.subr.bf16.mxu0 %v6646_v54  ;;  %2037 = vmatprep.subr.bf16.mxu1 %v6648_v55  ;;  %v350_v54 = vld [vmem:[%s8164_s28 + $0x130] sm:$0xff]  ;;  %v347_v55 = vld [vmem:[%s8164_s28 + $0x118] sm:$0xff] }
  0xf0   : > { %v6458_v59 = vcombine.high %v346_v53, %v350_v54  ;;  %v6457_v2 = vcombine.low %v346_v53, %v350_v54  ;;  %v6459_v3 = vcombine.low %v347_v55, %v351_v56 }
  0xf2   : > { %1956 = vmatpush1.bf16.msra.mxu0 %v6645_v60  ;;  %2038 = vmatpush1.bf16.msra.mxu1 %v6647_v61  ;;  %v6460_v60 = vcombine.high %v347_v55, %v351_v56  ;;  %v354_v61 = vld [vmem:[%s8164_s28 + $0x150] sm:$0xff] }
  0xf3   : > { %1957 = vmatprep.subr.bf16.mxu0 %v6654_v62  ;;  %2039 = vmatprep.subr.bf16.mxu1 %v6656_v63  ;;  %v358_v62 = vld [vmem:[%s8164_s28 + $0x170] sm:$0xff]  ;;  %v355_v63 = vld [vmem:[%s8164_s28 + $0x158] sm:$0xff] }
  0xf4   : > { %v6466_v4 = vcombine.high %v354_v61, %v358_v62  ;;  %v6465_v10 = vcombine.low %v354_v61, %v358_v62  ;;  %v6467_v11 = vcombine.low %v355_v63, %v359_v0 }
  0xf6   : > { %1958 = vmatpush1.bf16.msra.mxu0 %v6653_v5  ;;  %2040 = vmatpush1.bf16.msra.mxu1 %v6655_v6  ;;  %v6468_v5 = vcombine.high %v355_v63, %v359_v0  ;;  %v362_v6 = vld [vmem:[%s8164_s28 + $0x190] sm:$0xff] }
  0xf7   : > { %1959 = vmatprep.subr.bf16.mxu0 %v6662_v7  ;;  %2041 = vmatprep.subr.bf16.mxu1 %v6664_v8  ;;  %v366_v7 = vld [vmem:[%s8164_s28 + $0x1b0] sm:$0xff]  ;;  %v363_v8 = vld [vmem:[%s8164_s28 + $0x198] sm:$0xff] }
  0xf8   : > { %v6474_v12 = vcombine.high %v362_v6, %v366_v7  ;;  %v6473_v18 = vcombine.low %v362_v6, %v366_v7  ;;  %v6475_v19 = vcombine.low %v363_v8, %v367_v9 }
  0xfa   : > { %1960 = vmatpush1.bf16.msra.mxu0 %v6661_v13  ;;  %2042 = vmatpush1.bf16.msra.mxu1 %v6663_v14  ;;  %v6476_v13 = vcombine.high %v363_v8, %v367_v9  ;;  %v370_v14 = vld [vmem:[%s8164_s28 + $0x1d0] sm:$0xff] }
  0xfb   : > { %1961 = vmatprep.subr.bf16.mxu0 %v6670_v15  ;;  %2043 = vmatprep.subr.bf16.mxu1 %v6672_v16  ;;  %v374_v15 = vld [vmem:[%s8164_s28 + $0x1f0] sm:$0xff]  ;;  %v371_v16 = vld [vmem:[%s8164_s28 + $0x1d8] sm:$0xff] }
  0xfc   : > { %v6482_v21 = vcombine.high %v370_v14, %v374_v15  ;;  %v6481_v27 = vcombine.low %v370_v14, %v374_v15  ;;  %v6483_v28 = vcombine.low %v371_v16, %v375_v17 }
  0xfe   : > { %1962 = vmatpush1.bf16.msra.mxu0 %v6669_v22  ;;  %2044 = vmatpush1.bf16.msra.mxu1 %v6671_v24  ;;  %v6484_v22 = vcombine.high %v371_v16, %v375_v17  ;;  %v382_v24 = vld [vmem:[%s8164_s28 + $0x230] sm:$0xff] }
  0xff   : > { %2054 = vmatprep.subr.bf16.mxu0 %v6426_v25  ;;  %2136 = vmatprep.subr.bf16.mxu1 %v6428_v26  ;;  %v379_v25 = vld [vmem:[%s8164_s28 + $0x218] sm:$0xff]  ;;  %v6490_v31 = vcombine.high %v378_v23, %v382_v24  ;;  %v6489_v37 = vcombine.low %v378_v23, %v382_v24 }
 0x100   : > { %v383_v26 = vld [vmem:[%s8164_s28 + $0x238] sm:$0xff] }
 0x101   : > { %1964 = vmatmul.mubr.bf16.vlgmr.msra.gmra.mrb[0].mxu0 %v8339_v29  ;;  %2046 = vmatmul.mubr.bf16.vlgmr.msra.gmra.mrb[0].mxu1 %v8339_v29  ;;  %v6492_v32 = vcombine.high %v379_v25, %v383_v26  ;;  %v6491_v38 = vcombine.low %v379_v25, %v383_v26 }
 0x102   : > { %2055 = vmatpush1.bf16.msra.mxu0 %v6425_v33  ;;  %2137 = vmatpush1.bf16.msra.mxu1 %v6427_v34  ;;  %v386_v33 = vld [vmem:[%s8164_s28 + $0x250] sm:$0xff] }
 0x103   : > { %2056 = vmatprep.subr.bf16.mxu0 %v6434_v35  ;;  %2138 = vmatprep.subr.bf16.mxu1 %v6436_v36  ;;  %v390_v34 = vld [vmem:[%s8164_s28 + $0x270] sm:$0xff]  ;;  %v387_v35 = vld [vmem:[%s8164_s28 + $0x258] sm:$0xff] }
 0x104   : > { %2086 = vmatprep.mubr.bf16.mxu0 %v8223_v1  ;;  %2168 = vmatprep.mubr.bf16.mxu1 %v8223_v1  ;;  %v391_v36 = vld [vmem:[%s8164_s28 + $0x278] sm:$0xff]  ;;  %v6498_v39 = vcombine.high %v386_v33, %v390_v34  ;;  %v6497_v45 = vcombine.low %v386_v33, %v390_v34 }
 0x105   : > { %v6500_v40 = vcombine.high %v387_v35, %v391_v36  ;;  %v6499_v46 = vcombine.low %v387_v35, %v391_v36 }
 0x106   : > { %2057 = vmatpush1.bf16.msra.mxu0 %v6433_v41  ;;  %2139 = vmatpush1.bf16.msra.mxu1 %v6435_v42  ;;  %v394_v41 = vld [vmem:[%s8164_s28 + $0x290] sm:$0xff] }
 0x107   : > { %2058 = vmatprep.subr.bf16.mxu0 %v6442_v43  ;;  %2140 = vmatprep.subr.bf16.mxu1 %v6444_v44  ;;  %v398_v42 = vld [vmem:[%s8164_s28 + $0x2b0] sm:$0xff]  ;;  %v395_v43 = vld [vmem:[%s8164_s28 + $0x298] sm:$0xff] }
 0x108   : > { %v399_v44 = vld [vmem:[%s8164_s28 + $0x2b8] sm:$0xff]  ;;  %v6506_v47 = vcombine.high %v394_v41, %v398_v42  ;;  %v6505_v53 = vcombine.low %v394_v41, %v398_v42 }
 0x109   : > { %v6508_v48 = vcombine.high %v395_v43, %v399_v44  ;;  %v6507_v54 = vcombine.low %v395_v43, %v399_v44 }
 0x10a   : > { %2059 = vmatpush1.bf16.msra.mxu0 %v6441_v49  ;;  %2141 = vmatpush1.bf16.msra.mxu1 %v6443_v50  ;;  %v402_v49 = vld [vmem:[%s8164_s28 + $0x2d0] sm:$0xff] }
 0x10b   : > { %2060 = vmatprep.subr.bf16.mxu0 %v6450_v51  ;;  %2142 = vmatprep.subr.bf16.mxu1 %v6452_v52  ;;  %v406_v50 = vld [vmem:[%s8164_s28 + $0x2f0] sm:$0xff]  ;;  %v403_v51 = vld [vmem:[%s8164_s28 + $0x2d8] sm:$0xff] }
 0x10c   : > { %v407_v52 = vld [vmem:[%s8164_s28 + $0x2f8] sm:$0xff]  ;;  %v6514_v55 = vcombine.high %v402_v49, %v406_v50  ;;  %v6513_v61 = vcombine.low %v402_v49, %v406_v50 }
 0x10d   : > { %v6516_v56 = vcombine.high %v403_v51, %v407_v52  ;;  %v6515_v62 = vcombine.low %v403_v51, %v407_v52 }
 0x10e   : > { %2061 = vmatpush1.bf16.msra.mxu0 %v6449_v57  ;;  %2143 = vmatpush1.bf16.msra.mxu1 %v6451_v58  ;;  %v410_v57 = vld [vmem:[%s8164_s28 + $0x310] sm:$0xff] }
 0x10f   : > { %2062 = vmatprep.subr.bf16.mxu0 %v6458_v59  ;;  %2144 = vmatprep.subr.bf16.mxu1 %v6460_v60  ;;  %v414_v58 = vld [vmem:[%s8164_s28 + $0x330] sm:$0xff]  ;;  %v411_v59 = vld [vmem:[%s8164_s28 + $0x318] sm:$0xff] }
 0x110   : > { %v415_v60 = vld [vmem:[%s8164_s28 + $0x338] sm:$0xff]  ;;  %v6522_v63 = vcombine.high %v410_v57, %v414_v58  ;;  %v6521_v6 = vcombine.low %v410_v57, %v414_v58 }
 0x111   : > { %v6524_v0 = vcombine.high %v411_v59, %v415_v60  ;;  %v6523_v7 = vcombine.low %v411_v59, %v415_v60 }
 0x112   : > { %2063 = vmatpush1.bf16.msra.mxu0 %v6457_v2  ;;  %2145 = vmatpush1.bf16.msra.mxu1 %v6459_v3  ;;  %v418_v2 = vld [vmem:[%s8164_s28 + $0x350] sm:$0xff] }
 0x113   : > { %2064 = vmatprep.subr.bf16.mxu0 %v6466_v4  ;;  %2146 = vmatprep.subr.bf16.mxu1 %v6468_v5  ;;  %v422_v3 = vld [vmem:[%s8164_s28 + $0x370] sm:$0xff]  ;;  %v419_v4 = vld [vmem:[%s8164_s28 + $0x358] sm:$0xff] }
 0x114   : > { %v423_v5 = vld [vmem:[%s8164_s28 + $0x378] sm:$0xff]  ;;  %v6530_v8 = vcombine.high %v418_v2, %v422_v3  ;;  %v6529_v14 = vcombine.low %v418_v2, %v422_v3 }
 0x115   : > { %v6532_v9 = vcombine.high %v419_v4, %v423_v5  ;;  %v6531_v15 = vcombine.low %v419_v4, %v423_v5 }
 0x116   : > { %2065 = vmatpush1.bf16.msra.mxu0 %v6465_v10  ;;  %2147 = vmatpush1.bf16.msra.mxu1 %v6467_v11  ;;  %v426_v10 = vld [vmem:[%s8164_s28 + $0x390] sm:$0xff] }
 0x117   : > { %2066 = vmatprep.subr.bf16.mxu0 %v6474_v12  ;;  %2148 = vmatprep.subr.bf16.mxu1 %v6476_v13  ;;  %v430_v11 = vld [vmem:[%s8164_s28 + $0x3b0] sm:$0xff]  ;;  %v427_v12 = vld [vmem:[%s8164_s28 + $0x398] sm:$0xff] }
 0x118   : > { %v431_v13 = vld [vmem:[%s8164_s28 + $0x3b8] sm:$0xff]  ;;  %v6538_v16 = vcombine.high %v426_v10, %v430_v11  ;;  %v6537_v23 = vcombine.low %v426_v10, %v430_v11 }
 0x119   : > { %v6540_v17 = vcombine.high %v427_v12, %v431_v13  ;;  %v6539_v24 = vcombine.low %v427_v12, %v431_v13 }
 0x11a   : > { %2067 = vmatpush1.bf16.msra.mxu0 %v6473_v18  ;;  %2149 = vmatpush1.bf16.msra.mxu1 %v6475_v19  ;;  %v434_v18 = vld [vmem:[%s8164_s28 + $0x3d0] sm:$0xff] }
 0x11b   : > { %2068 = vmatprep.subr.bf16.mxu0 %v6482_v21  ;;  %2150 = vmatprep.subr.bf16.mxu1 %v6484_v22  ;;  %v438_v19 = vld [vmem:[%s8164_s28 + $0x3f0] sm:$0xff]  ;;  %v435_v21 = vld [vmem:[%s8164_s28 + $0x3d8] sm:$0xff] }
 0x11c   : > { %v439_v22 = vld [vmem:[%s8164_s28 + $0x3f8] sm:$0xff]  ;;  %v6546_v25 = vcombine.high %v434_v18, %v438_v19  ;;  %v6545_v33 = vcombine.low %v434_v18, %v438_v19 }
 0x11d   : > { %v6548_v26 = vcombine.high %v435_v21, %v439_v22  ;;  %v6547_v34 = vcombine.low %v435_v21, %v439_v22 }
 0x11e   : > { %2069 = vmatpush1.bf16.msra.mxu0 %v6481_v27  ;;  %2151 = vmatpush1.bf16.msra.mxu1 %v6483_v28  ;;  %v442_v27 = vld [vmem:[%s8164_s28 + $0x410] sm:$0xff] }
 0x11f   : > { %2070 = vmatprep.subr.bf16.mxu0 %v6490_v31  ;;  %2152 = vmatprep.subr.bf16.mxu1 %v6492_v32  ;;  %v446_v28 = vld [vmem:[%s8164_s28 + $0x430] sm:$0xff]  ;;  %v443_v31 = vld [vmem:[%s8164_s28 + $0x418] sm:$0xff] }
 0x120   : > { %v447_v32 = vld [vmem:[%s8164_s28 + $0x438] sm:$0xff]  ;;  %v6554_v35 = vcombine.high %v442_v27, %v446_v28  ;;  %v6553_v41 = vcombine.low %v442_v27, %v446_v28 }
 0x121   : > { %v6556_v36 = vcombine.high %v443_v31, %v447_v32  ;;  %v6555_v42 = vcombine.low %v443_v31, %v447_v32 }
 0x122   : > { %2071 = vmatpush1.bf16.msra.mxu0 %v6489_v37  ;;  %2153 = vmatpush1.bf16.msra.mxu1 %v6491_v38  ;;  %v450_v37 = vld [vmem:[%s8164_s28 + $0x450] sm:$0xff] }
 0x123   : > { %2072 = vmatprep.subr.bf16.mxu0 %v6498_v39  ;;  %2154 = vmatprep.subr.bf16.mxu1 %v6500_v40  ;;  %v454_v38 = vld [vmem:[%s8164_s28 + $0x470] sm:$0xff]  ;;  %v451_v39 = vld [vmem:[%s8164_s28 + $0x458] sm:$0xff] }
 0x124   : > { %v455_v40 = vld [vmem:[%s8164_s28 + $0x478] sm:$0xff]  ;;  %v6562_v43 = vcombine.high %v450_v37, %v454_v38  ;;  %v6561_v49 = vcombine.low %v450_v37, %v454_v38 }
 0x125   : > { %v6564_v44 = vcombine.high %v451_v39, %v455_v40  ;;  %v6563_v50 = vcombine.low %v451_v39, %v455_v40 }
 0x126   : > { %2073 = vmatpush1.bf16.msra.mxu0 %v6497_v45  ;;  %2155 = vmatpush1.bf16.msra.mxu1 %v6499_v46  ;;  %v458_v45 = vld [vmem:[%s8164_s28 + $0x490] sm:$0xff] }
 0x127   : > { %2074 = vmatprep.subr.bf16.mxu0 %v6506_v47  ;;  %2156 = vmatprep.subr.bf16.mxu1 %v6508_v48  ;;  %v462_v46 = vld [vmem:[%s8164_s28 + $0x4b0] sm:$0xff]  ;;  %v459_v47 = vld [vmem:[%s8164_s28 + $0x498] sm:$0xff] }
 0x128   : > { %v463_v48 = vld [vmem:[%s8164_s28 + $0x4b8] sm:$0xff]  ;;  %v6570_v51 = vcombine.high %v458_v45, %v462_v46  ;;  %v6569_v57 = vcombine.low %v458_v45, %v462_v46 }
 0x129   : > { %v6572_v52 = vcombine.high %v459_v47, %v463_v48  ;;  %v6571_v58 = vcombine.low %v459_v47, %v463_v48 }
 0x12a   : > { %2075 = vmatpush1.bf16.msra.mxu0 %v6505_v53  ;;  %2157 = vmatpush1.bf16.msra.mxu1 %v6507_v54  ;;  %v466_v53 = vld [vmem:[%s8164_s28 + $0x4d0] sm:$0xff] }
 0x12b   : > { %2076 = vmatprep.subr.bf16.mxu0 %v6514_v55  ;;  %2158 = vmatprep.subr.bf16.mxu1 %v6516_v56  ;;  %v470_v54 = vld [vmem:[%s8164_s28 + $0x4f0] sm:$0xff]  ;;  %v467_v55 = vld [vmem:[%s8164_s28 + $0x4d8] sm:$0xff] }
 0x12c   : > { %v471_v56 = vld [vmem:[%s8164_s28 + $0x4f8] sm:$0xff]  ;;  %v6578_v59 = vcombine.high %v466_v53, %v470_v54  ;;  %v6577_v2 = vcombine.low %v466_v53, %v470_v54 }
 0x12d   : > { %v6580_v60 = vcombine.high %v467_v55, %v471_v56  ;;  %v6579_v3 = vcombine.low %v467_v55, %v471_v56 }
 0x12e   : > { %2077 = vmatpush1.bf16.msra.mxu0 %v6513_v61  ;;  %2159 = vmatpush1.bf16.msra.mxu1 %v6515_v62  ;;  %v474_v61 = vld [vmem:[%s8164_s28 + $0x510] sm:$0xff] }
 0x12f   : > { %2078 = vmatprep.subr.bf16.mxu0 %v6522_v63  ;;  %2160 = vmatprep.subr.bf16.mxu1 %v6524_v0  ;;  %v478_v62 = vld [vmem:[%s8164_s28 + $0x530] sm:$0xff]  ;;  %v475_v63 = vld [vmem:[%s8164_s28 + $0x518] sm:$0xff] }
 0x130   : > { %v479_v0 = vld [vmem:[%s8164_s28 + $0x538] sm:$0xff]  ;;  %v6586_v4 = vcombine.high %v474_v61, %v478_v62  ;;  %v6585_v10 = vcombine.low %v474_v61, %v478_v62 }
 0x131   : > { %v6588_v5 = vcombine.high %v475_v63, %v479_v0  ;;  %v6587_v11 = vcombine.low %v475_v63, %v479_v0 }
 0x132   : > { %2079 = vmatpush1.bf16.msra.mxu0 %v6521_v6  ;;  %2161 = vmatpush1.bf16.msra.mxu1 %v6523_v7  ;;  %v482_v6 = vld [vmem:[%s8164_s28 + $0x550] sm:$0xff] }
 0x133   : > { %2080 = vmatprep.subr.bf16.mxu0 %v6530_v8  ;;  %2162 = vmatprep.subr.bf16.mxu1 %v6532_v9  ;;  %v486_v7 = vld [vmem:[%s8164_s28 + $0x570] sm:$0xff]  ;;  %v483_v8 = vld [vmem:[%s8164_s28 + $0x558] sm:$0xff] }
 0x134   : > { %v487_v9 = vld [vmem:[%s8164_s28 + $0x578] sm:$0xff]  ;;  %v6594_v12 = vcombine.high %v482_v6, %v486_v7  ;;  %v6593_v18 = vcombine.low %v482_v6, %v486_v7 }
 0x135   : > { %v6596_v13 = vcombine.high %v483_v8, %v487_v9  ;;  %v6595_v19 = vcombine.low %v483_v8, %v487_v9 }
 0x136   : > { %2081 = vmatpush1.bf16.msra.mxu0 %v6529_v14  ;;  %2163 = vmatpush1.bf16.msra.mxu1 %v6531_v15  ;;  %v490_v14 = vld [vmem:[%s8164_s28 + $0x590] sm:$0xff] }
 0x137   : > { %2082 = vmatprep.subr.bf16.mxu0 %v6538_v16  ;;  %2164 = vmatprep.subr.bf16.mxu1 %v6540_v17  ;;  %v494_v15 = vld [vmem:[%s8164_s28 + $0x5b0] sm:$0xff]  ;;  %v491_v16 = vld [vmem:[%s8164_s28 + $0x598] sm:$0xff] }
 0x138   : > { %v495_v17 = vld [vmem:[%s8164_s28 + $0x5b8] sm:$0xff]  ;;  %v6602_v21 = vcombine.high %v490_v14, %v494_v15  ;;  %v6601_v27 = vcombine.low %v490_v14, %v494_v15 }
 0x139   : > { %v6604_v22 = vcombine.high %v491_v16, %v495_v17  ;;  %v6603_v28 = vcombine.low %v491_v16, %v495_v17 }
 0x13a   : > { %2083 = vmatpush1.bf16.msra.mxu0 %v6537_v23  ;;  %2165 = vmatpush1.bf16.msra.mxu1 %v6539_v24  ;;  %v498_v23 = vld [vmem:[%s8164_s28 + $0x5d0] sm:$0xff] }
 0x13b   : > { %2084 = vmatprep.subr.bf16.mxu0 %v6546_v25  ;;  %2166 = vmatprep.subr.bf16.mxu1 %v6548_v26  ;;  %v502_v24 = vld [vmem:[%s8164_s28 + $0x5f0] sm:$0xff]  ;;  %v499_v25 = vld [vmem:[%s8164_s28 + $0x5d8] sm:$0xff] }
 0x13c   : > { %v503_v26 = vld [vmem:[%s8164_s28 + $0x5f8] sm:$0xff]  ;;  %v6610_v31 = vcombine.high %v498_v23, %v502_v24  ;;  %v6609_v37 = vcombine.low %v498_v23, %v502_v24 }
 0x13d   : > { %v6612_v32 = vcombine.high %v499_v25, %v503_v26  ;;  %v6611_v38 = vcombine.low %v499_v25, %v503_v26 }
 0x13e   : > { %2085 = vmatpush1.bf16.msra.mxu0 %v6545_v33  ;;  %2167 = vmatpush1.bf16.msra.mxu1 %v6547_v34  ;;  %v506_v33 = vld [vmem:[%s8164_s28 + $0x610] sm:$0xff] }
 0x13f   : > { %2095 = vmatprep.subr.bf16.mxu0 %v6554_v35  ;;  %2177 = vmatprep.subr.bf16.mxu1 %v6556_v36  ;;  %v510_v34 = vld [vmem:[%s8164_s28 + $0x630] sm:$0xff]  ;;  %v507_v35 = vld [vmem:[%s8164_s28 + $0x618] sm:$0xff] }
 0x140   : > { %v511_v36 = vld [vmem:[%s8164_s28 + $0x638] sm:$0xff]  ;;  %v6618_v39 = vcombine.high %v506_v33, %v510_v34  ;;  %v6617_v45 = vcombine.low %v506_v33, %v510_v34 }
 0x141   : > { %2087 = vmatmul.mubr.bf16.vlgmr.msra.gmra.mrb[4].mxu0 %v8267_v20  ;;  %2169 = vmatmul.mubr.bf16.vlgmr.msra.gmra.mrb[4].mxu1 %v8267_v20  ;;  %v6620_v40 = vcombine.high %v507_v35, %v511_v36  ;;  %v6619_v46 = vcombine.low %v507_v35, %v511_v36 }
 0x142   : > { %2096 = vmatpush1.bf16.msra.mxu0 %v6553_v41  ;;  %2178 = vmatpush1.bf16.msra.mxu1 %v6555_v42  ;;  %v514_v41 = vld [vmem:[%s8164_s28 + $0x650] sm:$0xff] }
 0x143   : > { %2097 = vmatprep.subr.bf16.mxu0 %v6562_v43  ;;  %2179 = vmatprep.subr.bf16.mxu1 %v6564_v44  ;;  %v518_v42 = vld [vmem:[%s8164_s28 + $0x670] sm:$0xff]  ;;  %v515_v43 = vld [vmem:[%s8164_s28 + $0x658] sm:$0xff] }
 0x144   : > { %2127 = vmatprep.mubr.bf16.mxu0 %v8273_v30  ;;  %2209 = vmatprep.mubr.bf16.mxu1 %v8273_v30  ;;  %v519_v44 = vld [vmem:[%s8164_s28 + $0x678] sm:$0xff]  ;;  %v6626_v47 = vcombine.high %v514_v41, %v518_v42  ;;  %v6625_v53 = vcombine.low %v514_v41, %v518_v42  ;;  %v568_v42 = vld [vmem:[%s8177_s21] sm:$0xff] }
 0x145   : > { %v6628_v48 = vcombine.high %v515_v43, %v519_v44  ;;  %v6627_v54 = vcombine.low %v515_v43, %v519_v44 }
 0x146   : > { %2098 = vmatpush1.bf16.msra.mxu0 %v6561_v49  ;;  %2180 = vmatpush1.bf16.msra.mxu1 %v6563_v50  ;;  %v522_v49 = vld [vmem:[%s8164_s28 + $0x690] sm:$0xff] }
 0x147   : > { %2099 = vmatprep.subr.bf16.mxu0 %v6570_v51  ;;  %2181 = vmatprep.subr.bf16.mxu1 %v6572_v52  ;;  %v526_v50 = vld [vmem:[%s8164_s28 + $0x6b0] sm:$0xff]  ;;  %v523_v51 = vld [vmem:[%s8164_s28 + $0x698] sm:$0xff] }
 0x148   : > { %v527_v52 = vld [vmem:[%s8164_s28 + $0x6b8] sm:$0xff]  ;;  %v6634_v55 = vcombine.high %v522_v49, %v526_v50  ;;  %v6633_v61 = vcombine.low %v522_v49, %v526_v50 }
 0x149   : > { %v6636_v56 = vcombine.high %v523_v51, %v527_v52  ;;  %v6635_v62 = vcombine.low %v523_v51, %v527_v52 }
 0x14a   : > { %2100 = vmatpush1.bf16.msra.mxu0 %v6569_v57  ;;  %2182 = vmatpush1.bf16.msra.mxu1 %v6571_v58  ;;  %v530_v57 = vld [vmem:[%s8164_s28 + $0x6d0] sm:$0xff] }
 0x14b   : > { %2101 = vmatprep.subr.bf16.mxu0 %v6578_v59  ;;  %2183 = vmatprep.subr.bf16.mxu1 %v6580_v60  ;;  %v534_v58 = vld [vmem:[%s8164_s28 + $0x6f0] sm:$0xff]  ;;  %v531_v59 = vld [vmem:[%s8164_s28 + $0x6d8] sm:$0xff] }
 0x14c   : > { %v535_v60 = vld [vmem:[%s8164_s28 + $0x6f8] sm:$0xff]  ;;  %v6642_v63 = vcombine.high %v530_v57, %v534_v58  ;;  %v6641_v6 = vcombine.low %v530_v57, %v534_v58 }
 0x14d   : > { %v6644_v0 = vcombine.high %v531_v59, %v535_v60  ;;  %v6643_v7 = vcombine.low %v531_v59, %v535_v60 }
 0x14e   : > { %2102 = vmatpush1.bf16.msra.mxu0 %v6577_v2  ;;  %2184 = vmatpush1.bf16.msra.mxu1 %v6579_v3  ;;  %v538_v2 = vld [vmem:[%s8164_s28 + $0x710] sm:$0xff] }
 0x14f   : > { %2103 = vmatprep.subr.bf16.mxu0 %v6586_v4  ;;  %2185 = vmatprep.subr.bf16.mxu1 %v6588_v5  ;;  %v542_v3 = vld [vmem:[%s8164_s28 + $0x730] sm:$0xff]  ;;  %v539_v4 = vld [vmem:[%s8164_s28 + $0x718] sm:$0xff] }
 0x150   : > { %v543_v5 = vld [vmem:[%s8164_s28 + $0x738] sm:$0xff]  ;;  %v6650_v8 = vcombine.high %v538_v2, %v542_v3  ;;  %v6649_v14 = vcombine.low %v538_v2, %v542_v3 }
 0x151   : > { %v6652_v9 = vcombine.high %v539_v4, %v543_v5  ;;  %v6651_v15 = vcombine.low %v539_v4, %v543_v5 }
 0x152   : > { %2104 = vmatpush1.bf16.msra.mxu0 %v6585_v10  ;;  %2186 = vmatpush1.bf16.msra.mxu1 %v6587_v11  ;;  %v546_v10 = vld [vmem:[%s8164_s28 + $0x750] sm:$0xff] }
 0x153   : > { %2105 = vmatprep.subr.bf16.mxu0 %v6594_v12  ;;  %2187 = vmatprep.subr.bf16.mxu1 %v6596_v13  ;;  %v550_v11 = vld [vmem:[%s8164_s28 + $0x770] sm:$0xff]  ;;  %v547_v12 = vld [vmem:[%s8164_s28 + $0x758] sm:$0xff] }
 0x154   : > { %v551_v13 = vld [vmem:[%s8164_s28 + $0x778] sm:$0xff]  ;;  %v6658_v16 = vcombine.high %v546_v10, %v550_v11  ;;  %v6657_v23 = vcombine.low %v546_v10, %v550_v11 }
 0x155   : > { %v6660_v17 = vcombine.high %v547_v12, %v551_v13  ;;  %v6659_v24 = vcombine.low %v547_v12, %v551_v13 }
 0x156   : > { %2106 = vmatpush1.bf16.msra.mxu0 %v6593_v18  ;;  %2188 = vmatpush1.bf16.msra.mxu1 %v6595_v19  ;;  %v554_v18 = vld [vmem:[%s8164_s28 + $0x790] sm:$0xff] }
 0x157   : > { %2107 = vmatprep.subr.bf16.mxu0 %v6602_v21  ;;  %2189 = vmatprep.subr.bf16.mxu1 %v6604_v22  ;;  %v558_v19 = vld [vmem:[%s8164_s28 + $0x7b0] sm:$0xff]  ;;  %v555_v21 = vld [vmem:[%s8164_s28 + $0x798] sm:$0xff] }
 0x158   : > { %v559_v22 = vld [vmem:[%s8164_s28 + $0x7b8] sm:$0xff]  ;;  %v6666_v25 = vcombine.high %v554_v18, %v558_v19  ;;  %v6665_v33 = vcombine.low %v554_v18, %v558_v19  ;;  %v8503_v19 = vmov 0.0  }
 0x159   : > { %v6668_v26 = vcombine.high %v555_v21, %v559_v22  ;;  %v6667_v34 = vcombine.low %v555_v21, %v559_v22  ;;  %v8505_v21 = vmov 0.0  }
 0x15a   : > { %2108 = vmatpush1.bf16.msra.mxu0 %v6601_v27  ;;  %2190 = vmatpush1.bf16.msra.mxu1 %v6603_v28  ;;  %v562_v27 = vld [vmem:[%s8164_s28 + $0x7d0] sm:$0xff] }
 0x15b   : > { %2109 = vmatprep.subr.bf16.mxu0 %v6610_v31  ;;  %2191 = vmatprep.subr.bf16.mxu1 %v6612_v32  ;;  %v566_v28 = vld [vmem:[%s8164_s28 + $0x7f0] sm:$0xff]  ;;  %v563_v31 = vld [vmem:[%s8164_s28 + $0x7d8] sm:$0xff] }
 0x15c   : > { %v567_v32 = vld [vmem:[%s8164_s28 + $0x7f8] sm:$0xff]  ;;  %v6674_v35 = vcombine.high %v562_v27, %v566_v28 }
 0x15d   : > { %v6676_v36 = vcombine.high %v563_v31, %v567_v32 }
 0x15e   : > { %2110 = vmatpush1.bf16.msra.mxu0 %v6609_v37  ;;  %2192 = vmatpush1.bf16.msra.mxu1 %v6611_v38  ;;  %v6673_v37 = vcombine.low %v562_v27, %v566_v28  ;;  %v6675_v38 = vcombine.low %v563_v31, %v567_v32 }
 0x15f   : > { %2111 = vmatprep.subr.bf16.mxu0 %v6618_v39  ;;  %2193 = vmatprep.subr.bf16.mxu1 %v6620_v40  ;;  %v570_v39 = vlaneseq }
 0x161   : > { %v8474_v40 = vshrl.u32 %v570_v39, 7 }
 0x162   : > { %2112 = vmatpush1.bf16.msra.mxu0 %v6617_v45  ;;  %2194 = vmatpush1.bf16.msra.mxu1 %v6619_v46 }
 0x163   : > { %2113 = vmatprep.subr.bf16.mxu0 %v6626_v47  ;;  %2195 = vmatprep.subr.bf16.mxu1 %v6628_v48  ;;  %v8477_v41 = vsub.s32 0, %v8474_v40  ;;  %v580_v43 = vsub.s32 2, %v8474_v40  ;;  %v8482_v44 = vsub.s32 1, %v8474_v40  ;;  %v584_v45 = vsub.s32 3, %v8474_v40 }
 0x164   : > { %v600_v2 = vsub.s32 7, %v8474_v40 }
 0x165   : > { %v573_v46 = vrot.slane %v568_v42, %v8477_v41  ;;  %v581_v47 = vrot.slane %v568_v42, %v580_v43  ;;  %v577_v48 = vrot.slane %v568_v42, %v8482_v44  ;;  %v585_v49 = vrot.slane %v568_v42, %v584_v45 }
 0x166   : > { %2114 = vmatpush1.bf16.msra.mxu0 %v6625_v53  ;;  %2196 = vmatpush1.bf16.msra.mxu1 %v6627_v54 }
 0x167   : > { %2115 = vmatprep.subr.bf16.mxu0 %v6634_v55  ;;  %2197 = vmatprep.subr.bf16.mxu1 %v6636_v56 }
 0x16a   : > { %2116 = vmatpush1.bf16.msra.mxu0 %v6633_v61  ;;  %2198 = vmatpush1.bf16.msra.mxu1 %v6635_v62  ;;  %v588_v62 = vsub.s32 4, %v8474_v40 }
 0x16b   : > { %2117 = vmatprep.subr.bf16.mxu0 %v6642_v63  ;;  %2199 = vmatprep.subr.bf16.mxu1 %v6644_v0  ;;  %v596_v63 = vsub.s32 6, %v8474_v40  ;;  %v592_v0 = vsub.s32 5, %v8474_v40 }
 0x16c   : > { %v589_v3 = vrot.slane %v568_v42, %v588_v62 }
 0x16d   : > { %v597_v4 = vrot.slane %v568_v42, %v596_v63  ;;  %v593_v5 = vrot.slane %v568_v42, %v592_v0 }
 0x16e   : > { %2118 = vmatpush1.bf16.msra.mxu0 %v6641_v6  ;;  %2200 = vmatpush1.bf16.msra.mxu1 %v6643_v7  ;;  %v601_v6 = vrot.slane %v568_v42, %v600_v2 }
 0x16f   : > { %2119 = vmatprep.subr.bf16.mxu0 %v6650_v8  ;;  %2201 = vmatprep.subr.bf16.mxu1 %v6652_v9 }
 0x172   : > { %2120 = vmatpush1.bf16.msra.mxu0 %v6649_v14  ;;  %2202 = vmatpush1.bf16.msra.mxu1 %v6651_v15 }
 0x173   : > { %2121 = vmatprep.subr.bf16.mxu0 %v6658_v16  ;;  %2203 = vmatprep.subr.bf16.mxu1 %v6660_v17 }
 0x176   : > { %2122 = vmatpush1.bf16.msra.mxu0 %v6657_v23  ;;  %2204 = vmatpush1.bf16.msra.mxu1 %v6659_v24 }
 0x177   : > { %2123 = vmatprep.subr.bf16.mxu0 %v6666_v25  ;;  %2205 = vmatprep.subr.bf16.mxu1 %v6668_v26 }
 0x17a   : > { %2124 = vmatpush1.bf16.msra.mxu0 %v6665_v33  ;;  %2206 = vmatpush1.bf16.msra.mxu1 %v6667_v34 }
 0x17b   : > { %2125 = vmatprep.subr.bf16.mxu0 %v6674_v35  ;;  %2207 = vmatprep.subr.bf16.mxu1 %v6676_v36 }
 0x17e   : > { %2126 = vmatpush1.bf16.msra.mxu0 %v6673_v37  ;;  %2208 = vmatpush1.bf16.msra.mxu1 %v6675_v38 }
 0x181   : > { %2128 = vmatmul.mubr.bf16.vlgmr.msra.gmra.mrb[4].mxu0 %v8339_v29  ;;  %2210 = vmatmul.mubr.bf16.vlgmr.msra.gmra.mrb[4].mxu1 %v8339_v29 }
 0x1d4   : > { %v1965_v50 = vpop.f32.mrb[0].mxu0  ;;  %v2047_v52 = vpop.f32.mrb[0].mxu1 }
 0x1d5   : > { %v7599_v51 = vadd.f32 %v1965_v50, %v573_v46  ;;  %v1967_v53 = vpop.f32.mrb[1].mxu0  ;;  %v7601_v54 = vadd.f32 %v2047_v52, %v581_v47  ;;  %v2049_v56 = vpop.f32.mrb[1].mxu1 }
 0x1d6   : > { %v7600_v55 = vadd.f32 %v1967_v53, %v577_v48  ;;  %v1969_v57 = vpop.f32.mrb[2].mxu0  ;;  %v7602_v58 = vadd.f32 %v2049_v56, %v585_v49  ;;  %v2051_v59 = vpop.f32.mrb[2].mxu1 }
 0x1d7   : > { %2218 = vst [vmem:[#allocation4] sm:$0xff] %v7599_v51  ;;  %v1970_v60 = vpop.f32.mrb[3].mxu0  ;;  %2220 = vst [vmem:[#allocation4 + $0x10] sm:$0xff] %v7601_v54  ;;  %v2052_v61 = vpop.f32.mrb[3].mxu1 }
 0x1d8   : > { %2219 = vst [vmem:[#allocation4 + $0x8] sm:$0xff] %v7600_v55  ;;  %2221 = vst [vmem:[#allocation4 + $0x18] sm:$0xff] %v7602_v58 }
 0x254   : > { %v2129_v7 = vpop.f32.mrb[4].mxu0  ;;  %v2211_v9 = vpop.f32.mrb[4].mxu1 }
 0x255   : > { %v7603_v8 = vadd.f32 %v2129_v7, %v589_v3  ;;  %v2131_v10 = vpop.f32.mrb[5].mxu0  ;;  %v7605_v11 = vadd.f32 %v2211_v9, %v597_v4  ;;  %v2213_v13 = vpop.f32.mrb[5].mxu1 }
 0x256   : > { %v7604_v12 = vadd.f32 %v2131_v10, %v593_v5  ;;  %v2133_v14 = vpop.f32.mrb[6].mxu0  ;;  %v7606_v15 = vadd.f32 %v2213_v13, %v601_v6  ;;  %v2215_v16 = vpop.f32.mrb[6].mxu1 }
 0x257   : > { %2222 = vst [vmem:[#allocation4 + $0x20] sm:$0xff] %v7603_v8  ;;  %v2134_v17 = vpop.f32.mrb[7].mxu0  ;;  %2224 = vst [vmem:[#allocation4 + $0x30] sm:$0xff] %v7605_v11  ;;  %v2216_v18 = vpop.f32.mrb[7].mxu1 }
 0x258   : > { %2223 = vst [vmem:[#allocation4 + $0x28] sm:$0xff] %v7604_v12  ;;  %2225 = vst [vmem:[#allocation4 + $0x38] sm:$0xff] %v7606_v15 }
 0x259 LB: >> { %v2258_v22 = vld [vmem:[%s8171_s13] sm:$0xff]  ;;  %v2259_v24 = vld [vmem:[%s8171_s13 + $0x8] sm:$0xff]  ;;  %v2253_v48 = vrot.slane %v7941_v21, %v8482_v44  ;;  %s2234_s27 = sshra.s32 %s7945_s29, 3  ;;  %s2237_s12 = sand.u32 7, %s7945_s29  ;;  %vm8683_vm0 = vcmp.lt.s32.totalorder %v570_v39, 256  ;;  %s7945_s29 = sphi %s8507_s29, %s2231_s29   ;;  %v7941_v21 = vphi %v8505_v21, %v3279_v21   ;;  %v7937_v19 = vphi %v8503_v19, %v3277_v19  }
 0x25a   : >> { %v2262_v23 = vld [vmem:[%s8171_s13 + $0x20] sm:$0xff]  ;;  %v2263_v26 = vld [vmem:[%s8171_s13 + $0x28] sm:$0xff]  ;;  %s7595_s11 = sshll.u32 %s2234_s27, 6  ;;  %s7596_s18 = sshll.u32 %s2234_s27, 5 }
 0x25b   : >> { %v6680_v25 = vcombine.high %v2258_v22, %v2262_v23  ;;  %v6679_v27 = vcombine.low %v2258_v22, %v2262_v23  ;;  %v2266_v28 = vld [vmem:[%s8171_s13 + $0x40] sm:$0xff]  ;;  %v6682_v32 = vcombine.high %v2259_v24, %v2263_v26  ;;  %v6681_v33 = vcombine.low %v2259_v24, %v2263_v26  ;;  %v2267_v35 = vld [vmem:[%s8171_s13 + $0x48] sm:$0xff]  ;;  %s2240_s14 = sadd.s32 %s7595_s11, %s2237_s12  ;;  %s3286_s26 = sadd.s32 %s7596_s18, %s2237_s12 }
 0x25c   : >> { %v2270_v31 = vld [vmem:[%s8171_s13 + $0x60] sm:$0xff]  ;;  %v2271_v36 = vld [vmem:[%s8171_s13 + $0x68] sm:$0xff]  ;;  %v8536_v57 = vpack.c.bf16 %v2253_v48, %v2253_v48  ;;  %s2241_s10 = scalar_lea.vmem [#allocation4], %s2240_s14  ;;  %s3287_s9 = scalar_lea.vmem [#allocation3], %s3286_s26 }
 0x25d   : >> { %v6688_v34 = vcombine.high %v2266_v28, %v2270_v31  ;;  %v2274_v37 = vld [vmem:[%s8171_s13 + $0x80] sm:$0xff]  ;;  %3026 = vmatprep.subr.bf16.mxu0 %v6680_v25  ;;  %v6690_v38 = vcombine.high %v2267_v35, %v2271_v36  ;;  %v2275_v46 = vld [vmem:[%s8171_s13 + $0x88] sm:$0xff]  ;;  %3067 = vmatprep.subr.bf16.mxu1 %v6682_v32  ;;  %v6687_v49 = vcombine.low %v2266_v28, %v2270_v31  ;;  %s2231_s29 = sadd.s32 1, %s7945_s29  }
 0x25e   : >> { %v2278_v42 = vld [vmem:[%s8171_s13 + $0xa0] sm:$0xff]  ;;  %v2279_v47 = vld [vmem:[%s8171_s13 + $0xa8] sm:$0xff]  ;;  %3027 = vmatpush1.bf16.msra.mxu0 %v6679_v27  ;;  %3068 = vmatpush1.bf16.msra.mxu1 %v6681_v33  ;;  %v6689_v50 = vcombine.low %v2267_v35, %v2271_v36  ;;  %p2228_p7 = scmp.ge.s32.totalorder %s2231_s29, 8  }
 0x25f   : >> { %3028 = vmatprep.subr.bf16.mxu0 %v6688_v34  ;;  %v6696_v51 = vcombine.high %v2274_v37, %v2278_v42  ;;  %3069 = vmatprep.subr.bf16.mxu1 %v6690_v38  ;;  %v6698_v52 = vcombine.high %v2275_v46, %v2279_v47  ;;  %v2282_v53 = vld [vmem:[%s8171_s13 + $0xc0] sm:$0xff]  ;;  %v2283_v55 = vld [vmem:[%s8171_s13 + $0xc8] sm:$0xff]  ;;  %v6695_v58 = vcombine.low %v2274_v37, %v2278_v42 }
 0x260   : >> { %v2286_v54 = vld [vmem:[%s8171_s13 + $0xe0] sm:$0xff]  ;;  %v2287_v56 = vld [vmem:[%s8171_s13 + $0xe8] sm:$0xff]  ;;  %v6697_v59 = vcombine.low %v2275_v46, %v2279_v47  ;;  %3058 = vmatprep.mubr.bf16.mxu0 %v8536_v57  ;;  %3099 = vmatprep.mubr.bf16.mxu1 %v8536_v57 }
 0x261   : >> { %v6704_v60 = vcombine.high %v2282_v53, %v2286_v54  ;;  %v6706_v61 = vcombine.high %v2283_v55, %v2287_v56  ;;  %v2290_v3 = vld [vmem:[%s8171_s13 + $0x100] sm:$0xff]  ;;  %v2291_v5 = vld [vmem:[%s8171_s13 + $0x108] sm:$0xff]  ;;  %v6703_v7 = vcombine.low %v2282_v53, %v2286_v54  ;;  %v6705_v8 = vcombine.low %v2283_v55, %v2287_v56 }
 0x262   : >> { %3029 = vmatpush1.bf16.msra.mxu0 %v6687_v49  ;;  %3070 = vmatpush1.bf16.msra.mxu1 %v6689_v50  ;;  %v2294_v4 = vld [vmem:[%s8171_s13 + $0x120] sm:$0xff]  ;;  %v2295_v6 = vld [vmem:[%s8171_s13 + $0x128] sm:$0xff] }
 0x263   : >> { %3030 = vmatprep.subr.bf16.mxu0 %v6696_v51  ;;  %3071 = vmatprep.subr.bf16.mxu1 %v6698_v52  ;;  %v6712_v9 = vcombine.high %v2290_v3, %v2294_v4  ;;  %v6714_v10 = vcombine.high %v2291_v5, %v2295_v6  ;;  %v2298_v11 = vld [vmem:[%s8171_s13 + $0x140] sm:$0xff]  ;;  %v2299_v13 = vld [vmem:[%s8171_s13 + $0x148] sm:$0xff]  ;;  %v6711_v15 = vcombine.low %v2290_v3, %v2294_v4 }
 0x264   : >> { %v2302_v12 = vld [vmem:[%s8171_s13 + $0x160] sm:$0xff]  ;;  %v2303_v14 = vld [vmem:[%s8171_s13 + $0x168] sm:$0xff]  ;;  %v6713_v16 = vcombine.low %v2291_v5, %v2295_v6 }
 0x265   : >> { %v6720_v17 = vcombine.high %v2298_v11, %v2302_v12  ;;  %v6722_v18 = vcombine.high %v2299_v13, %v2303_v14  ;;  %v2306_v22 = vld [vmem:[%s8171_s13 + $0x180] sm:$0xff]  ;;  %v2307_v24 = vld [vmem:[%s8171_s13 + $0x188] sm:$0xff]  ;;  %v6719_v26 = vcombine.low %v2298_v11, %v2302_v12  ;;  %v6721_v27 = vcombine.low %v2299_v13, %v2303_v14 }
 0x266   : >> { %3031 = vmatpush1.bf16.msra.mxu0 %v6695_v58  ;;  %3072 = vmatpush1.bf16.msra.mxu1 %v6697_v59  ;;  %v2310_v23 = vld [vmem:[%s8171_s13 + $0x1a0] sm:$0xff]  ;;  %v2311_v25 = vld [vmem:[%s8171_s13 + $0x1a8] sm:$0xff] }
 0x267   : >> { %3032 = vmatprep.subr.bf16.mxu0 %v6704_v60  ;;  %3073 = vmatprep.subr.bf16.mxu1 %v6706_v61  ;;  %v6728_v28 = vcombine.high %v2306_v22, %v2310_v23  ;;  %v6730_v31 = vcombine.high %v2307_v24, %v2311_v25  ;;  %v2314_v32 = vld [vmem:[%s8171_s13 + $0x1c0] sm:$0xff]  ;;  %v2315_v34 = vld [vmem:[%s8171_s13 + $0x1c8] sm:$0xff]  ;;  %v6727_v36 = vcombine.low %v2306_v22, %v2310_v23 }
 0x268   : >> { %v2318_v33 = vld [vmem:[%s8171_s13 + $0x1e0] sm:$0xff]  ;;  %v2319_v35 = vld [vmem:[%s8171_s13 + $0x1e8] sm:$0xff]  ;;  %v6729_v37 = vcombine.low %v2307_v24, %v2311_v25 }
 0x269   : >> { %v6736_v38 = vcombine.high %v2314_v32, %v2318_v33  ;;  %v6738_v42 = vcombine.high %v2315_v34, %v2319_v35  ;;  %v2322_v46 = vld [vmem:[%s8171_s13 + $0x200] sm:$0xff]  ;;  %v2323_v48 = vld [vmem:[%s8171_s13 + $0x208] sm:$0xff]  ;;  %v6735_v50 = vcombine.low %v2314_v32, %v2318_v33  ;;  %v6737_v51 = vcombine.low %v2315_v34, %v2319_v35 }
 0x26a   : >> { %3033 = vmatpush1.bf16.msra.mxu0 %v6703_v7  ;;  %3074 = vmatpush1.bf16.msra.mxu1 %v6705_v8  ;;  %v2326_v47 = vld [vmem:[%s8171_s13 + $0x220] sm:$0xff]  ;;  %v2327_v49 = vld [vmem:[%s8171_s13 + $0x228] sm:$0xff] }
 0x26b   : >> { %3034 = vmatprep.subr.bf16.mxu0 %v6712_v9  ;;  %3075 = vmatprep.subr.bf16.mxu1 %v6714_v10  ;;  %v6744_v52 = vcombine.high %v2322_v46, %v2326_v47  ;;  %v6746_v53 = vcombine.high %v2323_v48, %v2327_v49  ;;  %v2330_v54 = vld [vmem:[%s8171_s13 + $0x240] sm:$0xff]  ;;  %v2331_v56 = vld [vmem:[%s8171_s13 + $0x248] sm:$0xff]  ;;  %v6743_v59 = vcombine.low %v2322_v46, %v2326_v47 }
 0x26c   : >> { %v2334_v55 = vld [vmem:[%s8171_s13 + $0x260] sm:$0xff]  ;;  %v2335_v58 = vld [vmem:[%s8171_s13 + $0x268] sm:$0xff]  ;;  %v6745_v60 = vcombine.low %v2323_v48, %v2327_v49 }
 0x26d   : >> { %v6752_v61 = vcombine.high %v2330_v54, %v2334_v55  ;;  %v6754_v3 = vcombine.high %v2331_v56, %v2335_v58  ;;  %v2338_v4 = vld [vmem:[%s8171_s13 + $0x280] sm:$0xff]  ;;  %v2339_v6 = vld [vmem:[%s8171_s13 + $0x288] sm:$0xff]  ;;  %v6751_v8 = vcombine.low %v2330_v54, %v2334_v55  ;;  %v6753_v9 = vcombine.low %v2331_v56, %v2335_v58 }
 0x26e   : >> { %3035 = vmatpush1.bf16.msra.mxu0 %v6711_v15  ;;  %3076 = vmatpush1.bf16.msra.mxu1 %v6713_v16  ;;  %v2342_v5 = vld [vmem:[%s8171_s13 + $0x2a0] sm:$0xff]  ;;  %v2343_v7 = vld [vmem:[%s8171_s13 + $0x2a8] sm:$0xff] }
 0x26f   : >> { %3036 = vmatprep.subr.bf16.mxu0 %v6720_v17  ;;  %3077 = vmatprep.subr.bf16.mxu1 %v6722_v18  ;;  %v6760_v10 = vcombine.high %v2338_v4, %v2342_v5  ;;  %v6762_v11 = vcombine.high %v2339_v6, %v2343_v7  ;;  %v2346_v12 = vld [vmem:[%s8171_s13 + $0x2c0] sm:$0xff]  ;;  %v2347_v14 = vld [vmem:[%s8171_s13 + $0x2c8] sm:$0xff]  ;;  %v6759_v16 = vcombine.low %v2338_v4, %v2342_v5  ;;  %v2260_v5 = vld [vmem:[%s8171_s13 + $0x10] sm:$0xff] }
 0x270   : >> { %v2350_v13 = vld [vmem:[%s8171_s13 + $0x2e0] sm:$0xff]  ;;  %v2351_v15 = vld [vmem:[%s8171_s13 + $0x2e8] sm:$0xff]  ;;  %v6761_v17 = vcombine.low %v2339_v6, %v2343_v7  ;;  %v2264_v6 = vld [vmem:[%s8171_s13 + $0x30] sm:$0xff]  ;;  %v2249_v7 = vrot.slane %v7941_v21, %v8477_v41 }
 0x271   : >> { %v6768_v18 = vcombine.high %v2346_v12, %v2350_v13  ;;  %v6770_v22 = vcombine.high %v2347_v14, %v2351_v15  ;;  %v2354_v23 = vld [vmem:[%s8171_s13 + $0x300] sm:$0xff]  ;;  %v2355_v25 = vld [vmem:[%s8171_s13 + $0x308] sm:$0xff]  ;;  %v2273_v21 = vld [vmem:[%s8171_s13 + $0x78] sm:$0xff] }
 0x272   : >> { %3037 = vmatpush1.bf16.msra.mxu0 %v6719_v26  ;;  %3078 = vmatpush1.bf16.msra.mxu1 %v6721_v27  ;;  %v2358_v24 = vld [vmem:[%s8171_s13 + $0x320] sm:$0xff]  ;;  %v2359_v26 = vld [vmem:[%s8171_s13 + $0x328] sm:$0xff]  ;;  %v6767_v27 = vcombine.low %v2346_v12, %v2350_v13  ;;  %v6684_v12 = vcombine.high %v2260_v5, %v2264_v6 }
 0x273   : >> { %3038 = vmatprep.subr.bf16.mxu0 %v6728_v28  ;;  %3079 = vmatprep.subr.bf16.mxu1 %v6730_v31  ;;  %v6769_v28 = vcombine.low %v2347_v14, %v2351_v15  ;;  %v6776_v31 = vcombine.high %v2354_v23, %v2358_v24  ;;  %v6778_v32 = vcombine.high %v2355_v25, %v2359_v26  ;;  %v2362_v33 = vld [vmem:[%s8171_s13 + $0x340] sm:$0xff]  ;;  %v2363_v35 = vld [vmem:[%s8171_s13 + $0x348] sm:$0xff]  ;;  %v2268_v14 = vld [vmem:[%s8171_s13 + $0x50] sm:$0xff] }
 0x274   : >> { %v2366_v34 = vld [vmem:[%s8171_s13 + $0x360] sm:$0xff]  ;;  %v2371_v49 = vld [vmem:[%s8171_s13 + $0x388] sm:$0xff]  ;;  %v2272_v15 = vld [vmem:[%s8171_s13 + $0x70] sm:$0xff] }
 0x275   : >> { %v2370_v47 = vld [vmem:[%s8171_s13 + $0x380] sm:$0xff]  ;;  %v2379_v58 = vld [vmem:[%s8171_s13 + $0x3c8] sm:$0xff] }
 0x276   : >> { %3039 = vmatpush1.bf16.msra.mxu0 %v6727_v36  ;;  %3080 = vmatpush1.bf16.msra.mxu1 %v6729_v37  ;;  %v2367_v36 = vld [vmem:[%s8171_s13 + $0x368] sm:$0xff]  ;;  %v6775_v37 = vcombine.low %v2354_v23, %v2358_v24  ;;  %v2374_v48 = vld [vmem:[%s8171_s13 + $0x3a0] sm:$0xff]  ;;  %v6692_v23 = vcombine.high %v2268_v14, %v2272_v15 }
 0x277   : >> { %3040 = vmatprep.subr.bf16.mxu0 %v6736_v38  ;;  %3081 = vmatprep.subr.bf16.mxu1 %v6738_v42  ;;  %v6777_v38 = vcombine.low %v2355_v25, %v2359_v26  ;;  %v6784_v42 = vcombine.high %v2362_v33, %v2366_v34  ;;  %v6786_v46 = vcombine.high %v2363_v35, %v2367_v36  ;;  %v2378_v55 = vld [vmem:[%s8171_s13 + $0x3c0] sm:$0xff]  ;;  %v2276_v25 = vld [vmem:[%s8171_s13 + $0x90] sm:$0xff]  ;;  %v6817_v39 = vld [vmem:[%s8164_s28 + $0x828] sm:$0xff] (%p2228_p7) }
 0x278   : >> { %v2382_v56 = vld [vmem:[%s8171_s13 + $0x3e0] sm:$0xff]  ;;  %v2280_v26 = vld [vmem:[%s8171_s13 + $0xb0] sm:$0xff] }
 0x27a   : >> { %3041 = vmatpush1.bf16.msra.mxu0 %v6735_v50  ;;  %3082 = vmatpush1.bf16.msra.mxu1 %v6737_v51  ;;  %v2375_v50 = vld [vmem:[%s8171_s13 + $0x3a8] sm:$0xff]  ;;  %v6783_v51 = vcombine.low %v2362_v33, %v2366_v34  ;;  %v6700_v33 = vcombine.high %v2276_v25, %v2280_v26 }
 0x27b   : >> { %3042 = vmatprep.subr.bf16.mxu0 %v6744_v52  ;;  %3083 = vmatprep.subr.bf16.mxu1 %v6746_v53  ;;  %v6785_v52 = vcombine.low %v2363_v35, %v2367_v36  ;;  %v6792_v53 = vcombine.high %v2370_v47, %v2374_v48  ;;  %v6794_v54 = vcombine.high %v2371_v49, %v2375_v50  ;;  %v2284_v35 = vld [vmem:[%s8171_s13 + $0xd0] sm:$0xff] }
 0x27c   : >> { %v2288_v36 = vld [vmem:[%s8171_s13 + $0xf0] sm:$0xff] }
 0x27e   : >> { %3043 = vmatpush1.bf16.msra.mxu0 %v6743_v59  ;;  %3084 = vmatpush1.bf16.msra.mxu1 %v6745_v60  ;;  %v2383_v59 = vld [vmem:[%s8171_s13 + $0x3e8] sm:$0xff]  ;;  %v6791_v60 = vcombine.low %v2370_v47, %v2374_v48  ;;  %v6708_v47 = vcombine.high %v2284_v35, %v2288_v36 }
 0x27f   : >> { %3044 = vmatprep.subr.bf16.mxu0 %v6752_v61  ;;  %3085 = vmatprep.subr.bf16.mxu1 %v6754_v3  ;;  %v6793_v61 = vcombine.low %v2371_v49, %v2375_v50  ;;  %v6800_v3 = vcombine.high %v2378_v55, %v2382_v56  ;;  %v6802_v4 = vcombine.high %v2379_v58, %v2383_v59  ;;  %v2292_v49 = vld [vmem:[%s8171_s13 + $0x110] sm:$0xff] }
 0x280   : >> { %v2296_v50 = vld [vmem:[%s8171_s13 + $0x130] sm:$0xff] }
 0x282   : >> { %3045 = vmatpush1.bf16.msra.mxu0 %v6751_v8  ;;  %3086 = vmatpush1.bf16.msra.mxu1 %v6753_v9  ;;  %v2261_v8 = vld [vmem:[%s8171_s13 + $0x18] sm:$0xff] }
 0x283   : >> { %3046 = vmatprep.subr.bf16.mxu0 %v6760_v10  ;;  %3087 = vmatprep.subr.bf16.mxu1 %v6762_v11  ;;  %v2265_v9 = vld [vmem:[%s8171_s13 + $0x38] sm:$0xff]  ;;  %v6799_v10 = vcombine.low %v2378_v55, %v2382_v56  ;;  %v6801_v11 = vcombine.low %v2379_v58, %v2383_v59  ;;  %v2300_v56 = vld [vmem:[%s8171_s13 + $0x150] sm:$0xff] }
 0x284   : >> { %v6686_v13 = vcombine.high %v2261_v8, %v2265_v9  ;;  %v2304_v58 = vld [vmem:[%s8171_s13 + $0x170] sm:$0xff]  ;;  %v2301_v59 = vld [vmem:[%s8171_s13 + $0x158] sm:$0xff] }
 0x286   : >> { %3047 = vmatpush1.bf16.msra.mxu0 %v6759_v16  ;;  %3088 = vmatpush1.bf16.msra.mxu1 %v6761_v17  ;;  %v8596_v16 = vpack.c.bf16 %v2249_v7, %v2249_v7  ;;  %v2269_v17 = vld [vmem:[%s8171_s13 + $0x58] sm:$0xff]  ;;  %v2312_v7 = vld [vmem:[%s8171_s13 + $0x1b0] sm:$0xff] }
 0x287   : >> { %3048 = vmatprep.subr.bf16.mxu0 %v6768_v18  ;;  %3089 = vmatprep.subr.bf16.mxu1 %v6770_v22  ;;  %v6683_v18 = vcombine.low %v2260_v5, %v2264_v6  ;;  %v6685_v22 = vcombine.low %v2261_v8, %v2265_v9  ;;  %v6694_v24 = vcombine.high %v2269_v17, %v2273_v21  ;;  %v2308_v6 = vld [vmem:[%s8171_s13 + $0x190] sm:$0xff]  ;;  %v2309_v8 = vld [vmem:[%s8171_s13 + $0x198] sm:$0xff] }
 0x288   : >> { %v2313_v9 = vld [vmem:[%s8171_s13 + $0x1b8] sm:$0xff] }
 0x28a   : >> { %3049 = vmatpush1.bf16.msra.mxu0 %v6767_v27  ;;  %3090 = vmatpush1.bf16.msra.mxu1 %v6769_v28  ;;  %v2277_v27 = vld [vmem:[%s8171_s13 + $0x98] sm:$0xff] }
 0x28b   : >> { %3050 = vmatprep.subr.bf16.mxu0 %v6776_v31  ;;  %3091 = vmatprep.subr.bf16.mxu1 %v6778_v32  ;;  %v2281_v28 = vld [vmem:[%s8171_s13 + $0xb8] sm:$0xff]  ;;  %v6691_v31 = vcombine.low %v2268_v14, %v2272_v15  ;;  %v6693_v32 = vcombine.low %v2269_v17, %v2273_v21  ;;  %v2316_v14 = vld [vmem:[%s8171_s13 + $0x1d0] sm:$0xff] }
 0x28c   : >> { %v6702_v34 = vcombine.high %v2277_v27, %v2281_v28  ;;  %v2320_v15 = vld [vmem:[%s8171_s13 + $0x1f0] sm:$0xff]  ;;  %v2317_v17 = vld [vmem:[%s8171_s13 + $0x1d8] sm:$0xff] }
 0x28d   : >> { %v2321_v21 = vld [vmem:[%s8171_s13 + $0x1f8] sm:$0xff] }
 0x28e   : >> { %3051 = vmatpush1.bf16.msra.mxu0 %v6775_v37  ;;  %3092 = vmatpush1.bf16.msra.mxu1 %v6777_v38  ;;  %v2285_v37 = vld [vmem:[%s8171_s13 + $0xd8] sm:$0xff] }
 0x28f   : >> { %3052 = vmatprep.subr.bf16.mxu0 %v6784_v42  ;;  %3093 = vmatprep.subr.bf16.mxu1 %v6786_v46  ;;  %v2289_v38 = vld [vmem:[%s8171_s13 + $0xf8] sm:$0xff]  ;;  %v6699_v42 = vcombine.low %v2276_v25, %v2280_v26  ;;  %v6701_v46 = vcombine.low %v2277_v27, %v2281_v28  ;;  %v2324_v25 = vld [vmem:[%s8171_s13 + $0x210] sm:$0xff] }
 0x290   : >> { %v6710_v48 = vcombine.high %v2285_v37, %v2289_v38  ;;  %v2328_v26 = vld [vmem:[%s8171_s13 + $0x230] sm:$0xff]  ;;  %v2325_v27 = vld [vmem:[%s8171_s13 + $0x218] sm:$0xff] }
 0x291   : >> { %v2329_v28 = vld [vmem:[%s8171_s13 + $0x238] sm:$0xff] }
 0x292   : >> { %3053 = vmatpush1.bf16.msra.mxu0 %v6783_v51  ;;  %3094 = vmatpush1.bf16.msra.mxu1 %v6785_v52  ;;  %v2293_v51 = vld [vmem:[%s8171_s13 + $0x118] sm:$0xff] }
 0x293   : >> { %3054 = vmatprep.subr.bf16.mxu0 %v6792_v53  ;;  %3095 = vmatprep.subr.bf16.mxu1 %v6794_v54  ;;  %v2297_v52 = vld [vmem:[%s8171_s13 + $0x138] sm:$0xff]  ;;  %v6707_v53 = vcombine.low %v2284_v35, %v2288_v36  ;;  %v6716_v54 = vcombine.high %v2292_v49, %v2296_v50  ;;  %v2332_v35 = vld [vmem:[%s8171_s13 + $0x250] sm:$0xff] }
 0x294   : >> { %v6718_v55 = vcombine.high %v2293_v51, %v2297_v52  ;;  %v2336_v36 = vld [vmem:[%s8171_s13 + $0x270] sm:$0xff] }
 0x296   : >> { %3055 = vmatpush1.bf16.msra.mxu0 %v6791_v60  ;;  %3096 = vmatpush1.bf16.msra.mxu1 %v6793_v61  ;;  %v2305_v60 = vld [vmem:[%s8171_s13 + $0x178] sm:$0xff]  ;;  %v6715_v61 = vcombine.low %v2292_v49, %v2296_v50  ;;  %v2340_v49 = vld [vmem:[%s8171_s13 + $0x290] sm:$0xff] }
 0x297   : >> { %3056 = vmatprep.subr.bf16.mxu0 %v6800_v3  ;;  %3097 = vmatprep.subr.bf16.mxu1 %v6802_v4  ;;  %v6717_v3 = vcombine.low %v2293_v51, %v2297_v52  ;;  %v6724_v4 = vcombine.high %v2300_v56, %v2304_v58  ;;  %v6726_v5 = vcombine.high %v2301_v59, %v2305_v60  ;;  %v2344_v50 = vld [vmem:[%s8171_s13 + $0x2b0] sm:$0xff]  ;;  %v2341_v51 = vld [vmem:[%s8171_s13 + $0x298] sm:$0xff] }
 0x298   : >> { %v2345_v52 = vld [vmem:[%s8171_s13 + $0x2b8] sm:$0xff] }
 0x29a   : >> { %3057 = vmatpush1.bf16.msra.mxu0 %v6799_v10  ;;  %3098 = vmatpush1.bf16.msra.mxu1 %v6801_v11  ;;  %v6723_v10 = vcombine.low %v2300_v56, %v2304_v58  ;;  %v6725_v11 = vcombine.low %v2301_v59, %v2305_v60  ;;  %v2348_v56 = vld [vmem:[%s8171_s13 + $0x2d0] sm:$0xff]  ;;  %v2349_v59 = vld [vmem:[%s8171_s13 + $0x2d8] sm:$0xff] }
 0x29b   : >> { %3108 = vmatprep.subr.bf16.mxu0 %v6684_v12  ;;  %3149 = vmatprep.subr.bf16.mxu1 %v6686_v13  ;;  %v6732_v12 = vcombine.high %v2308_v6, %v2312_v7  ;;  %v6734_v13 = vcombine.high %v2309_v8, %v2313_v9  ;;  %v2352_v58 = vld [vmem:[%s8171_s13 + $0x2f0] sm:$0xff]  ;;  %v2353_v60 = vld [vmem:[%s8171_s13 + $0x2f8] sm:$0xff] }
 0x29d   : >> { %3059 = vmatmul.mubr.bf16.vlgmr.msra.gmra.mrb[0].mxu0 %v8596_v16  ;;  %3100 = vmatmul.mubr.bf16.vlgmr.msra.gmra.mrb[0].mxu1 %v8596_v16 }
 0x29e   : >> { %3109 = vmatpush1.bf16.msra.mxu0 %v6683_v18  ;;  %3150 = vmatpush1.bf16.msra.mxu1 %v6685_v22  ;;  %v6731_v18 = vcombine.low %v2308_v6, %v2312_v7  ;;  %v6733_v22 = vcombine.low %v2309_v8, %v2313_v9  ;;  %v2356_v6 = vld [vmem:[%s8171_s13 + $0x310] sm:$0xff]  ;;  %v2357_v8 = vld [vmem:[%s8171_s13 + $0x318] sm:$0xff] }
 0x29f   : >> { %3110 = vmatprep.subr.bf16.mxu0 %v6692_v23  ;;  %3151 = vmatprep.subr.bf16.mxu1 %v6694_v24  ;;  %v6740_v23 = vcombine.high %v2316_v14, %v2320_v15  ;;  %v6742_v24 = vcombine.high %v2317_v17, %v2321_v21  ;;  %v2360_v7 = vld [vmem:[%s8171_s13 + $0x330] sm:$0xff]  ;;  %v2361_v9 = vld [vmem:[%s8171_s13 + $0x338] sm:$0xff] }
 0x2a0   : >> { %3140 = vmatprep.mubr.bf16.mxu0 %v8536_v57  ;;  %3181 = vmatprep.mubr.bf16.mxu1 %v8536_v57  ;;  %v6709_v57 = vcombine.low %v2285_v37, %v2289_v38  ;;  %v2333_v37 = vld [vmem:[%s8171_s13 + $0x258] sm:$0xff] }
 0x2a1   : >> { %v2337_v38 = vld [vmem:[%s8171_s13 + $0x278] sm:$0xff] }
 0x2a2   : >> { %3111 = vmatpush1.bf16.msra.mxu0 %v6691_v31  ;;  %3152 = vmatpush1.bf16.msra.mxu1 %v6693_v32  ;;  %v6739_v31 = vcombine.low %v2316_v14, %v2320_v15  ;;  %v6741_v32 = vcombine.low %v2317_v17, %v2321_v21  ;;  %v2364_v14 = vld [vmem:[%s8171_s13 + $0x350] sm:$0xff]  ;;  %v2365_v17 = vld [vmem:[%s8171_s13 + $0x358] sm:$0xff] }
 0x2a3   : >> { %3112 = vmatprep.subr.bf16.mxu0 %v6700_v33  ;;  %3153 = vmatprep.subr.bf16.mxu1 %v6702_v34  ;;  %v6748_v33 = vcombine.high %v2324_v25, %v2328_v26  ;;  %v6750_v34 = vcombine.high %v2325_v27, %v2329_v28  ;;  %v2368_v15 = vld [vmem:[%s8171_s13 + $0x370] sm:$0xff]  ;;  %v2369_v21 = vld [vmem:[%s8171_s13 + $0x378] sm:$0xff] }
 0x2a6   : >> { %3113 = vmatpush1.bf16.msra.mxu0 %v6699_v42  ;;  %3154 = vmatpush1.bf16.msra.mxu1 %v6701_v46  ;;  %v6747_v42 = vcombine.low %v2324_v25, %v2328_v26  ;;  %v6749_v46 = vcombine.low %v2325_v27, %v2329_v28  ;;  %v2372_v25 = vld [vmem:[%s8171_s13 + $0x390] sm:$0xff]  ;;  %v2373_v27 = vld [vmem:[%s8171_s13 + $0x398] sm:$0xff] }
 0x2a7   : >> { %3114 = vmatprep.subr.bf16.mxu0 %v6708_v47  ;;  %3155 = vmatprep.subr.bf16.mxu1 %v6710_v48  ;;  %v6756_v47 = vcombine.high %v2332_v35, %v2336_v36  ;;  %v6758_v48 = vcombine.high %v2333_v37, %v2337_v38  ;;  %v2376_v26 = vld [vmem:[%s8171_s13 + $0x3b0] sm:$0xff]  ;;  %v2377_v28 = vld [vmem:[%s8171_s13 + $0x3b8] sm:$0xff] }
 0x2aa   : >> { %3115 = vmatpush1.bf16.msra.mxu0 %v6707_v53  ;;  %3156 = vmatpush1.bf16.msra.mxu1 %v6709_v57  ;;  %v6755_v53 = vcombine.low %v2332_v35, %v2336_v36  ;;  %v6757_v57 = vcombine.low %v2333_v37, %v2337_v38  ;;  %v2380_v35 = vld [vmem:[%s8171_s13 + $0x3d0] sm:$0xff]  ;;  %v2381_v37 = vld [vmem:[%s8171_s13 + $0x3d8] sm:$0xff] }
 0x2ab   : >> { %3116 = vmatprep.subr.bf16.mxu0 %v6716_v54  ;;  %3157 = vmatprep.subr.bf16.mxu1 %v6718_v55  ;;  %v6764_v54 = vcombine.high %v2340_v49, %v2344_v50  ;;  %v6766_v55 = vcombine.high %v2341_v51, %v2345_v52  ;;  %v2384_v36 = vld [vmem:[%s8171_s13 + $0x3f0] sm:$0xff]  ;;  %v2385_v38 = vld [vmem:[%s8171_s13 + $0x3f8] sm:$0xff] }
 0x2ae   : >> { %3117 = vmatpush1.bf16.msra.mxu0 %v6715_v61  ;;  %3158 = vmatpush1.bf16.msra.mxu1 %v6717_v3  ;;  %v6763_v61 = vcombine.low %v2340_v49, %v2344_v50  ;;  %v6765_v3 = vcombine.low %v2341_v51, %v2345_v52  ;;  %v6803_v49 = vcombine.low %v2380_v35, %v2384_v36  ;;  %v7966_v51 = vmov 1966171168  }
 0x2af   : >> { %3118 = vmatprep.subr.bf16.mxu0 %v6724_v4  ;;  %3159 = vmatprep.subr.bf16.mxu1 %v6726_v5  ;;  %v6772_v4 = vcombine.high %v2348_v56, %v2352_v58  ;;  %v6774_v5 = vcombine.high %v2349_v59, %v2353_v60  ;;  %v6805_v50 = vcombine.low %v2381_v37, %v2385_v38  ;;  %v3203_v52 = vunpack.c.l.s4 %v7966_v51 }
 0x2b2   : >> { %3119 = vmatpush1.bf16.msra.mxu0 %v6723_v10  ;;  %3160 = vmatpush1.bf16.msra.mxu1 %v6725_v11  ;;  %v6771_v10 = vcombine.low %v2348_v56, %v2352_v58  ;;  %v6773_v11 = vcombine.low %v2349_v59, %v2353_v60 }
 0x2b3   : >> { %3120 = vmatprep.subr.bf16.mxu0 %v6732_v12  ;;  %3161 = vmatprep.subr.bf16.mxu1 %v6734_v13  ;;  %v6780_v12 = vcombine.high %v2356_v6, %v2360_v7  ;;  %v6782_v13 = vcombine.high %v2357_v8, %v2361_v9 }
 0x2b6   : >> { %3121 = vmatpush1.bf16.msra.mxu0 %v6731_v18  ;;  %3162 = vmatpush1.bf16.msra.mxu1 %v6733_v22  ;;  %v6779_v18 = vcombine.low %v2356_v6, %v2360_v7  ;;  %v6781_v22 = vcombine.low %v2357_v8, %v2361_v9 }
 0x2b7   : >> { %3122 = vmatprep.subr.bf16.mxu0 %v6740_v23  ;;  %3163 = vmatprep.subr.bf16.mxu1 %v6742_v24  ;;  %v6788_v23 = vcombine.high %v2364_v14, %v2368_v15  ;;  %v6790_v24 = vcombine.high %v2365_v17, %v2369_v21 }
 0x2ba   : >> { %3123 = vmatpush1.bf16.msra.mxu0 %v6739_v31  ;;  %3164 = vmatpush1.bf16.msra.mxu1 %v6741_v32  ;;  %v6787_v31 = vcombine.low %v2364_v14, %v2368_v15  ;;  %v6789_v32 = vcombine.low %v2365_v17, %v2369_v21 }
 0x2bb   : >> { %3124 = vmatprep.subr.bf16.mxu0 %v6748_v33  ;;  %3165 = vmatprep.subr.bf16.mxu1 %v6750_v34  ;;  %v6796_v33 = vcombine.high %v2372_v25, %v2376_v26  ;;  %v6798_v34 = vcombine.high %v2373_v27, %v2377_v28 }
 0x2be   : >> { %3125 = vmatpush1.bf16.msra.mxu0 %v6747_v42  ;;  %3166 = vmatpush1.bf16.msra.mxu1 %v6749_v46  ;;  %v6795_v42 = vcombine.low %v2372_v25, %v2376_v26  ;;  %v6797_v46 = vcombine.low %v2373_v27, %v2377_v28 }
 0x2bf   : >> { %3126 = vmatprep.subr.bf16.mxu0 %v6756_v47  ;;  %3167 = vmatprep.subr.bf16.mxu1 %v6758_v48  ;;  %v6804_v47 = vcombine.high %v2380_v35, %v2384_v36  ;;  %v6806_v48 = vcombine.high %v2381_v37, %v2385_v38 }
 0x2c2   : >> { %3127 = vmatpush1.bf16.msra.mxu0 %v6755_v53  ;;  %3168 = vmatpush1.bf16.msra.mxu1 %v6757_v57  ;;  %v3204_v53 = vunpack.c.0.s8 %v3203_v52 }
 0x2c3   : >> { %3128 = vmatprep.subr.bf16.mxu0 %v6764_v54  ;;  %3169 = vmatprep.subr.bf16.mxu1 %v6766_v55 }
 0x2c4   : >> { %v8663_v54 = vsub.s32 %v3204_v53, %v8474_v40  ;;  %v8985_v40 = vmov (%p2228_p7), 0.0  }
 0x2c6   : >> { %3129 = vmatpush1.bf16.msra.mxu0 %v6763_v61  ;;  %3170 = vmatpush1.bf16.msra.mxu1 %v6765_v3 }
 0x2c7   : >> { %3130 = vmatprep.subr.bf16.mxu0 %v6772_v4  ;;  %3171 = vmatprep.subr.bf16.mxu1 %v6774_v5 }
 0x2ca   : >> { %3131 = vmatpush1.bf16.msra.mxu0 %v6771_v10  ;;  %3172 = vmatpush1.bf16.msra.mxu1 %v6773_v11 }
 0x2cb   : >> { %3132 = vmatprep.subr.bf16.mxu0 %v6780_v12  ;;  %3173 = vmatprep.subr.bf16.mxu1 %v6782_v13 }
 0x2ce   : >> { %3133 = vmatpush1.bf16.msra.mxu0 %v6779_v18  ;;  %3174 = vmatpush1.bf16.msra.mxu1 %v6781_v22 }
 0x2cf   : >> { %3134 = vmatprep.subr.bf16.mxu0 %v6788_v23  ;;  %3175 = vmatprep.subr.bf16.mxu1 %v6790_v24  ;;  %v2242_v23 = vld [vmem:[%s2241_s10] ss:$8 sm:$0xf] }
 0x2d0   : >> { %v2243_v24 = vld [vmem:[%s2241_s10] ss:$8 sm:$0xf0] }
 0x2d1   : >> { %v2244_v27 = vor.u32 %v2243_v24, %v2242_v23  ;;  %v6836_v23 = vld [vmem:[%s8164_s28 + $0x8c0] sm:$0xff] (%p2228_p7) }
 0x2d2   : >> { %3135 = vmatpush1.bf16.msra.mxu0 %v6787_v31  ;;  %3176 = vmatpush1.bf16.msra.mxu1 %v6789_v32  ;;  %v6840_v24 = vld [vmem:[%s8164_s28 + $0x8e0] sm:$0xff] (%p2228_p7) }
 0x2d3   : >> { %3136 = vmatprep.subr.bf16.mxu0 %v6796_v33  ;;  %3177 = vmatprep.subr.bf16.mxu1 %v6798_v34 }
 0x2d6   : >> { %3137 = vmatpush1.bf16.msra.mxu0 %v6795_v42  ;;  %3178 = vmatpush1.bf16.msra.mxu1 %v6797_v46 }
 0x2d7   : >> { %3138 = vmatprep.subr.bf16.mxu0 %v6804_v47  ;;  %3179 = vmatprep.subr.bf16.mxu1 %v6806_v48 }
 0x2da   : >> { %3139 = vmatpush1.bf16.msra.mxu0 %v6803_v49  ;;  %3180 = vmatpush1.bf16.msra.mxu1 %v6805_v50 }
 0x2dd   : >> { %3141 = vmatmul.mubr.bf16.vlgmr.msra.gmra.mrb[4].mxu0 %v8596_v16  ;;  %3182 = vmatmul.mubr.bf16.vlgmr.msra.gmra.mrb[4].mxu1 %v8596_v16 }
 0x2de   : > { %4902 = vmatprep.mubr.bf16.mxu0 (%p2228_p7), %v8223_v1  ;;  %4984 = vmatprep.mubr.bf16.mxu1 (%p2228_p7), %v8223_v1 }
 0x370   : >> { %v3060_v57 = vpop.f32.mrb[0].mxu0  ;;  %v3101_v55 = vpop.f32.mrb[0].mxu1 }
 0x371   : >> { %v3062_v56 = vpop.f32.mrb[1].mxu0  ;;  %v3103_v59 = vpop.f32.mrb[1].mxu1 }
 0x372   : >> { %v3198_v58 = vcombine.low %v3060_v57, %v3062_v56  ;;  %v3064_v60 = vpop.f32.mrb[2].mxu0  ;;  %v3199_v61 = vcombine.low %v3101_v55, %v3103_v59  ;;  %v3105_v3 = vpop.f32.mrb[2].mxu1 }
 0x373   : >> { %v3065_v4 = vpop.f32.mrb[3].mxu0  ;;  %v3106_v5 = vpop.f32.mrb[3].mxu1  ;;  %v6812_v60 = vld [vmem:[%s8164_s28 + $0x800] sm:$0xff] (%p2228_p7)  ;;  %v6813_v3 = vld [vmem:[%s8164_s28 + $0x808] sm:$0xff] (%p2228_p7) }
 0x374   : >> { %v3208_v16 = vrot.slane %v3198_v58, %v8663_v54  ;;  %v3215_v6 = vrot.slane %v3199_v61, %v8663_v54  ;;  %v6816_v61 = vld [vmem:[%s8164_s28 + $0x820] sm:$0xff] (%p2228_p7) }
 0x375   : > { %v7070_v4 = vcombine.high (%p2228_p7), %v6812_v60, %v6816_v61  ;;  %v6824_v5 = vld [vmem:[%s8164_s28 + $0x860] sm:$0xff] (%p2228_p7) }
 0x376   : >> { %v3230_v7 = vcombine.low %v3208_v16, %v3215_v6  ;;  %v6820_v16 = vld [vmem:[%s8164_s28 + $0x840] sm:$0xff] (%p2228_p7)  ;;  %v7072_v6 = vcombine.high (%p2228_p7), %v6813_v3, %v6817_v39 }
 0x377   : > { %4870 = vmatprep.subr.bf16.mxu0 (%p2228_p7), %v7070_v4 }
 0x378   : >> { %v3238_v26 = vrot.slane %v3230_v7, %v8663_v54  ;;  %v7071_v7 = vcombine.low (%p2228_p7), %v6813_v3, %v6817_v39  ;;  %4952 = vmatprep.subr.bf16.mxu1 (%p2228_p7), %v7072_v6  ;;  %v6873_v6 = vld [vmem:[%s8164_s28 + $0x9e8] sm:$0xff] (%p2228_p7) }
 0x37a   : > { %4953 = vmatpush1.bf16.msra.mxu1 (%p2228_p7), %v7071_v7 }
 0x3b0   : >> { %v3142_v8 = vpop.f32.mrb[4].mxu0  ;;  %v3183_v9 = vpop.f32.mrb[4].mxu1 }
 0x3b1   : >> { %v3144_v10 = vpop.f32.mrb[5].mxu0  ;;  %v3185_v12 = vpop.f32.mrb[5].mxu1 }
 0x3b2   : >> { %v3200_v11 = vcombine.low %v3142_v8, %v3144_v10  ;;  %v3146_v13 = vpop.f32.mrb[6].mxu0  ;;  %v3201_v14 = vcombine.low %v3183_v9, %v3185_v12  ;;  %v3187_v15 = vpop.f32.mrb[6].mxu1  ;;  %v7078_v8 = vcombine.high (%p2228_p7), %v6820_v16, %v6824_v5  ;;  %v6821_v9 = vld [vmem:[%s8164_s28 + $0x848] sm:$0xff] (%p2228_p7) }
 0x3b3   : >> { %v3147_v17 = vpop.f32.mrb[7].mxu0  ;;  %v3188_v18 = vpop.f32.mrb[7].mxu1  ;;  %v6825_v10 = vld [vmem:[%s8164_s28 + $0x868] sm:$0xff] (%p2228_p7)  ;;  %v6832_v13 = vld [vmem:[%s8164_s28 + $0x8a0] sm:$0xff] (%p2228_p7) }
 0x3b4   : >> { %v3222_v21 = vrot.slane %v3200_v11, %v8663_v54  ;;  %v3229_v22 = vrot.slane %v3201_v14, %v8663_v54  ;;  %v6828_v11 = vld [vmem:[%s8164_s28 + $0x880] sm:$0xff] (%p2228_p7)  ;;  %v7080_v12 = vcombine.high (%p2228_p7), %v6821_v9, %v6825_v10  ;;  %v6829_v14 = vld [vmem:[%s8164_s28 + $0x888] sm:$0xff] (%p2228_p7)  ;;  %v7077_v17 = vcombine.low (%p2228_p7), %v6820_v16, %v6824_v5 }
 0x3b5   : > { %v6833_v15 = vld [vmem:[%s8164_s28 + $0x8a8] sm:$0xff] (%p2228_p7)  ;;  %v7086_v18 = vcombine.high (%p2228_p7), %v6828_v11, %v6832_v13  ;;  %v6872_v16 = vld [vmem:[%s8164_s28 + $0x9e0] sm:$0xff] (%p2228_p7) }
 0x3b6   : >> { %v3231_v25 = vcombine.low %v3222_v21, %v3229_v22  ;;  %4954 = vmatprep.subr.bf16.mxu1 (%p2228_p7), %v7080_v12  ;;  %v7088_v22 = vcombine.high (%p2228_p7), %v6829_v14, %v6833_v15  ;;  %v6869_v5 = vld [vmem:[%s8164_s28 + $0x9c8] sm:$0xff] (%p2228_p7)  ;;  %v6880_v12 = vld [vmem:[%s8164_s28 + $0xa20] sm:$0xff] (%p2228_p7) }
 0x3b8   : >> { %v3245_v28 = vrot.slane %v3231_v25, %v8663_v54  ;;  %v6837_v25 = vld [vmem:[%s8164_s28 + $0x8c8] sm:$0xff] (%p2228_p7) }
 0x3ba   : >> { %v3246_v31 = vcombine.low %v3238_v26, %v3245_v28  ;;  %v6841_v26 = vld [vmem:[%s8164_s28 + $0x8e8] sm:$0xff] (%p2228_p7)  ;;  %v7087_v28 = vcombine.low (%p2228_p7), %v6829_v14, %v6833_v15 }
 0x3bb   : > { %v6881_v14 = vld [vmem:[%s8164_s28 + $0xa28] sm:$0xff] (%p2228_p7) }
 0x3bc   : >> { %v3248_v32 = vadd.f32 %v3246_v31, %v2244_v27  ;;  %v7085_v27 = vcombine.low (%p2228_p7), %v6828_v11, %v6832_v13  ;;  %v7094_v31 = vcombine.high (%p2228_p7), %v6836_v23, %v6840_v24  ;;  %v6876_v11 = vld [vmem:[%s8164_s28 + $0xa00] sm:$0xff] (%p2228_p7)  ;;  %v6877_v13 = vld [vmem:[%s8164_s28 + $0xa08] sm:$0xff] (%p2228_p7) }
 0x3be   : >> { %v6807_v33 = vmul.f32 -1.442695, %v3248_v32  ;;  %v3256_v34 = vrot.slane %v3248_v32, 2  ;;  %v3267_v36 = vrot.slane %v3248_v32, 6  ;;  %v3264_v42 = vrot.slane %v3248_v32, 4 }
 0x3bf   : > { %v7096_v32 = vcombine.high (%p2228_p7), %v6837_v25, %v6841_v26 }
 0x3c0   : >> { %7749 = vpow2.f32 %v6807_v33  ;;  %v6808_v35 = vmul.f32 -1.442695, %v3256_v34  ;;  %v6809_v37 = vmul.f32 -1.442695, %v3267_v36  ;;  %v6844_v33 = vld [vmem:[%s8164_s28 + $0x900] sm:$0xff] (%p2228_p7)  ;;  %v6849_v36 = vld [vmem:[%s8164_s28 + $0x928] sm:$0xff] (%p2228_p7) }
 0x3c1   : > { %v6848_v34 = vld [vmem:[%s8164_s28 + $0x920] sm:$0xff] (%p2228_p7) }
 0x3c2   : >> { %7751 = vpow2.f32 %v6808_v35  ;;  %v6845_v35 = vld [vmem:[%s8164_s28 + $0x908] sm:$0xff] (%p2228_p7) }
 0x3c3   : >> { %7753 = vpow2.f32 %v6809_v37  ;;  %v7093_v37 = vcombine.low (%p2228_p7), %v6836_v23, %v6840_v24  ;;  %v6888_v23 = vld [vmem:[%s8164_s28 + $0xa60] sm:$0xff] (%p2228_p7)  ;;  %v6885_v24 = vld [vmem:[%s8164_s28 + $0xa48] sm:$0xff] (%p2228_p7) }
 0x3ca   : >> { %v7750_v38 = vpop.eup %7749 }
 0x3cb   : >> { %v3252_v46 = vadd.f32 1.0, %v7750_v38  ;;  %v7095_v38 = vcombine.low (%p2228_p7), %v6837_v25, %v6841_v26  ;;  %v6889_v25 = vld [vmem:[%s8164_s28 + $0xa68] sm:$0xff] (%p2228_p7)  ;;  %v7133_v26 = vcombine.low (%p2228_p7), %v6876_v11, %v6880_v12 }
 0x3cc   : >> { %v7752_v47 = vpop.eup %7751 }
 0x3cd   : >> { %7755 = vrcp.f32 %v3252_v46  ;;  %v3261_v48 = vadd.f32 1.0, %v7752_v47  ;;  %v7754_v49 = vpop.eup %7753  ;;  %v7104_v46 = vcombine.high (%p2228_p7), %v6845_v35, %v6849_v36  ;;  %v6852_v47 = vld [vmem:[%s8164_s28 + $0x940] sm:$0xff] (%p2228_p7) }
 0x3ce   : >> { %7757 = vtanh.f32 %v3264_v42  ;;  %v3272_v53 = vadd.f32 1.0, %v7754_v49  ;;  %v7102_v42 = vcombine.high (%p2228_p7), %v6844_v33, %v6848_v34  ;;  %v6853_v49 = vld [vmem:[%s8164_s28 + $0x948] sm:$0xff] (%p2228_p7) }
 0x3cf   : >> { %7759 = vrcp.f32 %v3261_v48  ;;  %v6856_v48 = vld [vmem:[%s8164_s28 + $0x960] sm:$0xff] (%p2228_p7) }
 0x3d0   : >> { %7761 = vrcp.f32 %v3272_v53  ;;  %v7110_v53 = vcombine.high (%p2228_p7), %v6852_v47, %v6856_v48 }
 0x3d7   : >> { %v7756_v50 = vpop.eup %7755 }
 0x3d8   : >> { %v7758_v51 = vpop.eup %7757 }
 0x3d9   : >> { %v7760_v52 = vpop.eup %7759  ;;  %v3276_v55 = vmul.f32 %v7758_v51, %v7756_v50  ;;  %v6857_v50 = vld [vmem:[%s8164_s28 + $0x968] sm:$0xff] (%p2228_p7)  ;;  %v7101_v51 = vcombine.low (%p2228_p7), %v6844_v33, %v6848_v34  ;;  %v6896_v33 = vld [vmem:[%s8164_s28 + $0xaa0] sm:$0xff] (%p2228_p7) }
 0x3da   : >> { %v3275_v57 = vmul.f32 %v7937_v19, %v7760_v52  ;;  %v7762_v56 = vpop.eup %7761  ;;  %v7103_v52 = vcombine.low (%p2228_p7), %v6845_v35, %v6849_v36  ;;  %v7111_v3 = vcombine.low (%p2228_p7), %v6853_v49, %v6857_v50  ;;  %v6893_v34 = vld [vmem:[%s8164_s28 + $0xa88] sm:$0xff] (%p2228_p7) }
 0x3db   : > { %v6897_v35 = vld [vmem:[%s8164_s28 + $0xaa8] sm:$0xff] (%p2228_p7) }
 0x3dc   : >> { %v3277_v19 = vadd.f32 %v3276_v55, %v3275_v57   ;;  %v7112_v57 = vcombine.high (%p2228_p7), %v6853_v49, %v6857_v50  ;;  %v6860_v55 = vld [vmem:[%s8164_s28 + $0x980] sm:$0xff] (%p2228_p7)  ;;  %v6905_v49 = vld [vmem:[%s8164_s28 + $0xae8] sm:$0xff] (%p2228_p7) }
 0x3de   : >> { %7763 = vtanh.f32 %v3277_v19  ;;  %v7069_v19 = vcombine.low (%p2228_p7), %v6812_v60, %v6816_v61  ;;  %v6865_v60 = vld [vmem:[%s8164_s28 + $0x9a8] sm:$0xff] (%p2228_p7)  ;;  %v7109_v61 = vcombine.low (%p2228_p7), %v6852_v47, %v6856_v48  ;;  %v6904_v47 = vld [vmem:[%s8164_s28 + $0xae0] sm:$0xff] (%p2228_p7) }
 0x3df   : > { %v6901_v48 = vld [vmem:[%s8164_s28 + $0xac8] sm:$0xff] (%p2228_p7) }
 0x3e0   : > { %4871 = vmatpush1.bf16.msra.mxu0 (%p2228_p7), %v7069_v19  ;;  %v6868_v19 = vld [vmem:[%s8164_s28 + $0x9c0] sm:$0xff] (%p2228_p7) }
 0x3e1   : > { %4872 = vmatprep.subr.bf16.mxu0 (%p2228_p7), %v7078_v8  ;;  %v7125_v15 = vcombine.low (%p2228_p7), %v6868_v19, %v6872_v16 }
 0x3e4   : > { %4873 = vmatpush1.bf16.msra.mxu0 (%p2228_p7), %v7077_v17  ;;  %v7127_v17 = vcombine.low (%p2228_p7), %v6869_v5, %v6873_v6 }
 0x3e5   : > { %2230 = sbr.rel (!%p2228_p7) target bundleno = 601 (0x259), region = 129  ;;  %4874 = vmatprep.subr.bf16.mxu0 (%p2228_p7), %v7086_v18  ;;  %v7136_v18 = vcombine.high (%p2228_p7), %v6877_v13, %v6881_v14 }
 0x3e8   : >> { %v7764_v58 = vpop.eup %7763  ;;  %4875 = vmatpush1.bf16.msra.mxu0 (%p2228_p7), %v7085_v27  ;;  %v7135_v27 = vcombine.low (%p2228_p7), %v6877_v13, %v6881_v14  ;;  %v6929_v13 = vld [vmem:[%s8164_s28 + $0xba8] sm:$0xff] (%p2228_p7) }
 0x3e9   : >> { %v3279_v21 = vmul.f32 %v7764_v58, %v7762_v56   ;;  %4876 = vmatprep.subr.bf16.mxu0 (%p2228_p7), %v7094_v31  ;;  %v6864_v56 = vld [vmem:[%s8164_s28 + $0x9a0] sm:$0xff] (%p2228_p7)  ;;  %v6861_v58 = vld [vmem:[%s8164_s28 + $0x988] sm:$0xff] (%p2228_p7)  ;;  %v7144_v31 = vcombine.high (%p2228_p7), %v6885_v24, %v6889_v25 }
 0x3ea   : > { %v7118_v4 = vcombine.high (%p2228_p7), %v6860_v55, %v6864_v56  ;;  %v7120_v39 = vcombine.high (%p2228_p7), %v6861_v58, %v6865_v60  ;;  %v7117_v7 = vcombine.low (%p2228_p7), %v6860_v55, %v6864_v56  ;;  %v7119_v8 = vcombine.low (%p2228_p7), %v6861_v58, %v6865_v60  ;;  %v6912_v55 = vld [vmem:[%s8164_s28 + $0xb20] sm:$0xff] (%p2228_p7)  ;;  %v6909_v56 = vld [vmem:[%s8164_s28 + $0xb08] sm:$0xff] (%p2228_p7) }
 0x3eb   : >> { %3288 = vst.msk [vmem:[%s3287_s9] ss:$8 sm:$0x3] %vm8683_vm0, %v3279_v21  ;;  %v7079_v21 = vcombine.low (%p2228_p7), %v6821_v9, %v6825_v10  ;;  %v7126_v9 = vcombine.high (%p2228_p7), %v6868_v19, %v6872_v16  ;;  %v7128_v10 = vcombine.high (%p2228_p7), %v6869_v5, %v6873_v6  ;;  %v6913_v58 = vld [vmem:[%s8164_s28 + $0xb28] sm:$0xff] (%p2228_p7)  ;;  %v6920_v19 = vld [vmem:[%s8164_s28 + $0xb60] sm:$0xff] (%p2228_p7) }
 0x3ec   : > { %4877 = vmatpush1.bf16.msra.mxu0 %v7093_v37  ;;  %v7143_v37 = vcombine.low %v6885_v24, %v6889_v25  ;;  %v6917_v16 = vld [vmem:[%s8164_s28 + $0xb48] sm:$0xff] }
 0x3ed   : > { %4955 = vmatpush1.bf16.msra.mxu1 %v7079_v21  ;;  %4878 = vmatprep.subr.bf16.mxu0 %v7102_v42  ;;  %v7134_v21 = vcombine.high %v6876_v11, %v6880_v12  ;;  %v7152_v42 = vcombine.high %v6893_v34, %v6897_v35  ;;  %v6921_v5 = vld [vmem:[%s8164_s28 + $0xb68] sm:$0xff]  ;;  %v6928_v11 = vld [vmem:[%s8164_s28 + $0xba0] sm:$0xff] }
 0x3ee   : > { %4956 = vmatprep.subr.bf16.mxu1 %v7088_v22  ;;  %v6884_v22 = vld [vmem:[%s8164_s28 + $0xa40] sm:$0xff]  ;;  %v6925_v12 = vld [vmem:[%s8164_s28 + $0xb88] sm:$0xff] }
 0x3ef   : > { %v7141_v36 = vcombine.low %v6884_v22, %v6888_v23  ;;  %v6937_v24 = vld [vmem:[%s8164_s28 + $0xbe8] sm:$0xff] }
 0x3f0   : > { %4879 = vmatpush1.bf16.msra.mxu0 %v7101_v51  ;;  %v7151_v51 = vcombine.low %v6893_v34, %v6897_v35  ;;  %v6945_v34 = vld [vmem:[%s8164_s28 + $0xc28] sm:$0xff] }
 0x3f1   : > { %4957 = vmatpush1.bf16.msra.mxu1 %v7087_v28  ;;  %4880 = vmatprep.subr.bf16.mxu0 %v7110_v53  ;;  %v7142_v28 = vcombine.high %v6884_v22, %v6888_v23  ;;  %v7160_v53 = vcombine.high %v6901_v48, %v6905_v49  ;;  %v6936_v22 = vld [vmem:[%s8164_s28 + $0xbe0] sm:$0xff]  ;;  %v6933_v23 = vld [vmem:[%s8164_s28 + $0xbc8] sm:$0xff] }
 0x3f2   : > { %4958 = vmatprep.subr.bf16.mxu1 %v7096_v32  ;;  %v6892_v32 = vld [vmem:[%s8164_s28 + $0xa80] sm:$0xff] }
 0x3f3   : > { %v7149_v50 = vcombine.low %v6892_v32, %v6896_v33 }
 0x3f4   : > { %4881 = vmatpush1.bf16.msra.mxu0 %v7109_v61  ;;  %v7159_v61 = vcombine.low %v6901_v48, %v6905_v49  ;;  %v6953_v48 = vld [vmem:[%s8164_s28 + $0xc68] sm:$0xff] }
 0x3f5   : > { %4959 = vmatpush1.bf16.msra.mxu1 %v7095_v38  ;;  %4882 = vmatprep.subr.bf16.mxu0 %v7118_v4  ;;  %v7150_v38 = vcombine.high %v6892_v32, %v6896_v33  ;;  %v7168_v4 = vcombine.high %v6909_v56, %v6913_v58  ;;  %v6944_v32 = vld [vmem:[%s8164_s28 + $0xc20] sm:$0xff]  ;;  %v6941_v33 = vld [vmem:[%s8164_s28 + $0xc08] sm:$0xff] }
 0x3f6   : > { %4960 = vmatprep.subr.bf16.mxu1 %v7104_v46  ;;  %v6900_v46 = vld [vmem:[%s8164_s28 + $0xac0] sm:$0xff] }
 0x3f7   : > { %v7157_v60 = vcombine.low %v6900_v46, %v6904_v47 }
 0x3f8   : > { %4883 = vmatpush1.bf16.msra.mxu0 %v7117_v7  ;;  %v7167_v7 = vcombine.low %v6909_v56, %v6913_v58  ;;  %v6961_v56 = vld [vmem:[%s8164_s28 + $0xca8] sm:$0xff] }
 0x3f9   : > { %4961 = vmatpush1.bf16.msra.mxu1 %v7103_v52  ;;  %4884 = vmatprep.subr.bf16.mxu0 %v7126_v9  ;;  %v7158_v52 = vcombine.high %v6900_v46, %v6904_v47  ;;  %v7176_v9 = vcombine.high %v6917_v16, %v6921_v5  ;;  %v6952_v46 = vld [vmem:[%s8164_s28 + $0xc60] sm:$0xff]  ;;  %v6949_v47 = vld [vmem:[%s8164_s28 + $0xc48] sm:$0xff] }
 0x3fa   : > { %4962 = vmatprep.subr.bf16.mxu1 %v7112_v57  ;;  %v6908_v57 = vld [vmem:[%s8164_s28 + $0xb00] sm:$0xff] }
 0x3fb   : > { %v7165_v6 = vcombine.low %v6908_v57, %v6912_v55 }
 0x3fc   : > { %4885 = vmatpush1.bf16.msra.mxu0 %v7125_v15  ;;  %v7175_v15 = vcombine.low %v6917_v16, %v6921_v5  ;;  %v6969_v16 = vld [vmem:[%s8164_s28 + $0xce8] sm:$0xff] }
 0x3fd   : > { %4963 = vmatpush1.bf16.msra.mxu1 %v7111_v3  ;;  %4886 = vmatprep.subr.bf16.mxu0 %v7134_v21  ;;  %v7166_v3 = vcombine.high %v6908_v57, %v6912_v55  ;;  %v7184_v21 = vcombine.high %v6925_v12, %v6929_v13  ;;  %v6960_v57 = vld [vmem:[%s8164_s28 + $0xca0] sm:$0xff]  ;;  %v6957_v55 = vld [vmem:[%s8164_s28 + $0xc88] sm:$0xff] }
 0x3fe   : > { %4964 = vmatprep.subr.bf16.mxu1 %v7120_v39  ;;  %v6916_v39 = vld [vmem:[%s8164_s28 + $0xb40] sm:$0xff] }
 0x3ff   : > { %v7173_v14 = vcombine.low %v6916_v39, %v6920_v19 }
 0x400   : > { %4887 = vmatpush1.bf16.msra.mxu0 %v7133_v26  ;;  %v7183_v26 = vcombine.low %v6925_v12, %v6929_v13  ;;  %v6977_v12 = vld [vmem:[%s8164_s28 + $0xd28] sm:$0xff] }
 0x401   : > { %4965 = vmatpush1.bf16.msra.mxu1 %v7119_v8  ;;  %4888 = vmatprep.subr.bf16.mxu0 %v7142_v28  ;;  %v7174_v8 = vcombine.high %v6916_v39, %v6920_v19  ;;  %v7192_v28 = vcombine.high %v6933_v23, %v6937_v24  ;;  %v6968_v39 = vld [vmem:[%s8164_s28 + $0xce0] sm:$0xff]  ;;  %v6965_v19 = vld [vmem:[%s8164_s28 + $0xcc8] sm:$0xff] }
 0x402   : > { %4966 = vmatprep.subr.bf16.mxu1 %v7128_v10  ;;  %v6924_v10 = vld [vmem:[%s8164_s28 + $0xb80] sm:$0xff] }
 0x403   : > { %v7181_v25 = vcombine.low %v6924_v10, %v6928_v11 }
 0x404   : > { %4889 = vmatpush1.bf16.msra.mxu0 %v7141_v36  ;;  %v7191_v36 = vcombine.low %v6933_v23, %v6937_v24  ;;  %v6985_v23 = vld [vmem:[%s8164_s28 + $0xd68] sm:$0xff] }
 0x405   : > { %4967 = vmatpush1.bf16.msra.mxu1 %v7127_v17  ;;  %4890 = vmatprep.subr.bf16.mxu0 %v7150_v38  ;;  %v7182_v17 = vcombine.high %v6924_v10, %v6928_v11  ;;  %v7200_v38 = vcombine.high %v6941_v33, %v6945_v34  ;;  %v6976_v10 = vld [vmem:[%s8164_s28 + $0xd20] sm:$0xff]  ;;  %v6973_v11 = vld [vmem:[%s8164_s28 + $0xd08] sm:$0xff] }
 0x406   : > { %4968 = vmatprep.subr.bf16.mxu1 %v7136_v18  ;;  %v6932_v18 = vld [vmem:[%s8164_s28 + $0xbc0] sm:$0xff] }
 0x407   : > { %v7189_v35 = vcombine.low %v6932_v18, %v6936_v22 }
 0x408   : > { %4891 = vmatpush1.bf16.msra.mxu0 %v7149_v50  ;;  %v7199_v50 = vcombine.low %v6941_v33, %v6945_v34  ;;  %v6993_v33 = vld [vmem:[%s8164_s28 + $0xda8] sm:$0xff] }
 0x409   : > { %4969 = vmatpush1.bf16.msra.mxu1 %v7135_v27  ;;  %4892 = vmatprep.subr.bf16.mxu0 %v7158_v52  ;;  %v7190_v27 = vcombine.high %v6932_v18, %v6936_v22  ;;  %v7208_v52 = vcombine.high %v6949_v47, %v6953_v48  ;;  %v6984_v18 = vld [vmem:[%s8164_s28 + $0xd60] sm:$0xff]  ;;  %v6981_v22 = vld [vmem:[%s8164_s28 + $0xd48] sm:$0xff] }
 0x40a   : > { %4970 = vmatprep.subr.bf16.mxu1 %v7144_v31  ;;  %v6940_v31 = vld [vmem:[%s8164_s28 + $0xc00] sm:$0xff] }
 0x40b   : > { %v7197_v49 = vcombine.low %v6940_v31, %v6944_v32 }
 0x40c   : > { %4893 = vmatpush1.bf16.msra.mxu0 %v7157_v60  ;;  %v7207_v60 = vcombine.low %v6949_v47, %v6953_v48  ;;  %v7001_v47 = vld [vmem:[%s8164_s28 + $0xde8] sm:$0xff] }
 0x40d   : > { %4971 = vmatpush1.bf16.msra.mxu1 %v7143_v37  ;;  %4894 = vmatprep.subr.bf16.mxu0 %v7166_v3  ;;  %v7198_v37 = vcombine.high %v6940_v31, %v6944_v32  ;;  %v7216_v3 = vcombine.high %v6957_v55, %v6961_v56  ;;  %v6992_v31 = vld [vmem:[%s8164_s28 + $0xda0] sm:$0xff]  ;;  %v6989_v32 = vld [vmem:[%s8164_s28 + $0xd88] sm:$0xff] }
 0x40e   : > { %4972 = vmatprep.subr.bf16.mxu1 %v7152_v42  ;;  %v6948_v42 = vld [vmem:[%s8164_s28 + $0xc40] sm:$0xff] }
 0x40f   : > { %v7205_v58 = vcombine.low %v6948_v42, %v6952_v46 }
 0x410   : > { %4895 = vmatpush1.bf16.msra.mxu0 %v7165_v6  ;;  %v7215_v6 = vcombine.low %v6957_v55, %v6961_v56  ;;  %v7009_v55 = vld [vmem:[%s8164_s28 + $0xe28] sm:$0xff] }
 0x411   : > { %4973 = vmatpush1.bf16.msra.mxu1 %v7151_v51  ;;  %4896 = vmatprep.subr.bf16.mxu0 %v7174_v8  ;;  %v7206_v51 = vcombine.high %v6948_v42, %v6952_v46  ;;  %v7224_v8 = vcombine.high %v6965_v19, %v6969_v16  ;;  %v7000_v42 = vld [vmem:[%s8164_s28 + $0xde0] sm:$0xff]  ;;  %v6997_v46 = vld [vmem:[%s8164_s28 + $0xdc8] sm:$0xff] }
 0x412   : > { %4974 = vmatprep.subr.bf16.mxu1 %v7160_v53  ;;  %v6956_v53 = vld [vmem:[%s8164_s28 + $0xc80] sm:$0xff] }
 0x413   : > { %v7213_v5 = vcombine.low %v6956_v53, %v6960_v57 }
 0x414   : > { %4897 = vmatpush1.bf16.msra.mxu0 %v7173_v14  ;;  %v7223_v14 = vcombine.low %v6965_v19, %v6969_v16  ;;  %v7017_v19 = vld [vmem:[%s8164_s28 + $0xe68] sm:$0xff] }
 0x415   : > { %4975 = vmatpush1.bf16.msra.mxu1 %v7159_v61  ;;  %4898 = vmatprep.subr.bf16.mxu0 %v7182_v17  ;;  %v7214_v61 = vcombine.high %v6956_v53, %v6960_v57  ;;  %v7232_v17 = vcombine.high %v6973_v11, %v6977_v12  ;;  %v7008_v53 = vld [vmem:[%s8164_s28 + $0xe20] sm:$0xff]  ;;  %v7005_v57 = vld [vmem:[%s8164_s28 + $0xe08] sm:$0xff] }
 0x416   : > { %4976 = vmatprep.subr.bf16.mxu1 %v7168_v4  ;;  %v6964_v4 = vld [vmem:[%s8164_s28 + $0xcc0] sm:$0xff] }
 0x417   : > { %v7221_v13 = vcombine.low %v6964_v4, %v6968_v39 }
 0x418   : > { %4899 = vmatpush1.bf16.msra.mxu0 %v7181_v25  ;;  %v7231_v25 = vcombine.low %v6973_v11, %v6977_v12  ;;  %v7025_v11 = vld [vmem:[%s8164_s28 + $0xea8] sm:$0xff] }
 0x419   : > { %4977 = vmatpush1.bf16.msra.mxu1 %v7167_v7  ;;  %4900 = vmatprep.subr.bf16.mxu0 %v7190_v27  ;;  %v7222_v7 = vcombine.high %v6964_v4, %v6968_v39  ;;  %v7240_v27 = vcombine.high %v6981_v22, %v6985_v23  ;;  %v7016_v4 = vld [vmem:[%s8164_s28 + $0xe60] sm:$0xff]  ;;  %v7013_v39 = vld [vmem:[%s8164_s28 + $0xe48] sm:$0xff] }
 0x41a   : > { %4978 = vmatprep.subr.bf16.mxu1 %v7176_v9  ;;  %v6972_v9 = vld [vmem:[%s8164_s28 + $0xd00] sm:$0xff] }
 0x41b   : > { %v7229_v24 = vcombine.low %v6972_v9, %v6976_v10 }
 0x41c   : > { %4901 = vmatpush1.bf16.msra.mxu0 %v7189_v35  ;;  %v7239_v35 = vcombine.low %v6981_v22, %v6985_v23  ;;  %v7033_v22 = vld [vmem:[%s8164_s28 + $0xee8] sm:$0xff] }
 0x41d   : > { %4979 = vmatpush1.bf16.msra.mxu1 %v7175_v15  ;;  %4911 = vmatprep.subr.bf16.mxu0 %v7198_v37  ;;  %v7230_v15 = vcombine.high %v6972_v9, %v6976_v10  ;;  %v7248_v37 = vcombine.high %v6989_v32, %v6993_v33  ;;  %v7024_v9 = vld [vmem:[%s8164_s28 + $0xea0] sm:$0xff]  ;;  %v7021_v10 = vld [vmem:[%s8164_s28 + $0xe88] sm:$0xff] }
 0x41e   : > { %4980 = vmatprep.subr.bf16.mxu1 %v7184_v21  ;;  %v6980_v21 = vld [vmem:[%s8164_s28 + $0xd40] sm:$0xff] }
 0x41f   : > { %4903 = vmatmul.mubr.bf16.vlgmr.msra.gmra.mrb[0].mxu0 %v8267_v20  ;;  %v7237_v34 = vcombine.low %v6980_v21, %v6984_v18 }
 0x420   : > { %4912 = vmatpush1.bf16.msra.mxu0 %v7197_v49  ;;  %4943 = vmatprep.mubr.bf16.mxu0 %v8273_v30  ;;  %v7247_v49 = vcombine.low %v6989_v32, %v6993_v33  ;;  %v7041_v32 = vld [vmem:[%s8164_s28 + $0xf28] sm:$0xff] }
 0x421   : > { %4981 = vmatpush1.bf16.msra.mxu1 %v7183_v26  ;;  %4913 = vmatprep.subr.bf16.mxu0 %v7206_v51  ;;  %v7238_v26 = vcombine.high %v6980_v21, %v6984_v18  ;;  %v7256_v51 = vcombine.high %v6997_v46, %v7001_v47  ;;  %v7032_v21 = vld [vmem:[%s8164_s28 + $0xee0] sm:$0xff]  ;;  %v7029_v18 = vld [vmem:[%s8164_s28 + $0xec8] sm:$0xff] }
 0x422   : > { %4982 = vmatprep.subr.bf16.mxu1 %v7192_v28  ;;  %v6988_v28 = vld [vmem:[%s8164_s28 + $0xd80] sm:$0xff] }
 0x423   : > { %v7245_v48 = vcombine.low %v6988_v28, %v6992_v31 }
 0x424   : > { %4914 = vmatpush1.bf16.msra.mxu0 %v7205_v58  ;;  %v7255_v58 = vcombine.low %v6997_v46, %v7001_v47  ;;  %v7049_v46 = vld [vmem:[%s8164_s28 + $0xf68] sm:$0xff] }
 0x425   : > { %4983 = vmatpush1.bf16.msra.mxu1 %v7191_v36  ;;  %4915 = vmatprep.subr.bf16.mxu0 %v7214_v61  ;;  %v7246_v36 = vcombine.high %v6988_v28, %v6992_v31  ;;  %v7264_v61 = vcombine.high %v7005_v57, %v7009_v55  ;;  %v7040_v28 = vld [vmem:[%s8164_s28 + $0xf20] sm:$0xff]  ;;  %v7037_v31 = vld [vmem:[%s8164_s28 + $0xf08] sm:$0xff] }
 0x426   : > { %4993 = vmatprep.subr.bf16.mxu1 %v7200_v38  ;;  %v6996_v38 = vld [vmem:[%s8164_s28 + $0xdc0] sm:$0xff] }
 0x427   : > { %v7253_v56 = vcombine.low %v6996_v38, %v7000_v42 }
 0x428   : > { %4985 = vmatmul.mubr.bf16.vlgmr.msra.gmra.mrb[0].mxu1 %v8267_v20  ;;  %4916 = vmatpush1.bf16.msra.mxu0 %v7213_v5  ;;  %v7263_v5 = vcombine.low %v7005_v57, %v7009_v55  ;;  %v7057_v57 = vld [vmem:[%s8164_s28 + $0xfa8] sm:$0xff] }
 0x429   : > { %4994 = vmatpush1.bf16.msra.mxu1 %v7199_v50  ;;  %5025 = vmatprep.mubr.bf16.mxu1 %v8273_v30  ;;  %v7254_v50 = vcombine.high %v6996_v38, %v7000_v42  ;;  %v7048_v38 = vld [vmem:[%s8164_s28 + $0xf60] sm:$0xff]  ;;  %v7045_v42 = vld [vmem:[%s8164_s28 + $0xf48] sm:$0xff] }
 0x42a   : > { %4995 = vmatprep.subr.bf16.mxu1 %v7208_v52  ;;  %4917 = vmatprep.subr.bf16.mxu0 %v7222_v7  ;;  %v7004_v52 = vld [vmem:[%s8164_s28 + $0xe00] sm:$0xff]  ;;  %v7272_v7 = vcombine.high %v7013_v39, %v7017_v19 }
 0x42b   : > { %v7261_v16 = vcombine.low %v7004_v52, %v7008_v53 }
 0x42c   : > { %4918 = vmatpush1.bf16.msra.mxu0 %v7221_v13  ;;  %v7271_v13 = vcombine.low %v7013_v39, %v7017_v19  ;;  %v7065_v39 = vld [vmem:[%s8164_s28 + $0xfe8] sm:$0xff] }
 0x42d   : > { %4996 = vmatpush1.bf16.msra.mxu1 %v7207_v60  ;;  %4919 = vmatprep.subr.bf16.mxu0 %v7230_v15  ;;  %v7262_v60 = vcombine.high %v7004_v52, %v7008_v53  ;;  %v7280_v15 = vcombine.high %v7021_v10, %v7025_v11  ;;  %v7056_v52 = vld [vmem:[%s8164_s28 + $0xfa0] sm:$0xff]  ;;  %v7053_v53 = vld [vmem:[%s8164_s28 + $0xf88] sm:$0xff] }
 0x42e   : > { %4997 = vmatprep.subr.bf16.mxu1 %v7216_v3  ;;  %v7012_v3 = vld [vmem:[%s8164_s28 + $0xe40] sm:$0xff] }
 0x42f   : > { %v7269_v12 = vcombine.low %v7012_v3, %v7016_v4 }
 0x430   : > { %4920 = vmatpush1.bf16.msra.mxu0 %v7229_v24  ;;  %v7279_v24 = vcombine.low %v7021_v10, %v7025_v11  ;;  %v6819_v10 = vld [vmem:[%s8164_s28 + $0x838] sm:$0xff] }
 0x431   : > { %4998 = vmatpush1.bf16.msra.mxu1 %v7215_v6  ;;  %4921 = vmatprep.subr.bf16.mxu0 %v7238_v26  ;;  %v7270_v6 = vcombine.high %v7012_v3, %v7016_v4  ;;  %v7288_v26 = vcombine.high %v7029_v18, %v7033_v22  ;;  %v7064_v3 = vld [vmem:[%s8164_s28 + $0xfe0] sm:$0xff]  ;;  %v7061_v4 = vld [vmem:[%s8164_s28 + $0xfc8] sm:$0xff] }
 0x432   : > { %4999 = vmatprep.subr.bf16.mxu1 %v7224_v8  ;;  %v7020_v8 = vld [vmem:[%s8164_s28 + $0xe80] sm:$0xff] }
 0x433   : > { %v7277_v23 = vcombine.low %v7020_v8, %v7024_v9 }
 0x434   : > { %4922 = vmatpush1.bf16.msra.mxu0 %v7237_v34  ;;  %v7287_v34 = vcombine.low %v7029_v18, %v7033_v22  ;;  %v6827_v18 = vld [vmem:[%s8164_s28 + $0x878] sm:$0xff] }
 0x435   : > { %5000 = vmatpush1.bf16.msra.mxu1 %v7223_v14  ;;  %4923 = vmatprep.subr.bf16.mxu0 %v7246_v36  ;;  %v7278_v14 = vcombine.high %v7020_v8, %v7024_v9  ;;  %v7296_v36 = vcombine.high %v7037_v31, %v7041_v32  ;;  %v6818_v8 = vld [vmem:[%s8164_s28 + $0x830] sm:$0xff]  ;;  %v6815_v9 = vld [vmem:[%s8164_s28 + $0x818] sm:$0xff] }
 0x436   : > { %5001 = vmatprep.subr.bf16.mxu1 %v7232_v17  ;;  %v7028_v17 = vld [vmem:[%s8164_s28 + $0xec0] sm:$0xff] }
 0x437   : > { %v7285_v33 = vcombine.low %v7028_v17, %v7032_v21 }
 0x438   : > { %4924 = vmatpush1.bf16.msra.mxu0 %v7245_v48  ;;  %v7295_v48 = vcombine.low %v7037_v31, %v7041_v32  ;;  %v6835_v31 = vld [vmem:[%s8164_s28 + $0x8b8] sm:$0xff] }
 0x439   : > { %5002 = vmatpush1.bf16.msra.mxu1 %v7231_v25  ;;  %4925 = vmatprep.subr.bf16.mxu0 %v7254_v50  ;;  %v7286_v25 = vcombine.high %v7028_v17, %v7032_v21  ;;  %v7304_v50 = vcombine.high %v7045_v42, %v7049_v46  ;;  %v6826_v17 = vld [vmem:[%s8164_s28 + $0x870] sm:$0xff]  ;;  %v6823_v21 = vld [vmem:[%s8164_s28 + $0x858] sm:$0xff] }
 0x43a   : > { %5003 = vmatprep.subr.bf16.mxu1 %v7240_v27  ;;  %v7036_v27 = vld [vmem:[%s8164_s28 + $0xf00] sm:$0xff] }
 0x43b   : > { %v7293_v47 = vcombine.low %v7036_v27, %v7040_v28 }
 0x43c   : > { %4926 = vmatpush1.bf16.msra.mxu0 %v7253_v56  ;;  %v7303_v56 = vcombine.low %v7045_v42, %v7049_v46  ;;  %v6843_v42 = vld [vmem:[%s8164_s28 + $0x8f8] sm:$0xff] }
 0x43d   : > { %5004 = vmatpush1.bf16.msra.mxu1 %v7239_v35  ;;  %4927 = vmatprep.subr.bf16.mxu0 %v7262_v60  ;;  %v7294_v35 = vcombine.high %v7036_v27, %v7040_v28  ;;  %v7312_v60 = vcombine.high %v7053_v53, %v7057_v57  ;;  %v6834_v27 = vld [vmem:[%s8164_s28 + $0x8b0] sm:$0xff]  ;;  %v6831_v28 = vld [vmem:[%s8164_s28 + $0x898] sm:$0xff] }
 0x43e   : > { %5005 = vmatprep.subr.bf16.mxu1 %v7248_v37  ;;  %v7044_v37 = vld [vmem:[%s8164_s28 + $0xf40] sm:$0xff] }
 0x43f   : > { %v7301_v55 = vcombine.low %v7044_v37, %v7048_v38 }
 0x440   : > { %4928 = vmatpush1.bf16.msra.mxu0 %v7261_v16  ;;  %v7311_v16 = vcombine.low %v7053_v53, %v7057_v57  ;;  %v6851_v53 = vld [vmem:[%s8164_s28 + $0x938] sm:$0xff] }
 0x441   : > { %5006 = vmatpush1.bf16.msra.mxu1 %v7247_v49  ;;  %4929 = vmatprep.subr.bf16.mxu0 %v7270_v6  ;;  %v7302_v49 = vcombine.high %v7044_v37, %v7048_v38  ;;  %v7320_v6 = vcombine.high %v7061_v4, %v7065_v39  ;;  %v6842_v37 = vld [vmem:[%s8164_s28 + $0x8f0] sm:$0xff]  ;;  %v6839_v38 = vld [vmem:[%s8164_s28 + $0x8d8] sm:$0xff] }
 0x442   : > { %5007 = vmatprep.subr.bf16.mxu1 %v7256_v51  ;;  %v7052_v51 = vld [vmem:[%s8164_s28 + $0xf80] sm:$0xff] }
 0x443   : > { %v7309_v19 = vcombine.low %v7052_v51, %v7056_v52 }
 0x444   : > { %4930 = vmatpush1.bf16.msra.mxu0 %v7269_v12  ;;  %v7319_v12 = vcombine.low %v7061_v4, %v7065_v39 }
 0x445   : > { %5008 = vmatpush1.bf16.msra.mxu1 %v7255_v58  ;;  %4931 = vmatprep.subr.bf16.mxu0 %v7278_v14  ;;  %v7310_v58 = vcombine.high %v7052_v51, %v7056_v52  ;;  %v7076_v14 = vcombine.high %v6815_v9, %v6819_v10  ;;  %v6850_v51 = vld [vmem:[%s8164_s28 + $0x930] sm:$0xff]  ;;  %v6847_v52 = vld [vmem:[%s8164_s28 + $0x918] sm:$0xff] }
 0x446   : > { %5009 = vmatprep.subr.bf16.mxu1 %v7264_v61  ;;  %v7060_v61 = vld [vmem:[%s8164_s28 + $0xfc0] sm:$0xff]  ;;  %v7107_v39 = vcombine.low %v6847_v52, %v6851_v53 }
 0x447   : > { %v7317_v11 = vcombine.low %v7060_v61, %v7064_v3 }
 0x448   : > { %4932 = vmatpush1.bf16.msra.mxu0 %v7277_v23  ;;  %v7075_v23 = vcombine.low %v6815_v9, %v6819_v10 }
 0x449   : > { %5010 = vmatpush1.bf16.msra.mxu1 %v7263_v5  ;;  %4933 = vmatprep.subr.bf16.mxu0 %v7286_v25  ;;  %v7318_v5 = vcombine.high %v7060_v61, %v7064_v3  ;;  %v7084_v25 = vcombine.high %v6823_v21, %v6827_v18  ;;  %v6855_v61 = vld [vmem:[%s8164_s28 + $0x958] sm:$0xff] }
 0x44a   : > { %5011 = vmatprep.subr.bf16.mxu1 %v7272_v7  ;;  %v6814_v7 = vld [vmem:[%s8164_s28 + $0x810] sm:$0xff]  ;;  %v6859_v3 = vld [vmem:[%s8164_s28 + $0x978] sm:$0xff] }
 0x44b   : > { %v7073_v22 = vcombine.low %v6814_v7, %v6818_v8  ;;  %v7115_v10 = vcombine.low %v6855_v61, %v6859_v3 }
 0x44c   : > { %4934 = vmatpush1.bf16.msra.mxu0 %v7285_v33  ;;  %v7083_v33 = vcombine.low %v6823_v21, %v6827_v18 }
 0x44d   : > { %5012 = vmatpush1.bf16.msra.mxu1 %v7271_v13  ;;  %4935 = vmatprep.subr.bf16.mxu0 %v7294_v35  ;;  %v7074_v13 = vcombine.high %v6814_v7, %v6818_v8  ;;  %v7092_v35 = vcombine.high %v6831_v28, %v6835_v31  ;;  %v6863_v7 = vld [vmem:[%s8164_s28 + $0x998] sm:$0xff] }
 0x44e   : > { %5013 = vmatprep.subr.bf16.mxu1 %v7280_v15  ;;  %v6822_v15 = vld [vmem:[%s8164_s28 + $0x850] sm:$0xff]  ;;  %v6867_v8 = vld [vmem:[%s8164_s28 + $0x9b8] sm:$0xff] }
 0x44f   : > { %v7081_v32 = vcombine.low %v6822_v15, %v6826_v17  ;;  %v7123_v18 = vcombine.low %v6863_v7, %v6867_v8 }
 0x450   : > { %4936 = vmatpush1.bf16.msra.mxu0 %v7293_v47  ;;  %v7091_v47 = vcombine.low %v6831_v28, %v6835_v31 }
 0x451   : > { %5014 = vmatpush1.bf16.msra.mxu1 %v7279_v24  ;;  %4937 = vmatprep.subr.bf16.mxu0 %v7302_v49  ;;  %v7082_v24 = vcombine.high %v6822_v15, %v6826_v17  ;;  %v7100_v49 = vcombine.high %v6839_v38, %v6843_v42  ;;  %v6871_v15 = vld [vmem:[%s8164_s28 + $0x9d8] sm:$0xff] }
 0x452   : > { %5015 = vmatprep.subr.bf16.mxu1 %v7288_v26  ;;  %v6830_v26 = vld [vmem:[%s8164_s28 + $0x890] sm:$0xff]  ;;  %v6875_v17 = vld [vmem:[%s8164_s28 + $0x9f8] sm:$0xff] }
 0x453   : > { %v7089_v46 = vcombine.low %v6830_v26, %v6834_v27  ;;  %v7131_v31 = vcombine.low %v6871_v15, %v6875_v17 }
 0x454   : > { %4938 = vmatpush1.bf16.msra.mxu0 %v7301_v55 }
 0x455   : > { %5016 = vmatpush1.bf16.msra.mxu1 %v7287_v34  ;;  %4939 = vmatprep.subr.bf16.mxu0 %v7310_v58  ;;  %v7090_v34 = vcombine.high %v6830_v26, %v6834_v27  ;;  %v6854_v58 = vld [vmem:[%s8164_s28 + $0x950] sm:$0xff]  ;;  %v6879_v26 = vld [vmem:[%s8164_s28 + $0xa18] sm:$0xff] }
 0x456   : > { %5017 = vmatprep.subr.bf16.mxu1 %v7296_v36  ;;  %v6838_v36 = vld [vmem:[%s8164_s28 + $0x8d0] sm:$0xff]  ;;  %v6883_v27 = vld [vmem:[%s8164_s28 + $0xa38] sm:$0xff] }
 0x457   : > { %v7097_v57 = vcombine.low %v6838_v36, %v6842_v37 }
 0x458   : > { %4940 = vmatpush1.bf16.msra.mxu0 %v7309_v19 }
 0x459   : > { %5018 = vmatpush1.bf16.msra.mxu1 %v7295_v48  ;;  %4941 = vmatprep.subr.bf16.mxu0 %v7318_v5  ;;  %v7098_v48 = vcombine.high %v6838_v36, %v6842_v37  ;;  %v6862_v5 = vld [vmem:[%s8164_s28 + $0x990] sm:$0xff]  ;;  %v6887_v36 = vld [vmem:[%s8164_s28 + $0xa58] sm:$0xff] }
 0x45a   : > { %5019 = vmatprep.subr.bf16.mxu1 %v7304_v50  ;;  %v6846_v50 = vld [vmem:[%s8164_s28 + $0x910] sm:$0xff]  ;;  %v6891_v37 = vld [vmem:[%s8164_s28 + $0xa78] sm:$0xff] }
 0x45b   : > { %v7106_v55 = vcombine.high %v6846_v50, %v6850_v51  ;;  %v7105_v4 = vcombine.low %v6846_v50, %v6850_v51  ;;  %v6895_v50 = vld [vmem:[%s8164_s28 + $0xa98] sm:$0xff] }
 0x45c   : > { %4942 = vmatpush1.bf16.msra.mxu0 %v7317_v11  ;;  %v6899_v51 = vld [vmem:[%s8164_s28 + $0xab8] sm:$0xff] }
 0x45d   : > { %5020 = vmatpush1.bf16.msra.mxu1 %v7303_v56  ;;  %5034 = vmatprep.subr.bf16.mxu0 %v7074_v13  ;;  %v7108_v56 = vcombine.high %v6847_v52, %v6851_v53  ;;  %v6870_v13 = vld [vmem:[%s8164_s28 + $0x9d0] sm:$0xff]  ;;  %v7147_v53 = vcombine.low %v6887_v36, %v6891_v37 }
 0x45e   : > { %5021 = vmatprep.subr.bf16.mxu1 %v7312_v60  ;;  %v6858_v60 = vld [vmem:[%s8164_s28 + $0x970] sm:$0xff] }
 0x45f   : > { %4944 = vmatmul.mubr.bf16.vlgmr.msra.gmra.mrb[0].mxu0 %v8339_v29  ;;  %v7114_v19 = vcombine.high %v6854_v58, %v6858_v60  ;;  %v7113_v9 = vcombine.low %v6854_v58, %v6858_v60  ;;  %v6903_v58 = vld [vmem:[%s8164_s28 + $0xad8] sm:$0xff] }
 0x460   : > { %5035 = vmatpush1.bf16.msra.mxu0 %v7073_v22  ;;  %5066 = vmatprep.mubr.bf16.mxu0 %v8223_v1  ;;  %v6907_v60 = vld [vmem:[%s8164_s28 + $0xaf8] sm:$0xff] }
 0x461   : > { %5022 = vmatpush1.bf16.msra.mxu1 %v7311_v16  ;;  %5036 = vmatprep.subr.bf16.mxu0 %v7082_v24  ;;  %v7116_v16 = vcombine.high %v6855_v61, %v6859_v3  ;;  %v6878_v24 = vld [vmem:[%s8164_s28 + $0xa10] sm:$0xff]  ;;  %v7155_v3 = vcombine.low %v6895_v50, %v6899_v51 }
 0x462   : > { %5023 = vmatprep.subr.bf16.mxu1 %v7320_v6  ;;  %v6866_v6 = vld [vmem:[%s8164_s28 + $0x9b0] sm:$0xff] }
 0x463   : > { %v7122_v11 = vcombine.high %v6862_v5, %v6866_v6  ;;  %v7121_v21 = vcombine.low %v6862_v5, %v6866_v6  ;;  %v6911_v5 = vld [vmem:[%s8164_s28 + $0xb18] sm:$0xff] }
 0x464   : > { %5037 = vmatpush1.bf16.msra.mxu0 %v7081_v32  ;;  %v6915_v6 = vld [vmem:[%s8164_s28 + $0xb38] sm:$0xff] }
 0x465   : > { %5024 = vmatpush1.bf16.msra.mxu1 %v7319_v12  ;;  %5038 = vmatprep.subr.bf16.mxu0 %v7090_v34  ;;  %v7124_v12 = vcombine.high %v6863_v7, %v6867_v8  ;;  %v6886_v34 = vld [vmem:[%s8164_s28 + $0xa50] sm:$0xff]  ;;  %v7163_v8 = vcombine.low %v6903_v58, %v6907_v60 }
 0x466   : > { %5116 = vmatprep.subr.bf16.mxu1 %v7076_v14  ;;  %v6874_v14 = vld [vmem:[%s8164_s28 + $0x9f0] sm:$0xff] }
 0x467   : > { %v7130_v22 = vcombine.high %v6870_v13, %v6874_v14  ;;  %v7129_v28 = vcombine.low %v6870_v13, %v6874_v14  ;;  %v6919_v13 = vld [vmem:[%s8164_s28 + $0xb58] sm:$0xff] }
 0x468   : > { %5026 = vmatmul.mubr.bf16.vlgmr.msra.gmra.mrb[0].mxu1 %v8339_v29  ;;  %5039 = vmatpush1.bf16.msra.mxu0 %v7089_v46  ;;  %v6923_v14 = vld [vmem:[%s8164_s28 + $0xb78] sm:$0xff] }
 0x469   : > { %5117 = vmatpush1.bf16.msra.mxu1 %v7075_v23  ;;  %5148 = vmatprep.mubr.bf16.mxu1 %v8223_v1  ;;  %v7099_v1 = vcombine.low %v6839_v38, %v6843_v42  ;;  %v7132_v23 = vcombine.high %v6871_v15, %v6875_v17  ;;  %v7139_v42 = vcombine.low %v6879_v26, %v6883_v27 }
 0x46a   : > { %5118 = vmatprep.subr.bf16.mxu1 %v7084_v25  ;;  %5040 = vmatprep.subr.bf16.mxu0 %v7098_v48  ;;  %v6882_v25 = vld [vmem:[%s8164_s28 + $0xa30] sm:$0xff]  ;;  %v7171_v17 = vcombine.low %v6911_v5, %v6915_v6 }
 0x46b   : > { %v7138_v32 = vcombine.high %v6878_v24, %v6882_v25  ;;  %v7137_v38 = vcombine.low %v6878_v24, %v6882_v25  ;;  %v6894_v48 = vld [vmem:[%s8164_s28 + $0xa90] sm:$0xff]  ;;  %v6927_v24 = vld [vmem:[%s8164_s28 + $0xb98] sm:$0xff] }
 0x46c   : > { %5041 = vmatpush1.bf16.msra.mxu0 %v7097_v57  ;;  %v6931_v25 = vld [vmem:[%s8164_s28 + $0xbb8] sm:$0xff] }
 0x46d   : > { %5119 = vmatpush1.bf16.msra.mxu1 %v7083_v33  ;;  %5042 = vmatprep.subr.bf16.mxu0 %v7106_v55  ;;  %v7140_v33 = vcombine.high %v6879_v26, %v6883_v27  ;;  %v6902_v55 = vld [vmem:[%s8164_s28 + $0xad0] sm:$0xff]  ;;  %v7179_v27 = vcombine.low %v6919_v13, %v6923_v14 }
 0x46e   : > { %5120 = vmatprep.subr.bf16.mxu1 %v7092_v35  ;;  %v6890_v35 = vld [vmem:[%s8164_s28 + $0xa70] sm:$0xff] }
 0x46f   : > { %v7146_v46 = vcombine.high %v6886_v34, %v6890_v35  ;;  %v7145_v52 = vcombine.low %v6886_v34, %v6890_v35  ;;  %v6935_v34 = vld [vmem:[%s8164_s28 + $0xbd8] sm:$0xff] }
 0x470   : > { %5043 = vmatpush1.bf16.msra.mxu0 %v7105_v4  ;;  %v6939_v35 = vld [vmem:[%s8164_s28 + $0xbf8] sm:$0xff] }
 0x471   : > { %5121 = vmatpush1.bf16.msra.mxu1 %v7091_v47  ;;  %5044 = vmatprep.subr.bf16.mxu0 %v7114_v19  ;;  %v7148_v47 = vcombine.high %v6887_v36, %v6891_v37  ;;  %v6910_v19 = vld [vmem:[%s8164_s28 + $0xb10] sm:$0xff]  ;;  %v7187_v37 = vcombine.low %v6927_v24, %v6931_v25 }
 0x472   : > { %5122 = vmatprep.subr.bf16.mxu1 %v7100_v49  ;;  %v6898_v49 = vld [vmem:[%s8164_s28 + $0xab0] sm:$0xff] }
 0x473   : > { %v7154_v57 = vcombine.high %v6894_v48, %v6898_v49  ;;  %v7153_v61 = vcombine.low %v6894_v48, %v6898_v49  ;;  %v6943_v48 = vld [vmem:[%s8164_s28 + $0xc18] sm:$0xff] }
 0x474   : > { %5045 = vmatpush1.bf16.msra.mxu0 %v7113_v9  ;;  %v6947_v49 = vld [vmem:[%s8164_s28 + $0xc38] sm:$0xff] }
 0x475   : > { %5123 = vmatpush1.bf16.msra.mxu1 %v7099_v1  ;;  %5046 = vmatprep.subr.bf16.mxu0 %v7122_v11  ;;  %v7156_v1 = vcombine.high %v6895_v50, %v6899_v51  ;;  %v6918_v11 = vld [vmem:[%s8164_s28 + $0xb50] sm:$0xff]  ;;  %v7195_v51 = vcombine.low %v6935_v34, %v6939_v35 }
 0x476   : > { %5124 = vmatprep.subr.bf16.mxu1 %v7108_v56  ;;  %v6906_v56 = vld [vmem:[%s8164_s28 + $0xaf0] sm:$0xff] }
 0x477   : > { %v7162_v4 = vcombine.high %v6902_v55, %v6906_v56  ;;  %v7161_v7 = vcombine.low %v6902_v55, %v6906_v56  ;;  %v6951_v55 = vld [vmem:[%s8164_s28 + $0xc58] sm:$0xff] }
 0x478   : > { %5047 = vmatpush1.bf16.msra.mxu0 %v7121_v21  ;;  %v6955_v56 = vld [vmem:[%s8164_s28 + $0xc78] sm:$0xff] }
 0x479   : > { %5125 = vmatpush1.bf16.msra.mxu1 %v7107_v39  ;;  %5048 = vmatprep.subr.bf16.mxu0 %v7130_v22  ;;  %v7164_v39 = vcombine.high %v6903_v58, %v6907_v60  ;;  %v6926_v22 = vld [vmem:[%s8164_s28 + $0xb90] sm:$0xff]  ;;  %v7203_v60 = vcombine.low %v6943_v48, %v6947_v49 }
 0x47a   : > { %5126 = vmatprep.subr.bf16.mxu1 %v7116_v16  ;;  %v6914_v16 = vld [vmem:[%s8164_s28 + $0xb30] sm:$0xff] }
 0x47b   : > { %v7170_v9 = vcombine.high %v6910_v19, %v6914_v16  ;;  %v7169_v15 = vcombine.low %v6910_v19, %v6914_v16  ;;  %v6959_v19 = vld [vmem:[%s8164_s28 + $0xc98] sm:$0xff] }
 0x47c   : > { %5049 = vmatpush1.bf16.msra.mxu0 %v7129_v28  ;;  %v6963_v16 = vld [vmem:[%s8164_s28 + $0xcb8] sm:$0xff] }
 0x47d   : > { %5127 = vmatpush1.bf16.msra.mxu1 %v7115_v10  ;;  %5050 = vmatprep.subr.bf16.mxu0 %v7138_v32  ;;  %v7172_v10 = vcombine.high %v6911_v5, %v6915_v6  ;;  %v6934_v32 = vld [vmem:[%s8164_s28 + $0xbd0] sm:$0xff]  ;;  %v7211_v6 = vcombine.low %v6951_v55, %v6955_v56 }
 0x47e   : > { %5128 = vmatprep.subr.bf16.mxu1 %v7124_v12  ;;  %v6922_v12 = vld [vmem:[%s8164_s28 + $0xb70] sm:$0xff] }
 0x47f   : > { %v7178_v21 = vcombine.high %v6918_v11, %v6922_v12  ;;  %v7177_v26 = vcombine.low %v6918_v11, %v6922_v12  ;;  %v6967_v11 = vld [vmem:[%s8164_s28 + $0xcd8] sm:$0xff] }
 0x480   : > { %5051 = vmatpush1.bf16.msra.mxu0 %v7137_v38  ;;  %v6971_v12 = vld [vmem:[%s8164_s28 + $0xcf8] sm:$0xff] }
 0x481   : > { %5129 = vmatpush1.bf16.msra.mxu1 %v7123_v18  ;;  %5052 = vmatprep.subr.bf16.mxu0 %v7146_v46  ;;  %v7180_v18 = vcombine.high %v6919_v13, %v6923_v14  ;;  %v6942_v46 = vld [vmem:[%s8164_s28 + $0xc10] sm:$0xff]  ;;  %v7219_v13 = vcombine.low %v6959_v19, %v6963_v16 }
 0x482   : > { %5130 = vmatprep.subr.bf16.mxu1 %v7132_v23  ;;  %v6930_v23 = vld [vmem:[%s8164_s28 + $0xbb0] sm:$0xff] }
 0x483   : > { %v7186_v28 = vcombine.high %v6926_v22, %v6930_v23  ;;  %v7185_v36 = vcombine.low %v6926_v22, %v6930_v23  ;;  %v6979_v22 = vld [vmem:[%s8164_s28 + $0xd38] sm:$0xff] }
 0x484   : > { %5053 = vmatpush1.bf16.msra.mxu0 %v7145_v52 }
 0x485   : > { %5131 = vmatpush1.bf16.msra.mxu1 %v7131_v31  ;;  %5054 = vmatprep.subr.bf16.mxu0 %v7154_v57  ;;  %v7188_v31 = vcombine.high %v6927_v24, %v6931_v25  ;;  %v6950_v57 = vld [vmem:[%s8164_s28 + $0xc50] sm:$0xff] }
 0x486   : > { %5132 = vmatprep.subr.bf16.mxu1 %v7140_v33  ;;  %v6938_v33 = vld [vmem:[%s8164_s28 + $0xbf0] sm:$0xff] }
 0x487   : > { %v7194_v38 = vcombine.high %v6934_v32, %v6938_v33  ;;  %v7193_v50 = vcombine.low %v6934_v32, %v6938_v33 }
 0x488   : > { %5055 = vmatpush1.bf16.msra.mxu0 %v7153_v61 }
 0x489   : > { %5133 = vmatpush1.bf16.msra.mxu1 %v7139_v42  ;;  %5056 = vmatprep.subr.bf16.mxu0 %v7162_v4  ;;  %v7196_v42 = vcombine.high %v6935_v34, %v6939_v35  ;;  %v6958_v4 = vld [vmem:[%s8164_s28 + $0xc90] sm:$0xff] }
 0x48a   : > { %5134 = vmatprep.subr.bf16.mxu1 %v7148_v47  ;;  %v6946_v47 = vld [vmem:[%s8164_s28 + $0xc30] sm:$0xff] }
 0x48b   : > { %v7202_v52 = vcombine.high %v6942_v46, %v6946_v47  ;;  %v7201_v58 = vcombine.low %v6942_v46, %v6946_v47 }
 0x48c   : > { %5057 = vmatpush1.bf16.msra.mxu0 %v7161_v7 }
 0x48d   : > { %5135 = vmatpush1.bf16.msra.mxu1 %v7147_v53  ;;  %5058 = vmatprep.subr.bf16.mxu0 %v7170_v9  ;;  %v7204_v53 = vcombine.high %v6943_v48, %v6947_v49  ;;  %v6966_v9 = vld [vmem:[%s8164_s28 + $0xcd0] sm:$0xff] }
 0x48e   : > { %5136 = vmatprep.subr.bf16.mxu1 %v7156_v1  ;;  %v6954_v1 = vld [vmem:[%s8164_s28 + $0xc70] sm:$0xff] }
 0x48f   : > { %v7210_v61 = vcombine.high %v6950_v57, %v6954_v1  ;;  %v7209_v5 = vcombine.low %v6950_v57, %v6954_v1 }
 0x490   : > { %5059 = vmatpush1.bf16.msra.mxu0 %v7169_v15  ;;  %v7228_v15 = vcombine.high %v6967_v11, %v6971_v12 }
 0x491   : > { %5137 = vmatpush1.bf16.msra.mxu1 %v7155_v3  ;;  %5060 = vmatprep.subr.bf16.mxu0 %v7178_v21  ;;  %v7212_v3 = vcombine.high %v6951_v55, %v6955_v56  ;;  %v6978_v21 = vld [vmem:[%s8164_s28 + $0xd30] sm:$0xff] }
 0x492   : > { %5138 = vmatprep.subr.bf16.mxu1 %v7164_v39  ;;  %v6962_v39 = vld [vmem:[%s8164_s28 + $0xcb0] sm:$0xff] }
 0x493   : > { %v7218_v7 = vcombine.high %v6958_v4, %v6962_v39 }
 0x494   : > { %5061 = vmatpush1.bf16.msra.mxu0 %v7177_v26  ;;  %v6982_v26 = vld [vmem:[%s8164_s28 + $0xd50] sm:$0xff] }
 0x495   : > { %5139 = vmatpush1.bf16.msra.mxu1 %v7163_v8  ;;  %5062 = vmatprep.subr.bf16.mxu0 %v7186_v28  ;;  %v7220_v8 = vcombine.high %v6959_v19, %v6963_v16  ;;  %v6983_v28 = vld [vmem:[%s8164_s28 + $0xd58] sm:$0xff] }
 0x496   : > { %5140 = vmatprep.subr.bf16.mxu1 %v7172_v10  ;;  %v6970_v10 = vld [vmem:[%s8164_s28 + $0xcf0] sm:$0xff] }
 0x497   : > { %v7226_v14 = vcombine.high %v6966_v9, %v6970_v10  ;;  %v7225_v23 = vcombine.low %v6966_v9, %v6970_v10 }
 0x498   : > { %5063 = vmatpush1.bf16.msra.mxu0 %v7185_v36  ;;  %v6990_v36 = vld [vmem:[%s8164_s28 + $0xd90] sm:$0xff] }
 0x499   : > { %5141 = vmatpush1.bf16.msra.mxu1 %v7171_v17  ;;  %5064 = vmatprep.subr.bf16.mxu0 %v7194_v38  ;;  %v6974_v17 = vld [vmem:[%s8164_s28 + $0xd10] sm:$0xff]  ;;  %v6991_v38 = vld [vmem:[%s8164_s28 + $0xd98] sm:$0xff] }
 0x49a   : > { %5142 = vmatprep.subr.bf16.mxu1 %v7180_v18  ;;  %v6975_v18 = vld [vmem:[%s8164_s28 + $0xd18] sm:$0xff]  ;;  %v7234_v24 = vcombine.high %v6974_v17, %v6978_v21  ;;  %v7233_v32 = vcombine.low %v6974_v17, %v6978_v21 }
 0x49b   : > { %v7236_v25 = vcombine.high %v6975_v18, %v6979_v22  ;;  %v7235_v33 = vcombine.low %v6975_v18, %v6979_v22 }
 0x49c   : > { %5065 = vmatpush1.bf16.msra.mxu0 %v7193_v50  ;;  %v6998_v50 = vld [vmem:[%s8164_s28 + $0xdd0] sm:$0xff] }
 0x49d   : > { %5143 = vmatpush1.bf16.msra.mxu1 %v7179_v27  ;;  %5075 = vmatprep.subr.bf16.mxu0 %v7202_v52  ;;  %v6986_v27 = vld [vmem:[%s8164_s28 + $0xd70] sm:$0xff]  ;;  %v6999_v52 = vld [vmem:[%s8164_s28 + $0xdd8] sm:$0xff] }
 0x49e   : > { %5144 = vmatprep.subr.bf16.mxu1 %v7188_v31  ;;  %v6987_v31 = vld [vmem:[%s8164_s28 + $0xd78] sm:$0xff]  ;;  %v7242_v34 = vcombine.high %v6982_v26, %v6986_v27  ;;  %v7241_v46 = vcombine.low %v6982_v26, %v6986_v27 }
 0x49f   : > { %5067 = vmatmul.mubr.bf16.vlgmr.msra.gmra.mrb[4].mxu0 %v8267_v20  ;;  %v7244_v35 = vcombine.high %v6983_v28, %v6987_v31  ;;  %v7243_v47 = vcombine.low %v6983_v28, %v6987_v31 }
 0x4a0   : > { %5076 = vmatpush1.bf16.msra.mxu0 %v7201_v58  ;;  %5107 = vmatprep.mubr.bf16.mxu0 %v8273_v30  ;;  %v7006_v58 = vld [vmem:[%s8164_s28 + $0xe10] sm:$0xff] }
 0x4a1   : > { %5145 = vmatpush1.bf16.msra.mxu1 %v7187_v37  ;;  %5077 = vmatprep.subr.bf16.mxu0 %v7210_v61  ;;  %v6994_v37 = vld [vmem:[%s8164_s28 + $0xdb0] sm:$0xff]  ;;  %v7007_v61 = vld [vmem:[%s8164_s28 + $0xe18] sm:$0xff] }
 0x4a2   : > { %5146 = vmatprep.subr.bf16.mxu1 %v7196_v42  ;;  %v6995_v42 = vld [vmem:[%s8164_s28 + $0xdb8] sm:$0xff]  ;;  %v7250_v48 = vcombine.high %v6990_v36, %v6994_v37  ;;  %v7249_v57 = vcombine.low %v6990_v36, %v6994_v37 }
 0x4a3   : > { %v7252_v49 = vcombine.high %v6991_v38, %v6995_v42  ;;  %v7251_v1 = vcombine.low %v6991_v38, %v6995_v42 }
 0x4a4   : > { %5078 = vmatpush1.bf16.msra.mxu0 %v7209_v5  ;;  %v7014_v5 = vld [vmem:[%s8164_s28 + $0xe50] sm:$0xff] }
 0x4a5   : > { %5147 = vmatpush1.bf16.msra.mxu1 %v7195_v51  ;;  %5079 = vmatprep.subr.bf16.mxu0 %v7218_v7  ;;  %v7002_v51 = vld [vmem:[%s8164_s28 + $0xdf0] sm:$0xff]  ;;  %v7015_v7 = vld [vmem:[%s8164_s28 + $0xe58] sm:$0xff] }
 0x4a6   : > { %5157 = vmatprep.subr.bf16.mxu1 %v7204_v53  ;;  %v7003_v53 = vld [vmem:[%s8164_s28 + $0xdf8] sm:$0xff]  ;;  %v7258_v55 = vcombine.high %v6998_v50, %v7002_v51 }
 0x4a7   : > { %v7260_v56 = vcombine.high %v6999_v52, %v7003_v53 }
 0x4a8   : > { %5149 = vmatmul.mubr.bf16.vlgmr.msra.gmra.mrb[4].mxu1 %v8267_v20  ;;  %v7217_v20 = vcombine.low %v6958_v4, %v6962_v39  ;;  %v7257_v4 = vcombine.low %v6998_v50, %v7002_v51  ;;  %v7259_v39 = vcombine.low %v6999_v52, %v7003_v53 }
 0x4a9   : > { %5158 = vmatpush1.bf16.msra.mxu1 %v7203_v60  ;;  %5189 = vmatprep.mubr.bf16.mxu1 %v8273_v30  ;;  %v7227_v30 = vcombine.low %v6967_v11, %v6971_v12  ;;  %v7010_v60 = vld [vmem:[%s8164_s28 + $0xe30] sm:$0xff] }
 0x4aa   : > { %5159 = vmatprep.subr.bf16.mxu1 %v7212_v3  ;;  %5080 = vmatpush1.bf16.msra.mxu0 %v7217_v20  ;;  %v7011_v3 = vld [vmem:[%s8164_s28 + $0xe38] sm:$0xff]  ;;  %v7266_v19 = vcombine.high %v7006_v58, %v7010_v60  ;;  %v7265_v9 = vcombine.low %v7006_v58, %v7010_v60  ;;  %v7022_v20 = vld [vmem:[%s8164_s28 + $0xe90] sm:$0xff] }
 0x4ab   : > { %5081 = vmatprep.subr.bf16.mxu0 %v7226_v14  ;;  %v7268_v16 = vcombine.high %v7007_v61, %v7011_v3  ;;  %v7267_v10 = vcombine.low %v7007_v61, %v7011_v3  ;;  %v7023_v14 = vld [vmem:[%s8164_s28 + $0xe98] sm:$0xff] }
 0x4ad   : > { %5160 = vmatpush1.bf16.msra.mxu1 %v7211_v6  ;;  %v7018_v6 = vld [vmem:[%s8164_s28 + $0xe70] sm:$0xff] }
 0x4ae   : > { %5161 = vmatprep.subr.bf16.mxu1 %v7220_v8  ;;  %5082 = vmatpush1.bf16.msra.mxu0 %v7225_v23  ;;  %v7019_v8 = vld [vmem:[%s8164_s28 + $0xe78] sm:$0xff]  ;;  %v7274_v11 = vcombine.high %v7014_v5, %v7018_v6  ;;  %v7273_v17 = vcombine.low %v7014_v5, %v7018_v6  ;;  %v7030_v23 = vld [vmem:[%s8164_s28 + $0xed0] sm:$0xff] }
 0x4af   : > { %5083 = vmatprep.subr.bf16.mxu0 %v7234_v24  ;;  %v7276_v12 = vcombine.high %v7015_v7, %v7019_v8  ;;  %v7275_v21 = vcombine.low %v7015_v7, %v7019_v8  ;;  %v7031_v24 = vld [vmem:[%s8164_s28 + $0xed8] sm:$0xff] }
 0x4b1   : > { %5162 = vmatpush1.bf16.msra.mxu1 %v7219_v13  ;;  %v7026_v13 = vld [vmem:[%s8164_s28 + $0xeb0] sm:$0xff] }
 0x4b2   : > { %5163 = vmatprep.subr.bf16.mxu1 %v7228_v15  ;;  %5084 = vmatpush1.bf16.msra.mxu0 %v7233_v32  ;;  %v7027_v15 = vld [vmem:[%s8164_s28 + $0xeb8] sm:$0xff]  ;;  %v7282_v18 = vcombine.high %v7022_v20, %v7026_v13  ;;  %v7281_v26 = vcombine.low %v7022_v20, %v7026_v13  ;;  %v7038_v32 = vld [vmem:[%s8164_s28 + $0xf10] sm:$0xff] }
 0x4b3   : > { %5085 = vmatprep.subr.bf16.mxu0 %v7242_v34  ;;  %v7284_v22 = vcombine.high %v7023_v14, %v7027_v15  ;;  %v7283_v27 = vcombine.low %v7023_v14, %v7027_v15  ;;  %v7039_v34 = vld [vmem:[%s8164_s28 + $0xf18] sm:$0xff] }
 0x4b5   : > { %5164 = vmatpush1.bf16.msra.mxu1 %v7227_v30  ;;  %v7034_v30 = vld [vmem:[%s8164_s28 + $0xef0] sm:$0xff] }
 0x4b6   : > { %5165 = vmatprep.subr.bf16.mxu1 %v7236_v25  ;;  %5086 = vmatpush1.bf16.msra.mxu0 %v7241_v46  ;;  %v7035_v25 = vld [vmem:[%s8164_s28 + $0xef8] sm:$0xff]  ;;  %v7290_v28 = vcombine.high %v7030_v23, %v7034_v30  ;;  %v7289_v36 = vcombine.low %v7030_v23, %v7034_v30  ;;  %v7046_v46 = vld [vmem:[%s8164_s28 + $0xf50] sm:$0xff] }
 0x4b7   : > { %5087 = vmatprep.subr.bf16.mxu0 %v7250_v48  ;;  %v7292_v31 = vcombine.high %v7031_v24, %v7035_v25  ;;  %v7291_v37 = vcombine.low %v7031_v24, %v7035_v25  ;;  %v7047_v48 = vld [vmem:[%s8164_s28 + $0xf58] sm:$0xff] }
 0x4b9   : > { %5166 = vmatpush1.bf16.msra.mxu1 %v7235_v33  ;;  %v7042_v33 = vld [vmem:[%s8164_s28 + $0xf30] sm:$0xff] }
 0x4ba   : > { %5167 = vmatprep.subr.bf16.mxu1 %v7244_v35  ;;  %5088 = vmatpush1.bf16.msra.mxu0 %v7249_v57  ;;  %v7043_v35 = vld [vmem:[%s8164_s28 + $0xf38] sm:$0xff]  ;;  %v7298_v38 = vcombine.high %v7038_v32, %v7042_v33  ;;  %v7297_v50 = vcombine.low %v7038_v32, %v7042_v33  ;;  %v7054_v57 = vld [vmem:[%s8164_s28 + $0xf90] sm:$0xff] }
 0x4bb   : > { %5089 = vmatprep.subr.bf16.mxu0 %v7258_v55  ;;  %v7300_v42 = vcombine.high %v7039_v34, %v7043_v35  ;;  %v7299_v51 = vcombine.low %v7039_v34, %v7043_v35  ;;  %v7055_v55 = vld [vmem:[%s8164_s28 + $0xf98] sm:$0xff] }
 0x4bd   : > { %5168 = vmatpush1.bf16.msra.mxu1 %v7243_v47  ;;  %v7050_v47 = vld [vmem:[%s8164_s28 + $0xf70] sm:$0xff] }
 0x4be   : > { %5169 = vmatprep.subr.bf16.mxu1 %v7252_v49  ;;  %5090 = vmatpush1.bf16.msra.mxu0 %v7257_v4  ;;  %v7051_v49 = vld [vmem:[%s8164_s28 + $0xf78] sm:$0xff]  ;;  %v7306_v52 = vcombine.high %v7046_v46, %v7050_v47  ;;  %v7305_v58 = vcombine.low %v7046_v46, %v7050_v47  ;;  %v7062_v4 = vld [vmem:[%s8164_s28 + $0xfd0] sm:$0xff] }
 0x4bf   : > { %5091 = vmatprep.subr.bf16.mxu0 %v7266_v19  ;;  %v7308_v53 = vcombine.high %v7047_v48, %v7051_v49  ;;  %v7307_v60 = vcombine.low %v7047_v48, %v7051_v49  ;;  %v7063_v19 = vld [vmem:[%s8164_s28 + $0xfd8] sm:$0xff] }
 0x4c1   : > { %5170 = vmatpush1.bf16.msra.mxu1 %v7251_v1  ;;  %v7058_v1 = vld [vmem:[%s8164_s28 + $0xfb0] sm:$0xff] }
 0x4c2   : > { %5171 = vmatprep.subr.bf16.mxu1 %v7260_v56  ;;  %5092 = vmatpush1.bf16.msra.mxu0 %v7265_v9  ;;  %v7059_v56 = vld [vmem:[%s8164_s28 + $0xfb8] sm:$0xff]  ;;  %v7314_v61 = vcombine.high %v7054_v57, %v7058_v1  ;;  %v7313_v5 = vcombine.low %v7054_v57, %v7058_v1 }
 0x4c3   : > { %5093 = vmatprep.subr.bf16.mxu0 %v7274_v11  ;;  %v7316_v3 = vcombine.high %v7055_v55, %v7059_v56  ;;  %v7315_v6 = vcombine.low %v7055_v55, %v7059_v56  ;;  %v7068_v11 = vld [vmem:[%s8177_s21 + $0x8] sm:$0xff] }
 0x4c4   : > { %v3561_v20 = vrot.slane %v7068_v11, %v580_v43  ;;  %v3557_v13 = vrot.slane %v7068_v11, %v8482_v44  ;;  %v3565_v14 = vrot.slane %v7068_v11, %v584_v45  ;;  %v3577_v45 = vrot.slane %v7068_v11, %v596_v63 }
 0x4c5   : > { %5172 = vmatpush1.bf16.msra.mxu1 %v7259_v39  ;;  %v7066_v39 = vld [vmem:[%s8164_s28 + $0xff0] sm:$0xff] }
 0x4c6   : > { %5173 = vmatprep.subr.bf16.mxu1 %v7268_v16  ;;  %5094 = vmatpush1.bf16.msra.mxu0 %v7273_v17  ;;  %v7067_v16 = vld [vmem:[%s8164_s28 + $0xff8] sm:$0xff]  ;;  %v7322_v7 = vcombine.high %v7062_v4, %v7066_v39  ;;  %v7321_v9 = vcombine.low %v7062_v4, %v7066_v39  ;;  %s8987_s28 = smov 0  }
 0x4c7   : > { %5095 = vmatprep.subr.bf16.mxu0 %v7282_v18  ;;  %v7324_v8 = vcombine.high %v7063_v19, %v7067_v16 }
 0x4c9   : > { %5174 = vmatpush1.bf16.msra.mxu1 %v7267_v10  ;;  %v7323_v10 = vcombine.low %v7063_v19, %v7067_v16 }
 0x4ca   : > { %5175 = vmatprep.subr.bf16.mxu1 %v7276_v12  ;;  %5096 = vmatpush1.bf16.msra.mxu0 %v7281_v26  ;;  %v3553_v12 = vrot.slane %v7068_v11, %v8477_v41 }
 0x4cb   : > { %5097 = vmatprep.subr.bf16.mxu0 %v7290_v28  ;;  %v3573_v28 = vrot.slane %v7068_v11, %v592_v0  ;;  %v8983_v0 = vmov 0.0  }
 0x4cd   : > { %5176 = vmatpush1.bf16.msra.mxu1 %v7275_v21 }
 0x4ce   : > { %5177 = vmatprep.subr.bf16.mxu1 %v7284_v22  ;;  %5098 = vmatpush1.bf16.msra.mxu0 %v7289_v36 }
 0x4cf   : > { %5099 = vmatprep.subr.bf16.mxu0 %v7298_v38 }
 0x4d1   : > { %5178 = vmatpush1.bf16.msra.mxu1 %v7283_v27  ;;  %v3569_v27 = vrot.slane %v7068_v11, %v588_v62 }
 0x4d2   : > { %5179 = vmatprep.subr.bf16.mxu1 %v7292_v31  ;;  %5100 = vmatpush1.bf16.msra.mxu0 %v7297_v50  ;;  %v3581_v31 = vrot.slane %v7068_v11, %v600_v2 }
 0x4d3   : > { %5101 = vmatprep.subr.bf16.mxu0 %v7306_v52 }
 0x4d5   : > { %5180 = vmatpush1.bf16.msra.mxu1 %v7291_v37 }
 0x4d6   : > { %5181 = vmatprep.subr.bf16.mxu1 %v7300_v42  ;;  %5102 = vmatpush1.bf16.msra.mxu0 %v7305_v58 }
 0x4d7   : > { %5103 = vmatprep.subr.bf16.mxu0 %v7314_v61 }
 0x4d9   : > { %5182 = vmatpush1.bf16.msra.mxu1 %v7299_v51 }
 0x4da   : > { %5183 = vmatprep.subr.bf16.mxu1 %v7308_v53  ;;  %5104 = vmatpush1.bf16.msra.mxu0 %v7313_v5 }
 0x4db   : > { %5105 = vmatprep.subr.bf16.mxu0 %v7322_v7 }
 0x4dd   : > { %5184 = vmatpush1.bf16.msra.mxu1 %v7307_v60 }
 0x4de   : > { %5185 = vmatprep.subr.bf16.mxu1 %v7316_v3  ;;  %5106 = vmatpush1.bf16.msra.mxu0 %v7321_v9 }
 0x4e1   : > { %5186 = vmatpush1.bf16.msra.mxu1 %v7315_v6  ;;  %5108 = vmatmul.mubr.bf16.vlgmr.msra.gmra.mrb[4].mxu0 %v8339_v29 }
 0x4e2   : > { %5187 = vmatprep.subr.bf16.mxu1 %v7324_v8 }
 0x4e5   : > { %5188 = vmatpush1.bf16.msra.mxu1 %v7323_v10 }
 0x4e8   : > { %5190 = vmatmul.mubr.bf16.vlgmr.msra.gmra.mrb[4].mxu1 %v8339_v29 }
 0x532   : > { %v4945_v15 = vpop.f32.mrb[0].mxu0 }
 0x533   : > { %v7623_v17 = vadd.f32 %v4945_v15, %v3553_v12  ;;  %v4947_v18 = vpop.f32.mrb[1].mxu0 }
 0x534   : > { %v7624_v23 = vadd.f32 %v4947_v18, %v3557_v13  ;;  %v4949_v24 = vpop.f32.mrb[2].mxu0 }
 0x535   : > { %5198 = vst [vmem:[#allocation4] sm:$0xff] %v7623_v17  ;;  %v4950_v26 = vpop.f32.mrb[3].mxu0 }
 0x536   : > { %5199 = vst [vmem:[#allocation4 + $0x8] sm:$0xff] %v7624_v23 }
 0x53b   : > { %v5027_v21 = vpop.f32.mrb[0].mxu1 }
 0x53c   : > { %v7625_v22 = vadd.f32 %v5027_v21, %v3561_v20  ;;  %v5029_v30 = vpop.f32.mrb[1].mxu1 }
 0x53d   : > { %v7626_v29 = vadd.f32 %v5029_v30, %v3565_v14  ;;  %v5031_v25 = vpop.f32.mrb[2].mxu1 }
 0x53e   : > { %5200 = vst [vmem:[#allocation4 + $0x10] sm:$0xff] %v7625_v22  ;;  %v5032_v43 = vpop.f32.mrb[3].mxu1 }
 0x53f   : > { %5201 = vst [vmem:[#allocation4 + $0x18] sm:$0xff] %v7626_v29 }
 0x5b4   : > { %v5109_v32 = vpop.f32.mrb[4].mxu0 }
 0x5b5   : > { %v7627_v33 = vadd.f32 %v5109_v32, %v3569_v27  ;;  %v5111_v35 = vpop.f32.mrb[5].mxu0 }
 0x5b6   : > { %v7628_v37 = vadd.f32 %v5111_v35, %v3573_v28  ;;  %v5113_v42 = vpop.f32.mrb[6].mxu0 }
 0x5b7   : > { %5202 = vst [vmem:[#allocation4 + $0x20] sm:$0xff] %v7627_v33  ;;  %v5114_v47 = vpop.f32.mrb[7].mxu0 }
 0x5b8   : > { %5203 = vst [vmem:[#allocation4 + $0x28] sm:$0xff] %v7628_v37 }
 0x5bb   : > { %v5191_v34 = vpop.f32.mrb[4].mxu1 }
 0x5bc   : > { %v7629_v36 = vadd.f32 %v5191_v34, %v3577_v45  ;;  %v5193_v38 = vpop.f32.mrb[5].mxu1 }
 0x5bd   : > { %v7630_v46 = vadd.f32 %v5193_v38, %v3581_v31  ;;  %v5195_v62 = vpop.f32.mrb[6].mxu1 }
 0x5be   : > { %5204 = vst [vmem:[#allocation4 + $0x30] sm:$0xff] %v7629_v36  ;;  %v5196_v63 = vpop.f32.mrb[7].mxu1 }
 0x5bf   : > { %5205 = vst [vmem:[#allocation4 + $0x38] sm:$0xff] %v7630_v46 }
 0x5c0 LB: >> { %v7327_v2 = vld [vmem:[%s8171_s13 + $0x400] sm:$0xff]  ;;  %v7328_v49 = vld [vmem:[%s8171_s13 + $0x408] sm:$0xff]  ;;  %v5234_v16 = vrot.slane %v7953_v40, %v8482_v44  ;;  %s5214_s7 = ssub.s32 7, %s7957_s28  ;;  %s5211_s28 = sadd.s32 1, %s7957_s28   ;;  %s7957_s28 = sphi %s8987_s28, %s5211_s28   ;;  %v7953_v40 = vphi %v8985_v40, %v6261_v40   ;;  %v7949_v0 = vphi %v8983_v0, %v6259_v0  }
 0x5c1   : >> { %v7331_v48 = vld [vmem:[%s8171_s13 + $0x420] sm:$0xff]  ;;  %v7332_v51 = vld [vmem:[%s8171_s13 + $0x428] sm:$0xff]  ;;  %s9145_s21 = sshra.s32 %s5214_s7, 3  ;;  %s9147_s25 = sand.u32 7, %s5214_s7 }
 0x5c2   : >> { %v7456_v50 = vcombine.high %v7327_v2, %v7331_v48  ;;  %v7455_v52 = vcombine.low %v7327_v2, %v7331_v48  ;;  %v7335_v53 = vld [vmem:[%s8171_s13 + $0x440] sm:$0xff]  ;;  %v7458_v1 = vcombine.high %v7328_v49, %v7332_v51  ;;  %v7457_v55 = vcombine.low %v7328_v49, %v7332_v51  ;;  %v7336_v58 = vld [vmem:[%s8171_s13 + $0x448] sm:$0xff]  ;;  %s7597_s30 = sshll.u32 %s9145_s21, 6  ;;  %s7598_s22 = sshll.u32 %s9145_s21, 5 }
 0x5c3   : >> { %v7339_v57 = vld [vmem:[%s8171_s13 + $0x460] sm:$0xff]  ;;  %v7340_v60 = vld [vmem:[%s8171_s13 + $0x468] sm:$0xff]  ;;  %v9016_v20 = vpack.c.bf16 %v5234_v16, %v5234_v16  ;;  %s5221_s5 = sadd.s32 %s7597_s30, %s9147_s25  ;;  %s6346_s6 = sadd.s32 %s7598_s22, %s9147_s25 }
 0x5c4   : >> { %v7464_v56 = vcombine.high %v7335_v53, %v7339_v57  ;;  %v7343_v61 = vld [vmem:[%s8171_s13 + $0x480] sm:$0xff]  ;;  %6008 = vmatprep.subr.bf16.mxu0 %v7456_v50  ;;  %v7466_v3 = vcombine.high %v7336_v58, %v7340_v60  ;;  %v7344_v39 = vld [vmem:[%s8171_s13 + $0x488] sm:$0xff]  ;;  %6049 = vmatprep.subr.bf16.mxu1 %v7458_v1  ;;  %v7463_v5 = vcombine.low %v7335_v53, %v7339_v57  ;;  %s5222_s15 = scalar_lea.vmem [#allocation4], %s5221_s5  ;;  %s6347_s24 = scalar_lea.vmem [#allocation3], %s6346_s6 }
 0x5c5   : >> { %v7347_v4 = vld [vmem:[%s8171_s13 + $0x4a0] sm:$0xff]  ;;  %v7348_v19 = vld [vmem:[%s8171_s13 + $0x4a8] sm:$0xff]  ;;  %6009 = vmatpush1.bf16.msra.mxu0 %v7455_v52  ;;  %6050 = vmatpush1.bf16.msra.mxu1 %v7457_v55  ;;  %v7465_v6 = vcombine.low %v7336_v58, %v7340_v60  ;;  %p5208_p9 = scmp.ge.s32.totalorder %s5211_s28, 8  }
 0x5c6   : >> { %6010 = vmatprep.subr.bf16.mxu0 %v7464_v56  ;;  %v7472_v7 = vcombine.high %v7343_v61, %v7347_v4  ;;  %6051 = vmatprep.subr.bf16.mxu1 %v7466_v3  ;;  %v7474_v8 = vcombine.high %v7344_v39, %v7348_v19  ;;  %v7351_v9 = vld [vmem:[%s8171_s13 + $0x4c0] sm:$0xff]  ;;  %v7352_v11 = vld [vmem:[%s8171_s13 + $0x4c8] sm:$0xff]  ;;  %v7471_v13 = vcombine.low %v7343_v61, %v7347_v4  ;;  %p7589_p0 = scmp.ne.s32.totalorder (%p5208_p9), %s8011_s19, 5 }
 0x5c7   : >> { %v7355_v10 = vld [vmem:[%s8171_s13 + $0x4e0] sm:$0xff]  ;;  %v7356_v12 = vld [vmem:[%s8171_s13 + $0x4e8] sm:$0xff]  ;;  %v7473_v14 = vcombine.low %v7344_v39, %v7348_v19  ;;  %6040 = vmatprep.mubr.bf16.mxu0 %v9016_v20  ;;  %6081 = vmatprep.mubr.bf16.mxu1 %v9016_v20 }
 0x5c8   : >> { %v7480_v15 = vcombine.high %v7351_v9, %v7355_v10  ;;  %v7482_v17 = vcombine.high %v7352_v11, %v7356_v12  ;;  %v7359_v21 = vld [vmem:[%s8171_s13 + $0x500] sm:$0xff]  ;;  %v7360_v22 = vld [vmem:[%s8171_s13 + $0x508] sm:$0xff]  ;;  %v7479_v30 = vcombine.low %v7351_v9, %v7355_v10  ;;  %v7481_v24 = vcombine.low %v7352_v11, %v7356_v12 }
 0x5c9   : >> { %6011 = vmatpush1.bf16.msra.mxu0 %v7463_v5  ;;  %6052 = vmatpush1.bf16.msra.mxu1 %v7465_v6  ;;  %v7363_v18 = vld [vmem:[%s8171_s13 + $0x520] sm:$0xff]  ;;  %v7364_v23 = vld [vmem:[%s8171_s13 + $0x528] sm:$0xff] }
 0x5ca   : >> { %6012 = vmatprep.subr.bf16.mxu0 %v7472_v7  ;;  %6053 = vmatprep.subr.bf16.mxu1 %v7474_v8  ;;  %v7488_v29 = vcombine.high %v7359_v21, %v7363_v18  ;;  %v7490_v25 = vcombine.high %v7360_v22, %v7364_v23  ;;  %v7367_v26 = vld [vmem:[%s8171_s13 + $0x540] sm:$0xff]  ;;  %v7368_v27 = vld [vmem:[%s8171_s13 + $0x548] sm:$0xff]  ;;  %v7487_v28 = vcombine.low %v7359_v21, %v7363_v18 }
 0x5cb   : >> { %v7371_v43 = vld [vmem:[%s8171_s13 + $0x560] sm:$0xff]  ;;  %v7372_v45 = vld [vmem:[%s8171_s13 + $0x568] sm:$0xff]  ;;  %v7489_v31 = vcombine.low %v7360_v22, %v7364_v23 }
 0x5cc   : >> { %v7496_v32 = vcombine.high %v7367_v26, %v7371_v43  ;;  %v7498_v33 = vcombine.high %v7368_v27, %v7372_v45  ;;  %v7375_v34 = vld [vmem:[%s8171_s13 + $0x580] sm:$0xff]  ;;  %v7376_v36 = vld [vmem:[%s8171_s13 + $0x588] sm:$0xff]  ;;  %v7495_v38 = vcombine.low %v7367_v26, %v7371_v43  ;;  %v7497_v42 = vcombine.low %v7368_v27, %v7372_v45 }
 0x5cd   : >> { %6013 = vmatpush1.bf16.msra.mxu0 %v7471_v13  ;;  %6054 = vmatpush1.bf16.msra.mxu1 %v7473_v14  ;;  %v7379_v35 = vld [vmem:[%s8171_s13 + $0x5a0] sm:$0xff]  ;;  %v7380_v37 = vld [vmem:[%s8171_s13 + $0x5a8] sm:$0xff] }
 0x5ce   : >> { %6014 = vmatprep.subr.bf16.mxu0 %v7480_v15  ;;  %6055 = vmatprep.subr.bf16.mxu1 %v7482_v17  ;;  %v7504_v46 = vcombine.high %v7375_v34, %v7379_v35  ;;  %v7506_v62 = vcombine.high %v7376_v36, %v7380_v37  ;;  %v7383_v47 = vld [vmem:[%s8171_s13 + $0x5c0] sm:$0xff]  ;;  %v7384_v2 = vld [vmem:[%s8171_s13 + $0x5c8] sm:$0xff]  ;;  %v7503_v49 = vcombine.low %v7375_v34, %v7379_v35 }
 0x5cf   : >> { %v7387_v63 = vld [vmem:[%s8171_s13 + $0x5e0] sm:$0xff]  ;;  %v7388_v48 = vld [vmem:[%s8171_s13 + $0x5e8] sm:$0xff]  ;;  %v7505_v50 = vcombine.low %v7376_v36, %v7380_v37 }
 0x5d0   : >> { %v7512_v51 = vcombine.high %v7383_v47, %v7387_v63  ;;  %v7514_v52 = vcombine.high %v7384_v2, %v7388_v48  ;;  %v7391_v53 = vld [vmem:[%s8171_s13 + $0x600] sm:$0xff]  ;;  %v7392_v1 = vld [vmem:[%s8171_s13 + $0x608] sm:$0xff]  ;;  %v7511_v56 = vcombine.low %v7383_v47, %v7387_v63  ;;  %v7513_v58 = vcombine.low %v7384_v2, %v7388_v48 }
 0x5d1   : >> { %6015 = vmatpush1.bf16.msra.mxu0 %v7479_v30  ;;  %6056 = vmatpush1.bf16.msra.mxu1 %v7481_v24  ;;  %v7395_v57 = vld [vmem:[%s8171_s13 + $0x620] sm:$0xff]  ;;  %v7396_v55 = vld [vmem:[%s8171_s13 + $0x628] sm:$0xff] }
 0x5d2   : >> { %6016 = vmatprep.subr.bf16.mxu0 %v7488_v29  ;;  %6057 = vmatprep.subr.bf16.mxu1 %v7490_v25  ;;  %v7520_v60 = vcombine.high %v7391_v53, %v7395_v57  ;;  %v7522_v61 = vcombine.high %v7392_v1, %v7396_v55  ;;  %v7399_v3 = vld [vmem:[%s8171_s13 + $0x640] sm:$0xff]  ;;  %v7400_v39 = vld [vmem:[%s8171_s13 + $0x648] sm:$0xff]  ;;  %v7519_v16 = vcombine.low %v7391_v53, %v7395_v57 }
 0x5d3   : >> { %v7403_v4 = vld [vmem:[%s8171_s13 + $0x660] sm:$0xff]  ;;  %v7404_v19 = vld [vmem:[%s8171_s13 + $0x668] sm:$0xff]  ;;  %v7521_v5 = vcombine.low %v7392_v1, %v7396_v55 }
 0x5d4   : >> { %v7528_v6 = vcombine.high %v7399_v3, %v7403_v4  ;;  %v7530_v7 = vcombine.high %v7400_v39, %v7404_v19  ;;  %v7407_v8 = vld [vmem:[%s8171_s13 + $0x680] sm:$0xff]  ;;  %v7408_v10 = vld [vmem:[%s8171_s13 + $0x688] sm:$0xff]  ;;  %v7527_v12 = vcombine.low %v7399_v3, %v7403_v4  ;;  %v7529_v13 = vcombine.low %v7400_v39, %v7404_v19  ;;  %v7333_v3 = vld [vmem:[%s8171_s13 + $0x430] sm:$0xff] }
 0x5d5   : >> { %6017 = vmatpush1.bf16.msra.mxu0 %v7487_v28  ;;  %6058 = vmatpush1.bf16.msra.mxu1 %v7489_v31  ;;  %v7411_v9 = vld [vmem:[%s8171_s13 + $0x6a0] sm:$0xff]  ;;  %v7412_v11 = vld [vmem:[%s8171_s13 + $0x6a8] sm:$0xff]  ;;  %v5230_v4 = vrot.slane %v7953_v40, %v8477_v41  ;;  %v7330_v39 = vld [vmem:[%s8171_s13 + $0x418] sm:$0xff] }
 0x5d6   : >> { %6018 = vmatprep.subr.bf16.mxu0 %v7496_v32  ;;  %6059 = vmatprep.subr.bf16.mxu1 %v7498_v33  ;;  %v7536_v14 = vcombine.high %v7407_v8, %v7411_v9  ;;  %v7538_v15 = vcombine.high %v7408_v10, %v7412_v11  ;;  %v7415_v17 = vld [vmem:[%s8171_s13 + $0x6c0] sm:$0xff]  ;;  %v7416_v18 = vld [vmem:[%s8171_s13 + $0x6c8] sm:$0xff]  ;;  %v7535_v23 = vcombine.low %v7407_v8, %v7411_v9  ;;  %v7334_v19 = vld [vmem:[%s8171_s13 + $0x438] sm:$0xff] }
 0x5d7   : >> { %v7419_v21 = vld [vmem:[%s8171_s13 + $0x6e0] sm:$0xff]  ;;  %v7420_v22 = vld [vmem:[%s8171_s13 + $0x6e8] sm:$0xff]  ;;  %v7537_v30 = vcombine.low %v7408_v10, %v7412_v11  ;;  %v7337_v8 = vld [vmem:[%s8171_s13 + $0x450] sm:$0xff]  ;;  %v9076_v10 = vpack.c.bf16 %v5230_v4, %v5230_v4 }
 0x5d8   : >> { %v7544_v24 = vcombine.high %v7415_v17, %v7419_v21  ;;  %v7546_v29 = vcombine.high %v7416_v18, %v7420_v22  ;;  %v7423_v25 = vld [vmem:[%s8171_s13 + $0x700] sm:$0xff]  ;;  %v7424_v43 = vld [vmem:[%s8171_s13 + $0x708] sm:$0xff]  ;;  %v7543_v45 = vcombine.low %v7415_v17, %v7419_v21  ;;  %v7545_v28 = vcombine.low %v7416_v18, %v7420_v22  ;;  %v7341_v9 = vld [vmem:[%s8171_s13 + $0x470] sm:$0xff] }
 0x5d9   : >> { %6019 = vmatpush1.bf16.msra.mxu0 %v7495_v38  ;;  %6060 = vmatpush1.bf16.msra.mxu1 %v7497_v42  ;;  %v7427_v26 = vld [vmem:[%s8171_s13 + $0x720] sm:$0xff]  ;;  %v7428_v27 = vld [vmem:[%s8171_s13 + $0x728] sm:$0xff]  ;;  %v7338_v11 = vld [vmem:[%s8171_s13 + $0x458] sm:$0xff] }
 0x5da   : >> { %6020 = vmatprep.subr.bf16.mxu0 %v7504_v46  ;;  %6061 = vmatprep.subr.bf16.mxu1 %v7506_v62  ;;  %v7552_v31 = vcombine.high %v7423_v25, %v7427_v26  ;;  %v7554_v32 = vcombine.high %v7424_v43, %v7428_v27  ;;  %v7431_v33 = vld [vmem:[%s8171_s13 + $0x740] sm:$0xff]  ;;  %v7432_v35 = vld [vmem:[%s8171_s13 + $0x748] sm:$0xff]  ;;  %v7551_v37 = vcombine.low %v7423_v25, %v7427_v26  ;;  %v7342_v40 = vld [vmem:[%s8171_s13 + $0x478] sm:$0xff] }
 0x5db   : >> { %v7435_v34 = vld [vmem:[%s8171_s13 + $0x760] sm:$0xff]  ;;  %v7436_v36 = vld [vmem:[%s8171_s13 + $0x768] sm:$0xff]  ;;  %v7553_v38 = vcombine.low %v7424_v43, %v7428_v27  ;;  %v7345_v17 = vld [vmem:[%s8171_s13 + $0x490] sm:$0xff] }
 0x5dc   : >> { %v7560_v42 = vcombine.high %v7431_v33, %v7435_v34  ;;  %v7562_v46 = vcombine.high %v7432_v35, %v7436_v36  ;;  %v7439_v62 = vld [vmem:[%s8171_s13 + $0x780] sm:$0xff]  ;;  %v7440_v63 = vld [vmem:[%s8171_s13 + $0x788] sm:$0xff]  ;;  %v7559_v48 = vcombine.low %v7431_v33, %v7435_v34  ;;  %v7349_v21 = vld [vmem:[%s8171_s13 + $0x4b0] sm:$0xff] }
 0x5dd   : >> { %6021 = vmatpush1.bf16.msra.mxu0 %v7503_v49  ;;  %6062 = vmatpush1.bf16.msra.mxu1 %v7505_v50  ;;  %v7443_v47 = vld [vmem:[%s8171_s13 + $0x7a0] sm:$0xff]  ;;  %v7444_v2 = vld [vmem:[%s8171_s13 + $0x7a8] sm:$0xff]  ;;  %v7561_v49 = vcombine.low %v7432_v35, %v7436_v36  ;;  %v7346_v18 = vld [vmem:[%s8171_s13 + $0x498] sm:$0xff] }
 0x5de   : >> { %6022 = vmatprep.subr.bf16.mxu0 %v7512_v51  ;;  %6063 = vmatprep.subr.bf16.mxu1 %v7514_v52  ;;  %v7568_v50 = vcombine.high %v7439_v62, %v7443_v47  ;;  %v7570_v51 = vcombine.high %v7440_v63, %v7444_v2  ;;  %v7447_v52 = vld [vmem:[%s8171_s13 + $0x7c0] sm:$0xff]  ;;  %v7448_v57 = vld [vmem:[%s8171_s13 + $0x7c8] sm:$0xff]  ;;  %v7567_v55 = vcombine.low %v7439_v62, %v7443_v47  ;;  %v7350_v22 = vld [vmem:[%s8171_s13 + $0x4b8] sm:$0xff] }
 0x5df   : >> { %v7451_v53 = vld [vmem:[%s8171_s13 + $0x7e0] sm:$0xff]  ;;  %v7452_v1 = vld [vmem:[%s8171_s13 + $0x7e8] sm:$0xff]  ;;  %v7353_v25 = vld [vmem:[%s8171_s13 + $0x4d0] sm:$0xff] }
 0x5e0   : >> { %v7357_v26 = vld [vmem:[%s8171_s13 + $0x4f0] sm:$0xff]  ;;  %v7354_v43 = vld [vmem:[%s8171_s13 + $0x4d8] sm:$0xff] }
 0x5e1   : >> { %6023 = vmatpush1.bf16.msra.mxu0 %v7511_v56  ;;  %6064 = vmatpush1.bf16.msra.mxu1 %v7513_v58  ;;  %v7569_v56 = vcombine.low %v7440_v63, %v7444_v2  ;;  %v7576_v58 = vcombine.high %v7447_v52, %v7451_v53  ;;  %v7358_v27 = vld [vmem:[%s8171_s13 + $0x4f8] sm:$0xff]  ;;  %v7361_v33 = vld [vmem:[%s8171_s13 + $0x510] sm:$0xff] }
 0x5e2   : >> { %6024 = vmatprep.subr.bf16.mxu0 %v7520_v60  ;;  %6065 = vmatprep.subr.bf16.mxu1 %v7522_v61  ;;  %v7578_v60 = vcombine.high %v7448_v57, %v7452_v1  ;;  %v7329_v61 = vld [vmem:[%s8171_s13 + $0x410] sm:$0xff]  ;;  %v7362_v35 = vld [vmem:[%s8171_s13 + $0x518] sm:$0xff] }
 0x5e3   : >> { %v7365_v34 = vld [vmem:[%s8171_s13 + $0x530] sm:$0xff]  ;;  %v7366_v36 = vld [vmem:[%s8171_s13 + $0x538] sm:$0xff] }
 0x5e4   : >> { %v7373_v62 = vld [vmem:[%s8171_s13 + $0x570] sm:$0xff]  ;;  %v7370_v47 = vld [vmem:[%s8171_s13 + $0x558] sm:$0xff]  ;;  %v7491_v2 = vcombine.low %v7361_v33, %v7365_v34 }
 0x5e5   : >> { %6025 = vmatpush1.bf16.msra.mxu0 %v7519_v16  ;;  %6066 = vmatpush1.bf16.msra.mxu1 %v7521_v5  ;;  %v7575_v16 = vcombine.low %v7447_v52, %v7451_v53  ;;  %v7577_v5 = vcombine.low %v7448_v57, %v7452_v1  ;;  %v7374_v63 = vld [vmem:[%s8171_s13 + $0x578] sm:$0xff]  ;;  %v7381_v52 = vld [vmem:[%s8171_s13 + $0x5b0] sm:$0xff] }
 0x5e6   : >> { %6026 = vmatprep.subr.bf16.mxu0 %v7528_v6  ;;  %6067 = vmatprep.subr.bf16.mxu1 %v7530_v7  ;;  %v7460_v6 = vcombine.high %v7329_v61, %v7333_v3  ;;  %v7462_v7 = vcombine.high %v7330_v39, %v7334_v19  ;;  %v7378_v53 = vld [vmem:[%s8171_s13 + $0x598] sm:$0xff] }
 0x5e7   : >> { %v7382_v57 = vld [vmem:[%s8171_s13 + $0x5b8] sm:$0xff] }
 0x5e8   : >> { %v7390_v4 = vld [vmem:[%s8171_s13 + $0x5f8] sm:$0xff] }
 0x5e9   : >> { %6027 = vmatpush1.bf16.msra.mxu0 %v7527_v12  ;;  %6068 = vmatpush1.bf16.msra.mxu1 %v7529_v13  ;;  %v7459_v12 = vcombine.low %v7329_v61, %v7333_v3  ;;  %v7461_v13 = vcombine.low %v7330_v39, %v7334_v19  ;;  %v7389_v61 = vld [vmem:[%s8171_s13 + $0x5f0] sm:$0xff]  ;;  %v7386_v3 = vld [vmem:[%s8171_s13 + $0x5d8] sm:$0xff]  ;;  %v7509_v19 = vcombine.low %v7378_v53, %v7382_v57 }
 0x5ea   : >> { %6028 = vmatprep.subr.bf16.mxu0 %v7536_v14  ;;  %6069 = vmatprep.subr.bf16.mxu1 %v7538_v15  ;;  %v7468_v14 = vcombine.high %v7337_v8, %v7341_v9  ;;  %v7470_v15 = vcombine.high %v7338_v11, %v7342_v40 }
 0x5ed   : >> { %6029 = vmatpush1.bf16.msra.mxu0 %v7535_v23  ;;  %6070 = vmatpush1.bf16.msra.mxu1 %v7537_v30  ;;  %v7467_v23 = vcombine.low %v7337_v8, %v7341_v9  ;;  %v7469_v30 = vcombine.low %v7338_v11, %v7342_v40  ;;  %v7394_v8 = vld [vmem:[%s8171_s13 + $0x618] sm:$0xff]  ;;  %v7517_v40 = vcombine.low %v7386_v3, %v7390_v4 }
 0x5ee   : >> { %6030 = vmatprep.subr.bf16.mxu0 %v7544_v24  ;;  %6071 = vmatprep.subr.bf16.mxu1 %v7546_v29  ;;  %v7476_v24 = vcombine.high %v7345_v17, %v7349_v21  ;;  %v7478_v29 = vcombine.high %v7346_v18, %v7350_v22  ;;  %v7398_v9 = vld [vmem:[%s8171_s13 + $0x638] sm:$0xff] }
 0x5f1   : >> { %6031 = vmatpush1.bf16.msra.mxu0 %v7543_v45  ;;  %6072 = vmatpush1.bf16.msra.mxu1 %v7545_v28  ;;  %v7475_v45 = vcombine.low %v7345_v17, %v7349_v21  ;;  %v7477_v28 = vcombine.low %v7346_v18, %v7350_v22  ;;  %v7402_v17 = vld [vmem:[%s8171_s13 + $0x658] sm:$0xff]  ;;  %v7525_v22 = vcombine.low %v7394_v8, %v7398_v9 }
 0x5f2   : >> { %6032 = vmatprep.subr.bf16.mxu0 %v7552_v31  ;;  %6073 = vmatprep.subr.bf16.mxu1 %v7554_v32  ;;  %v7484_v31 = vcombine.high %v7353_v25, %v7357_v26  ;;  %v7486_v32 = vcombine.high %v7354_v43, %v7358_v27  ;;  %v7406_v21 = vld [vmem:[%s8171_s13 + $0x678] sm:$0xff] }
 0x5f5   : >> { %6033 = vmatpush1.bf16.msra.mxu0 %v7551_v37  ;;  %6074 = vmatpush1.bf16.msra.mxu1 %v7553_v38  ;;  %v7483_v37 = vcombine.low %v7353_v25, %v7357_v26  ;;  %v7492_v38 = vcombine.high %v7361_v33, %v7365_v34  ;;  %v7410_v25 = vld [vmem:[%s8171_s13 + $0x698] sm:$0xff] }
 0x5f6   : >> { %6034 = vmatprep.subr.bf16.mxu0 %v7560_v42  ;;  %6075 = vmatprep.subr.bf16.mxu1 %v7562_v46  ;;  %v7494_v42 = vcombine.high %v7362_v35, %v7366_v36  ;;  %v7369_v46 = vld [vmem:[%s8171_s13 + $0x550] sm:$0xff]  ;;  %v7414_v26 = vld [vmem:[%s8171_s13 + $0x6b8] sm:$0xff] }
 0x5f7   : >> { %v7499_v1 = vcombine.low %v7369_v46, %v7373_v62  ;;  %v7418_v33 = vld [vmem:[%s8171_s13 + $0x6d8] sm:$0xff] }
 0x5f8   : >> { %v7422_v34 = vld [vmem:[%s8171_s13 + $0x6f8] sm:$0xff] }
 0x5f9   : >> { %6035 = vmatpush1.bf16.msra.mxu0 %v7559_v48  ;;  %6076 = vmatpush1.bf16.msra.mxu1 %v7561_v49  ;;  %v7493_v48 = vcombine.low %v7362_v35, %v7366_v36  ;;  %v7500_v49 = vcombine.high %v7369_v46, %v7373_v62  ;;  %v7541_v36 = vcombine.low %v7410_v25, %v7414_v26  ;;  %v7426_v46 = vld [vmem:[%s8171_s13 + $0x718] sm:$0xff] }
 0x5fa   : >> { %6036 = vmatprep.subr.bf16.mxu0 %v7568_v50  ;;  %6077 = vmatprep.subr.bf16.mxu1 %v7570_v51  ;;  %v7502_v50 = vcombine.high %v7370_v47, %v7374_v63  ;;  %v7377_v51 = vld [vmem:[%s8171_s13 + $0x590] sm:$0xff]  ;;  %v7430_v62 = vld [vmem:[%s8171_s13 + $0x738] sm:$0xff] }
 0x5fb   : >> { %v7507_v39 = vcombine.low %v7377_v51, %v7381_v52 }
 0x5fd   : >> { %6037 = vmatpush1.bf16.msra.mxu0 %v7567_v55  ;;  %6078 = vmatpush1.bf16.msra.mxu1 %v7569_v56  ;;  %v7501_v55 = vcombine.low %v7370_v47, %v7374_v63  ;;  %v7508_v56 = vcombine.high %v7377_v51, %v7381_v52  ;;  %v7549_v63 = vcombine.low %v7418_v33, %v7422_v34  ;;  %v7434_v51 = vld [vmem:[%s8171_s13 + $0x758] sm:$0xff] }
 0x5fe   : >> { %6038 = vmatprep.subr.bf16.mxu0 %v7576_v58  ;;  %6079 = vmatprep.subr.bf16.mxu1 %v7578_v60  ;;  %v7510_v58 = vcombine.high %v7378_v53, %v7382_v57  ;;  %v7385_v60 = vld [vmem:[%s8171_s13 + $0x5d0] sm:$0xff]  ;;  %v7438_v52 = vld [vmem:[%s8171_s13 + $0x778] sm:$0xff]  ;;  %v7557_v57 = vcombine.low %v7426_v46, %v7430_v62 }
 0x5ff   : >> { %v7515_v11 = vcombine.low %v7385_v60, %v7389_v61 }
 0x601   : >> { %6039 = vmatpush1.bf16.msra.mxu0 %v7575_v16  ;;  %6080 = vmatpush1.bf16.msra.mxu1 %v7577_v5  ;;  %v7516_v16 = vcombine.high %v7385_v60, %v7389_v61  ;;  %v7518_v5 = vcombine.high %v7386_v3, %v7390_v4  ;;  %v7442_v60 = vld [vmem:[%s8171_s13 + $0x798] sm:$0xff]  ;;  %v7565_v4 = vcombine.low %v7434_v51, %v7438_v52 }
 0x602   : >> { %6090 = vmatprep.subr.bf16.mxu0 %v7460_v6  ;;  %6131 = vmatprep.subr.bf16.mxu1 %v7462_v7  ;;  %v7393_v6 = vld [vmem:[%s8171_s13 + $0x610] sm:$0xff]  ;;  %v7446_v61 = vld [vmem:[%s8171_s13 + $0x7b8] sm:$0xff] }
 0x603   : >> { %v7397_v7 = vld [vmem:[%s8171_s13 + $0x630] sm:$0xff] }
 0x604   : >> { %6041 = vmatmul.mubr.bf16.vlgmr.msra.gmra.mrb[0].mxu0 %v9076_v10  ;;  %6082 = vmatmul.mubr.bf16.vlgmr.msra.gmra.mrb[0].mxu1 %v9076_v10  ;;  %v7523_v18 = vcombine.low %v7393_v6, %v7397_v7 }
 0x605   : >> { %6091 = vmatpush1.bf16.msra.mxu0 %v7459_v12  ;;  %6132 = vmatpush1.bf16.msra.mxu1 %v7461_v13  ;;  %v7524_v12 = vcombine.high %v7393_v6, %v7397_v7  ;;  %v7526_v13 = vcombine.high %v7394_v8, %v7398_v9  ;;  %v7450_v6 = vld [vmem:[%s8171_s13 + $0x7d8] sm:$0xff]  ;;  %v7573_v9 = vcombine.low %v7442_v60, %v7446_v61 }
 0x606   : >> { %6092 = vmatprep.subr.bf16.mxu0 %v7468_v14  ;;  %6133 = vmatprep.subr.bf16.mxu1 %v7470_v15  ;;  %v7401_v14 = vld [vmem:[%s8171_s13 + $0x650] sm:$0xff]  ;;  %v7454_v7 = vld [vmem:[%s8171_s13 + $0x7f8] sm:$0xff] }
 0x607   : >> { %6122 = vmatprep.mubr.bf16.mxu0 %v9016_v20  ;;  %6163 = vmatprep.mubr.bf16.mxu1 %v9016_v20  ;;  %v7485_v20 = vcombine.low %v7354_v43, %v7358_v27  ;;  %v7405_v15 = vld [vmem:[%s8171_s13 + $0x670] sm:$0xff]  ;;  %v7533_v27 = vcombine.low %v7402_v17, %v7406_v21 }
 0x608   : >> { %v7531_v43 = vcombine.low %v7401_v14, %v7405_v15 }
 0x609   : >> { %6093 = vmatpush1.bf16.msra.mxu0 %v7467_v23  ;;  %6134 = vmatpush1.bf16.msra.mxu1 %v7469_v30  ;;  %v7532_v23 = vcombine.high %v7401_v14, %v7405_v15  ;;  %v7534_v30 = vcombine.high %v7402_v17, %v7406_v21 }
 0x60a   : >> { %6094 = vmatprep.subr.bf16.mxu0 %v7476_v24  ;;  %6135 = vmatprep.subr.bf16.mxu1 %v7478_v29  ;;  %v7409_v24 = vld [vmem:[%s8171_s13 + $0x690] sm:$0xff] }
 0x60b   : >> { %v7413_v29 = vld [vmem:[%s8171_s13 + $0x6b0] sm:$0xff] }
 0x60c   : >> { %v7539_v35 = vcombine.low %v7409_v24, %v7413_v29 }
 0x60d   : >> { %6095 = vmatpush1.bf16.msra.mxu0 %v7475_v45  ;;  %6136 = vmatpush1.bf16.msra.mxu1 %v7477_v28  ;;  %v7540_v45 = vcombine.high %v7409_v24, %v7413_v29  ;;  %v7542_v28 = vcombine.high %v7410_v25, %v7414_v26 }
 0x60e   : >> { %6096 = vmatprep.subr.bf16.mxu0 %v7484_v31  ;;  %6137 = vmatprep.subr.bf16.mxu1 %v7486_v32  ;;  %v7417_v31 = vld [vmem:[%s8171_s13 + $0x6d0] sm:$0xff] }
 0x60f   : >> { %v7421_v32 = vld [vmem:[%s8171_s13 + $0x6f0] sm:$0xff] }
 0x610   : >> { %v7547_v47 = vcombine.low %v7417_v31, %v7421_v32 }
 0x611   : >> { %6097 = vmatpush1.bf16.msra.mxu0 %v7483_v37  ;;  %6138 = vmatpush1.bf16.msra.mxu1 %v7485_v20  ;;  %v7548_v37 = vcombine.high %v7417_v31, %v7421_v32  ;;  %v7550_v20 = vcombine.high %v7418_v33, %v7422_v34 }
 0x612   : >> { %6098 = vmatprep.subr.bf16.mxu0 %v7492_v38  ;;  %6139 = vmatprep.subr.bf16.mxu1 %v7494_v42  ;;  %v7425_v38 = vld [vmem:[%s8171_s13 + $0x710] sm:$0xff] }
 0x613   : >> { %v7429_v42 = vld [vmem:[%s8171_s13 + $0x730] sm:$0xff] }
 0x614   : >> { %v7555_v53 = vcombine.low %v7425_v38, %v7429_v42 }
 0x615   : >> { %6099 = vmatpush1.bf16.msra.mxu0 %v7491_v2  ;;  %6140 = vmatpush1.bf16.msra.mxu1 %v7493_v48  ;;  %v7556_v2 = vcombine.high %v7425_v38, %v7429_v42  ;;  %v7558_v48 = vcombine.high %v7426_v46, %v7430_v62  ;;  %v5223_v38 = vld [vmem:[%s5222_s15] ss:$8 sm:$0xf] }
 0x616   : >> { %6100 = vmatprep.subr.bf16.mxu0 %v7500_v49  ;;  %6141 = vmatprep.subr.bf16.mxu1 %v7502_v50  ;;  %v7433_v49 = vld [vmem:[%s8171_s13 + $0x750] sm:$0xff] }
 0x617   : >> { %v7437_v50 = vld [vmem:[%s8171_s13 + $0x770] sm:$0xff] }
 0x618   : >> { %v7563_v3 = vcombine.low %v7433_v49, %v7437_v50  ;;  %v5224_v42 = vld [vmem:[%s5222_s15] ss:$8 sm:$0xf0] }
 0x619   : >> { %6101 = vmatpush1.bf16.msra.mxu0 %v7499_v1  ;;  %6142 = vmatpush1.bf16.msra.mxu1 %v7501_v55  ;;  %v7564_v1 = vcombine.high %v7433_v49, %v7437_v50  ;;  %v7566_v55 = vcombine.high %v7434_v51, %v7438_v52 }
 0x61a   : >> { %6102 = vmatprep.subr.bf16.mxu0 %v7508_v56  ;;  %6143 = vmatprep.subr.bf16.mxu1 %v7510_v58  ;;  %v7441_v56 = vld [vmem:[%s8171_s13 + $0x790] sm:$0xff] }
 0x61b   : >> { %v7445_v58 = vld [vmem:[%s8171_s13 + $0x7b0] sm:$0xff] }
 0x61c   : >> { %v7571_v8 = vcombine.low %v7441_v56, %v7445_v58 }
 0x61d   : >> { %6103 = vmatpush1.bf16.msra.mxu0 %v7507_v39  ;;  %6144 = vmatpush1.bf16.msra.mxu1 %v7509_v19  ;;  %v7572_v39 = vcombine.high %v7441_v56, %v7445_v58  ;;  %v7574_v19 = vcombine.high %v7442_v60, %v7446_v61 }
 0x61e   : >> { %6104 = vmatprep.subr.bf16.mxu0 %v7516_v16  ;;  %6145 = vmatprep.subr.bf16.mxu1 %v7518_v5  ;;  %v7449_v16 = vld [vmem:[%s8171_s13 + $0x7d0] sm:$0xff] }
 0x61f   : >> { %v7453_v5 = vld [vmem:[%s8171_s13 + $0x7f0] sm:$0xff] }
 0x621   : >> { %6105 = vmatpush1.bf16.msra.mxu0 %v7515_v11  ;;  %6146 = vmatpush1.bf16.msra.mxu1 %v7517_v40  ;;  %v7580_v11 = vcombine.high %v7449_v16, %v7453_v5  ;;  %v7582_v40 = vcombine.high %v7450_v6, %v7454_v7 }
 0x622   : >> { %6106 = vmatprep.subr.bf16.mxu0 %v7524_v12  ;;  %6147 = vmatprep.subr.bf16.mxu1 %v7526_v13  ;;  %v7579_v12 = vcombine.low %v7449_v16, %v7453_v5  ;;  %v7581_v13 = vcombine.low %v7450_v6, %v7454_v7 }
 0x625   : >> { %6107 = vmatpush1.bf16.msra.mxu0 %v7523_v18  ;;  %6148 = vmatpush1.bf16.msra.mxu1 %v7525_v22 }
 0x626   : >> { %6108 = vmatprep.subr.bf16.mxu0 %v7532_v23  ;;  %6149 = vmatprep.subr.bf16.mxu1 %v7534_v30 }
 0x629   : >> { %6109 = vmatpush1.bf16.msra.mxu0 %v7531_v43  ;;  %6150 = vmatpush1.bf16.msra.mxu1 %v7533_v27 }
 0x62a   : >> { %6110 = vmatprep.subr.bf16.mxu0 %v7540_v45  ;;  %6151 = vmatprep.subr.bf16.mxu1 %v7542_v28 }
 0x62d   : >> { %6111 = vmatpush1.bf16.msra.mxu0 %v7539_v35  ;;  %6152 = vmatpush1.bf16.msra.mxu1 %v7541_v36 }
 0x62e   : >> { %6112 = vmatprep.subr.bf16.mxu0 %v7548_v37  ;;  %6153 = vmatprep.subr.bf16.mxu1 %v7550_v20 }
 0x631   : >> { %6113 = vmatpush1.bf16.msra.mxu0 %v7547_v47  ;;  %6154 = vmatpush1.bf16.msra.mxu1 %v7549_v63  ;;  %v5225_v47 = vor.u32 %v5224_v42, %v5223_v38 }
 0x632   : >> { %6114 = vmatprep.subr.bf16.mxu0 %v7556_v2  ;;  %6155 = vmatprep.subr.bf16.mxu1 %v7558_v48 }
 0x635   : >> { %6115 = vmatpush1.bf16.msra.mxu0 %v7555_v53  ;;  %6156 = vmatpush1.bf16.msra.mxu1 %v7557_v57 }
 0x636   : >> { %6116 = vmatprep.subr.bf16.mxu0 %v7564_v1  ;;  %6157 = vmatprep.subr.bf16.mxu1 %v7566_v55 }
 0x639   : >> { %6117 = vmatpush1.bf16.msra.mxu0 %v7563_v3  ;;  %6158 = vmatpush1.bf16.msra.mxu1 %v7565_v4 }
 0x63a   : >> { %6118 = vmatprep.subr.bf16.mxu0 %v7572_v39  ;;  %6159 = vmatprep.subr.bf16.mxu1 %v7574_v19 }
 0x63d   : >> { %6119 = vmatpush1.bf16.msra.mxu0 %v7571_v8  ;;  %6160 = vmatpush1.bf16.msra.mxu1 %v7573_v9 }
 0x63e   : >> { %6120 = vmatprep.subr.bf16.mxu0 %v7580_v11  ;;  %6161 = vmatprep.subr.bf16.mxu1 %v7582_v40 }
 0x641   : >> { %6121 = vmatpush1.bf16.msra.mxu0 %v7579_v12  ;;  %6162 = vmatpush1.bf16.msra.mxu1 %v7581_v13 }
 0x644   : >> { %6123 = vmatmul.mubr.bf16.vlgmr.msra.gmra.mrb[4].mxu0 %v9076_v10  ;;  %6164 = vmatmul.mubr.bf16.vlgmr.msra.gmra.mrb[4].mxu1 %v9076_v10 }
 0x6d7   : >> { %v6042_v14 = vpop.f32.mrb[0].mxu0  ;;  %v6083_v15 = vpop.f32.mrb[0].mxu1 }
 0x6d8   : >> { %v6044_v17 = vpop.f32.mrb[1].mxu0  ;;  %v6085_v18 = vpop.f32.mrb[1].mxu1 }
 0x6d9   : >> { %v6180_v21 = vcombine.low %v6042_v14, %v6044_v17  ;;  %v6046_v22 = vpop.f32.mrb[2].mxu0  ;;  %v6181_v23 = vcombine.low %v6083_v15, %v6085_v18  ;;  %v6087_v30 = vpop.f32.mrb[2].mxu1 }
 0x6da   : >> { %v6047_v24 = vpop.f32.mrb[3].mxu0  ;;  %v6088_v25 = vpop.f32.mrb[3].mxu1 }
 0x6db   : >> { %v6190_v29 = vrot.slane %v6180_v21, %v8663_v54  ;;  %v6197_v26 = vrot.slane %v6181_v23, %v8663_v54 }
 0x6dd   : >> { %v6212_v43 = vcombine.low %v6190_v29, %v6197_v26 }
 0x6df   : >> { %v6220_v62 = vrot.slane %v6212_v43, %v8663_v54 }
 0x717   : >> { %v6124_v10 = vpop.f32.mrb[4].mxu0  ;;  %v6165_v27 = vpop.f32.mrb[4].mxu1 }
 0x718   : >> { %v6126_v45 = vpop.f32.mrb[5].mxu0  ;;  %v6167_v31 = vpop.f32.mrb[5].mxu1 }
 0x719   : >> { %v6182_v28 = vcombine.low %v6124_v10, %v6126_v45  ;;  %v6128_v32 = vpop.f32.mrb[6].mxu0  ;;  %v6183_v33 = vcombine.low %v6165_v27, %v6167_v31  ;;  %v6169_v34 = vpop.f32.mrb[6].mxu1 }
 0x71a   : >> { %v6129_v35 = vpop.f32.mrb[7].mxu0  ;;  %v6170_v37 = vpop.f32.mrb[7].mxu1 }
 0x71b   : >> { %v6204_v36 = vrot.slane %v6182_v28, %v8663_v54  ;;  %v6211_v20 = vrot.slane %v6183_v33, %v8663_v54 }
 0x71d   : >> { %v6213_v46 = vcombine.low %v6204_v36, %v6211_v20 }
 0x71f   : >> { %v6227_v63 = vrot.slane %v6213_v46, %v8663_v54 }
 0x721   : >> { %v6228_v2 = vcombine.low %v6220_v62, %v6227_v63 }
 0x723   : >> { %v6230_v48 = vadd.f32 %v6228_v2, %v5225_v47 }
 0x725   : >> { %v7583_v49 = vmul.f32 -1.442695, %v6230_v48  ;;  %v6238_v50 = vrot.slane %v6230_v48, 2  ;;  %v6249_v52 = vrot.slane %v6230_v48, 6  ;;  %v6246_v1 = vrot.slane %v6230_v48, 4 }
 0x727   : >> { %7765 = vpow2.f32 %v7583_v49  ;;  %v7584_v51 = vmul.f32 -1.442695, %v6238_v50  ;;  %v7585_v53 = vmul.f32 -1.442695, %v6249_v52 }
 0x729   : >> { %7767 = vpow2.f32 %v7584_v51 }
 0x72a   : >> { %7769 = vpow2.f32 %v7585_v53 }
 0x731   : >> { %v7766_v57 = vpop.eup %7765 }
 0x732   : >> { %v6234_v55 = vadd.f32 1.0, %v7766_v57 }
 0x733   : >> { %v7768_v56 = vpop.eup %7767 }
 0x734   : >> { %7771 = vrcp.f32 %v6234_v55  ;;  %v6243_v58 = vadd.f32 1.0, %v7768_v56  ;;  %v7770_v60 = vpop.eup %7769 }
 0x735   : >> { %7773 = vtanh.f32 %v6246_v1  ;;  %v6254_v39 = vadd.f32 1.0, %v7770_v60 }
 0x736   : >> { %7775 = vrcp.f32 %v6243_v58 }
 0x737   : >> { %7777 = vrcp.f32 %v6254_v39 }
 0x73e   : >> { %v7772_v61 = vpop.eup %7771 }
 0x73f   : >> { %v7774_v3 = vpop.eup %7773 }
 0x740   : >> { %v7776_v4 = vpop.eup %7775  ;;  %v6258_v16 = vmul.f32 %v7774_v3, %v7772_v61 }
 0x741   : >> { %v6257_v19 = vmul.f32 %v7949_v0, %v7776_v4  ;;  %v7778_v5 = vpop.eup %7777 }
 0x743   : >> { %v6259_v0 = vadd.f32 %v6258_v16, %v6257_v19  }
 0x745   : >> { %7779 = vtanh.f32 %v6259_v0 }
 0x74c   : > { %5210 = sbr.rel (!%p5208_p9) target bundleno = 1472 (0x5c0), region = 140 }
 0x74f   : >> { %v7780_v6 = vpop.eup %7779 }
 0x750   : >> { %v6261_v40 = vmul.f32 %v7780_v6, %v7778_v5  }
 0x752   : >> { %7588 = vst.msk [vmem:[%s6347_s24 + $0x10] ss:$8 sm:$0x3] %vm8683_vm0, %v6261_v40 }
 0x753   : > { %6276 = sbr.rel (%p7589_p0) target bundleno = 1884 (0x75c), region = 74 }
 0x759   : > { %v6277_v7 = vld [vmem:[#allocation3] sm:$0xff] (!%p7589_p0)  ;;  %v6278_v8 = vld [vmem:[#allocation3 + $0x8] sm:$0xff] (!%p7589_p0)  ;;  %v6279_v9 = vld [vmem:[#allocation3 + $0x10] sm:$0xff] (!%p7589_p0) }
 0x75a   : > { %6281 = vst [vmem:[%s9197_s4] sm:$0xff] %v6277_v7  ;;  %6282 = vst [vmem:[%s9197_s4 + $0x8] sm:$0xff] %v6278_v8  ;;  %v6280_v11 = vld [vmem:[#allocation3 + $0x18] sm:$0xff] }
 0x75b   : > { %6283 = vst [vmem:[%s9197_s4 + $0x10] sm:$0xff] %v6279_v9  ;;  %6284 = vst [vmem:[%s9197_s4 + $0x18] sm:$0xff] %v6280_v11 }
 0x75c PF: > { %p17_p3 = scmp.ge.s32.totalorder %s8014_s20, 8   ;;  %s9209_s15 = smov %s7925_s16 }
 0x75d   : > { %s9210_s16 = smov %s7929_s17  ;;  %s9211_s17 = smov %s8024_s23 }
 0x75e   : > { %s9212_s18 = smov %s8014_s20  ;;  %19 = sbr.rel (!%p17_p3) target bundleno = 5 (0x5), region = 151 }
 0x765   :  { %6296 = vsyncpa [#allocation6], 1 }
 0x766   :  { %6298 = vsyncpa [#allocation6 + $0x1], 1 }
 0x767   :  { %6299 = vsyncpa [#allocation8], 1 }
 0x768   :  { %6301 = vsyncpa [#allocation8 + $0x1], 1 }

</bundles_post_ra>
